<compile_context>
chip_gen: v5e
topology: v5e:2x2
jax: 0.10.0
libtpu: 0.0.40
codegen_flags: <defaults>
</compile_context>

<pallas_src>
import functools
import math

import numpy as np
import jax
import jax.numpy as jnp
from jax.experimental import pallas as pl
from jax.experimental.pallas import tpu as pltpu

W_DIM = 32        # w latent dimension
NUM_WS = 4        # number of w vectors used (3 convs + toRGB)
BASE_CH = 16      # channel count of synthesis layers
IMG_CH = 3
BASE_RES = 4      # const input resolution -> final 16x16 after two 2x upsamples
FINAL_RES = BASE_RES * 4
_PAD = 128        # lane padding in the tap-staging scratch (>= max tap shift, 128-aligned)


# ---------------------------------------------------------------------------
# The single fused Pallas kernel: const -> conv1 -> up -> conv2 -> up -> conv3
# -> toRGB (+ (x+1)/2 folded).  Activation layout: [C, batch*H*W].
# ---------------------------------------------------------------------------
def _synthesis_kernel(wT_ref, aT_ref, ab_ref, const_ref, cw_ref, cb_ref,
                      rgbw_ref, rgbb_ref, u1_ref, u2_ref, o_ref, xpad_ref,
                      *, batch):
    C = BASE_CH

    # Zero the tap-staging scratch once; every later read outside the written
    # interior therefore returns 0 (this is the conv's zero padding).
    xpad_ref[...] = jnp.zeros(xpad_ref.shape, jnp.float32)

    def style_T(layer):
        # [C, batch] = (A * 1/sqrt(W_DIM)) @ w_layer^T + b   (style affine, inlined)
        s = jnp.dot(aT_ref[layer], wT_ref[layer],
                    preferred_element_type=jnp.float32)
        return s + ab_ref[layer]

    def replicate_cols(M, HW):
        # R[b, m] = 1 iff pixel column m belongs to sample b (pixels are
        # sample-major).  Used to broadcast per-sample style / demod columns
        # to all of that sample's pixels via one tiny MXU dot.
        rows = jax.lax.broadcasted_iota(jnp.int32, (batch, M), 0)
        cols = jax.lax.broadcasted_iota(jnp.int32, (batch, M), 1)
        return jnp.where((cols >= rows * HW) & (cols < rows * HW + HW), 1.0, 0.0)

    def conv_block(x_T, layer, H, W):
        # Modulated 3x3 conv + demodulation + bias + lrelu (sqrt(2) gain folded).
        HW = H * W
        M = batch * HW
        R = replicate_cols(M, HW)                                   # [batch, M]

        s_T = style_T(layer)                                        # [C, batch]
        x_mod = x_T * jnp.dot(s_T, R, preferred_element_type=jnp.float32)

        # Stage the modulated activation in the zero-padded scratch so the 9
        # conv taps are just shifted static slices (never leaves VMEM).
        xpad_ref[:, _PAD:_PAD + M] = x_mod

        # Spatial validity masks for the shifted taps (HW and W are powers of 2).
        col = jax.lax.broadcasted_iota(jnp.int32, (1, M), 1)
        p = jnp.bitwise_and(col, HW - 1)        # pixel index within a sample
        pw = jnp.bitwise_and(p, W - 1)          # column within an image row
        mh = {-1: jnp.where(p >= W, 1.0, 0.0),             # needs h-1 >= 0
              1: jnp.where(p < (H - 1) * W, 1.0, 0.0)}     # needs h+1 <= H-1
        mw = {-1: jnp.where(pw >= 1, 1.0, 0.0),            # needs w-1 >= 0
              1: jnp.where(pw < W - 1, 1.0, 0.0)}          # needs w+1 <= W-1

        acc = jnp.zeros((C, M), jnp.float32)
        wsq = jnp.zeros((C, C), jnp.float32)     # sum over taps of w^2 (once per layer)
        for kh in range(3):
            for kw in range(3):
                dh, dw = kh - 1, kw - 1
                w_tap = cw_ref[layer, kh * 3 + kw]                   # [OC, IC]
                wsq = wsq + w_tap * w_tap
                off = _PAD + dh * W + dw
                tap = xpad_ref[:, off:off + M]                       # [IC, M]
                if dh == 0 and dw == 0:
                    mask = None
                elif dh == 0:
                    mask = mw[dw]
                elif dw == 0:
                    mask = mh[dh]
                else:
                    mask = mh[dh] * mw[dw]
                if mask is not None:
                    tap = tap * mask
                acc = acc + jnp.dot(w_tap, tap,
                                    preferred_element_type=jnp.float32)

        # Demodulation: rsqrt(sum_k (w_k * s_k)^2 + eps).  The extra 0.5 inside
        # the rsqrt folds the lrelu sqrt(2) gain (bias was pre-scaled by sqrt(2)),
        # since sqrt(2)*rsqrt(u) == rsqrt(u/2) and lrelu is positively homogeneous.
        dsum = jnp.dot(wsq, s_T * s_T, preferred_element_type=jnp.float32)  # [OC, batch]
        d_T = jax.lax.rsqrt((dsum + 1e-8) * 0.5)
        out = acc * jnp.dot(d_T, R, preferred_element_type=jnp.float32) + cb_ref[layer]
        return jnp.where(out >= 0.0, out, 0.2 * out)                 # lrelu (gain folded)

    # ---- synthesis tower ----
    x = const_ref[...]                                               # [C, batch*16] @ 4x4
    x = conv_block(x, 0, BASE_RES, BASE_RES)
    x = jnp.dot(x, u1_ref[...], preferred_element_type=jnp.float32)  # 4x4 -> 8x8 nearest
    x = conv_block(x, 1, 2 * BASE_RES, 2 * BASE_RES)
    x = jnp.dot(x, u2_ref[...], preferred_element_type=jnp.float32)  # 8x8 -> 16x16 nearest
    x = conv_block(x, 2, FINAL_RES, FINAL_RES)

    # toRGB (modulated 1x1 conv, no demod, no activation); the final (img+1)/2
    # is folded into rgbw / rgbb.  Output is [3, batch*H*W]: lane-dense store.
    HW = FINAL_RES * FINAL_RES
    M = batch * HW
    R = replicate_cols(M, HW)
    x_mod = x * jnp.dot(style_T(3), R, preferred_element_type=jnp.float32)
    o_ref[...] = (jnp.dot(rgbw_ref[...], x_mod,
                          preferred_element_type=jnp.float32) + rgbb_ref[...])


# ---------------------------------------------------------------------------
# Wrapper-side parameter packing (one-time, tiny) + the single pallas_call.
# ---------------------------------------------------------------------------
def _upsample_matrix_T(batch, H, W):
    """Exact 0/1 nearest-2x upsampling matrix, transposed: [batch*H*W, batch*2H*2W]."""
    hw_in, hw_out = H * W, 4 * H * W
    U = np.zeros((batch * hw_in, batch * hw_out), np.float32)
    for b in range(batch):
        for i in range(2 * H):
            for j in range(2 * W):
                U[b * hw_in + (i // 2) * W + (j // 2),
                  b * hw_out + i * (2 * W) + j] = 1.0
    return U


def init_params(key):
    ks = jax.random.split(key, 16)

    def n(k, shape):
        return jax.random.normal(k, shape, dtype=jnp.float32)

    params = {"const": n(ks[0], (BASE_CH, BASE_RES, BASE_RES))}
    ki = 1
    for name in ("conv1", "conv2", "conv3"):
        params[name] = dict(
            affine_w=n(ks[ki], (BASE_CH, W_DIM)),
            affine_b=jnp.ones((BASE_CH,), jnp.float32),
            weight=n(ks[ki + 1], (BASE_CH, BASE_CH, 3, 3)),
            bias=jnp.zeros((BASE_CH,), jnp.float32),
        )
        ki += 2
    params["torgb"] = dict(
        affine_w=n(ks[ki], (BASE_CH, W_DIM)),
        affine_b=jnp.ones((BASE_CH,), jnp.float32),
        weight=n(ks[ki + 1], (IMG_CH, BASE_CH, 1, 1)),
        bias=jnp.zeros((IMG_CH,), jnp.float32),
    )
    return params


def stylegan_xl_forward(params, latents):
    """Equivalent of gen_utils.w_to_img(model, latents).add(1).div(2) for the
    synthetic tower, fused into one Pallas kernel."""
    if latents.ndim == 2:  # broadcast a single w to all layers, like w_to_img
        latents = jnp.broadcast_to(
            latents[:, None, :], (latents.shape[0], NUM_WS, W_DIM))
    w = latents.astype(jnp.float32)
    B = w.shape[0]
    C = BASE_CH
    names = ("conv1", "conv2", "conv3", "torgb")

    # Pre-scaled, transposed parameter packing (all algebraic folds documented):
    wT = jnp.transpose(w, (1, 2, 0))                                       # [4, W_DIM, B]
    aT = jnp.stack([params[n]["affine_w"] * (1.0 / math.sqrt(W_DIM))       # eq-lr gain
                    for n in names])                                       # [4, C, W_DIM]
    ab = jnp.stack([params[n]["affine_b"].reshape(C, 1) for n in names])   # [4, C, 1]

    def conv_w(name):  # [9, OC, IC], tap = kh*3+kw, eq-lr gain folded
        wgt = jnp.transpose(params[name]["weight"], (2, 3, 0, 1)).reshape(9, C, C)
        return wgt * (1.0 / math.sqrt(9 * C))

    cw = jnp.stack([conv_w(n) for n in names[:3]])                         # [3, 9, C, C]
    # lrelu act_gain sqrt(2): folded into the bias here and into the demod
    # rsqrt inside the kernel (it would cancel if folded into the weights).
    cb = jnp.stack([params[n]["bias"].reshape(C, 1)
                    for n in names[:3]]) * math.sqrt(2.0)                  # [3, C, 1]

    # toRGB: fold eq-lr 1/sqrt(C) AND the final (img+1)/2 into weight & bias.
    rgbw = params["torgb"]["weight"][:, :, 0, 0] * (0.5 / math.sqrt(C))    # [3, C]
    rgbb = (params["torgb"]["bias"].reshape(IMG_CH, 1) + 1.0) * 0.5        # [3, 1]

    # Learned const input, flattened to [C, B*4*4] with pixels sample-major.
    const = jnp.tile(params["const"].reshape(C, BASE_RES * BASE_RES), (1, B))

    # Exact 0/1 nearest-upsampling matrices (block-diagonal over the batch).
    u1 = jnp.asarray(_upsample_matrix_T(B, BASE_RES, BASE_RES))
    u2 = jnp.asarray(_upsample_matrix_T(B, 2 * BASE_RES, 2 * BASE_RES))

    M_out = B * FINAL_RES * FINAL_RES
    # TODO(synk): at real StyleGAN-XL sizes (C up to 512, res 64-1024) this
    # single fused call needs a 'parallel' grid over pixel tiles (multiple of
    # 128 lanes; keeps both v7x TCs busy) with VMEM-sized blocks and bf16
    # weights/activations on v6e/v7x; at 16x16 everything fits in <1 MiB of
    # VMEM so one program with whole-array blocks is optimal.
    out = pl.pallas_call(
        functools.partial(_synthesis_kernel, batch=B),
        out_shape=jax.ShapeDtypeStruct((IMG_CH, M_out), jnp.float32),
        scratch_shapes=[pltpu.VMEM((C, 2 * _PAD + M_out), jnp.float32)],
    )(wT, aT, ab, const, cw, cb, rgbw, rgbb, u1, u2)

    # [3, B*H*W] (lane-dense store) -> NCHW [B, 3, H, W], matching the module.
    img = out.reshape(IMG_CH, B, FINAL_RES, FINAL_RES)
    return jnp.transpose(img, (1, 0, 2, 3))


if __name__ == "__main__":
    key = jax.random.PRNGKey(0)
    k_params, k_lat = jax.random.split(key)

    params = init_params(k_params)
    # latents in W space: [batch=2, num_ws=4, w_dim=32]
    latents = jax.random.normal(k_lat, (2, NUM_WS, W_DIM), dtype=jnp.float32)

    img = jax.jit(stylegan_xl_forward)(params, latents)
    img = jax.block_until_ready(img)

    assert img.shape == (2, IMG_CH, FINAL_RES, FINAL_RES), img.shape
    assert img.dtype == jnp.float32
    assert bool(jnp.all(jnp.isfinite(img)))
    print("KERNEL_OK")
</pallas_src>

<mosaic_0001>
module attributes {stable_mosaic.version = 11 : i64} {
  func.func @_synthesis_kernel(%arg0: memref<4x32x2xf32, #tpu.memory_space<vmem>>, %arg1: memref<4x16x32xf32, #tpu.memory_space<vmem>>, %arg2: memref<4x16x1xf32, #tpu.memory_space<vmem>>, %arg3: memref<16x32xf32, #tpu.memory_space<vmem>>, %arg4: memref<3x9x16x16xf32, #tpu.memory_space<vmem>>, %arg5: memref<3x16x1xf32, #tpu.memory_space<vmem>>, %arg6: memref<3x16xf32, #tpu.memory_space<vmem>>, %arg7: memref<3x1xf32, #tpu.memory_space<vmem>>, %arg8: memref<32x128xf32, #tpu.memory_space<vmem>>, %arg9: memref<128x512xf32, #tpu.memory_space<vmem>>, %arg10: memref<3x512xf32, #tpu.memory_space<vmem>>, %arg11: memref<16x768xf32, #tpu.memory_space<vmem>>) attributes {dimension_semantics = [], scalar_prefetch = 0 : i64, scratch_operands = 1 : i64, tpu.core_type = #tpu.core_type<tc>} {
    %cst = arith.constant 0.000000e+00 : f32
    %0 = vector.broadcast %cst : f32 to vector<16x768xf32>
    %c0 = arith.constant 0 : index
    %c0_0 = arith.constant 0 : index
    %1 = vector.load %arg11[%c0, %c0_0] : memref<16x768xf32, #tpu.memory_space<vmem>>, vector<16x768xf32>
    tpu.vector_store %arg11[%c0, %c0_0], %0 {strides = array<i32>} : memref<16x768xf32, #tpu.memory_space<vmem>>, vector<16x768xf32>,
    %c0_1 = arith.constant 0 : index
    %c0_2 = arith.constant 0 : index
    %2 = vector.load %arg3[%c0_1, %c0_2] : memref<16x32xf32, #tpu.memory_space<vmem>>, vector<16x32xf32>
    %3 = tpu.iota {dimensions = array<i32: 0>} : vector<2x32xi32>
    %4 = tpu.iota {dimensions = array<i32: 1>} : vector<2x32xi32>
    %c16_i32 = arith.constant 16 : i32
    %5 = vector.broadcast %c16_i32 : i32 to vector<2x32xi32>
    %6 = arith.muli %3, %5 : vector<2x32xi32>
    %7 = arith.cmpi sge, %4, %6 : vector<2x32xi32>
    %c16_i32_3 = arith.constant 16 : i32
    %8 = vector.broadcast %c16_i32_3 : i32 to vector<2x32xi32>
    %9 = arith.muli %3, %8 : vector<2x32xi32>
    %c16_i32_4 = arith.constant 16 : i32
    %10 = vector.broadcast %c16_i32_4 : i32 to vector<2x32xi32>
    %11 = arith.addi %9, %10 : vector<2x32xi32>
    %12 = arith.cmpi slt, %4, %11 : vector<2x32xi32>
    %13 = arith.andi %7, %12 : vector<2x32xi1>
    %cst_5 = arith.constant 1.000000e+00 : f32
    %cst_6 = arith.constant 0.000000e+00 : f32
    %14 = vector.broadcast %cst_5 : f32 to vector<2x32xf32>
    %15 = vector.broadcast %cst_6 : f32 to vector<2x32xf32>
    %16 = arith.select %13, %14, %15 : vector<2x32xi1>, vector<2x32xf32>
    %c0_7 = arith.constant 0 : index
    %c0_8 = arith.constant 0 : index
    %c0_9 = arith.constant 0 : index
    %17 = vector.load %arg1[%c0_7, %c0_8, %c0_9] : memref<4x16x32xf32, #tpu.memory_space<vmem>>, vector<1x16x32xf32>
    %18 = vector.shape_cast %17 : vector<1x16x32xf32> to vector<16x32xf32>
    %c0_10 = arith.constant 0 : index
    %c0_11 = arith.constant 0 : index
    %c0_12 = arith.constant 0 : index
    %19 = vector.load %arg0[%c0_10, %c0_11, %c0_12] : memref<4x32x2xf32, #tpu.memory_space<vmem>>, vector<1x32x2xf32>
    %20 = vector.shape_cast %19 : vector<1x32x2xf32> to vector<32x2xf32>
    %cst_13 = arith.constant dense<0.000000e+00> : vector<16x2xf32>
    %21 = tpu.matmul %18, %20, %cst_13 {dimension_numbers = #tpu.dot_dimension_numbers<[1], [0], [0], [1], [0, 0, 1, 1], [], []>} : vector<16x32xf32>, vector<32x2xf32>, vector<16x2xf32> -> vector<16x2xf32>
    %c0_14 = arith.constant 0 : index
    %c0_15 = arith.constant 0 : index
    %c0_16 = arith.constant 0 : index
    %22 = vector.load %arg2[%c0_14, %c0_15, %c0_16] : memref<4x16x1xf32, #tpu.memory_space<vmem>>, vector<1x16x1xf32>
    %23 = vector.shape_cast %22 : vector<1x16x1xf32> to vector<16x1xf32>
    %24 = vector.broadcast %23 : vector<16x1xf32> to vector<16x2xf32>
    %25 = arith.addf %21, %24 : vector<16x2xf32>
    %cst_17 = arith.constant dense<0.000000e+00> : vector<16x32xf32>
    %26 = tpu.matmul %25, %16, %cst_17 {dimension_numbers = #tpu.dot_dimension_numbers<[1], [0], [0], [1], [0, 0, 1, 1], [], []>} : vector<16x2xf32>, vector<2x32xf32>, vector<16x32xf32> -> vector<16x32xf32>
    %27 = arith.mulf %2, %26 : vector<16x32xf32>
    %c0_18 = arith.constant 0 : index
    %c128 = arith.constant 128 : index
    %28 = vector.load %arg11[%c0_18, %c128] : memref<16x768xf32, #tpu.memory_space<vmem>>, vector<16x32xf32>
    tpu.vector_store %arg11[%c0_18, %c128], %27 {strides = array<i32>} : memref<16x768xf32, #tpu.memory_space<vmem>>, vector<16x32xf32>,
    %29 = tpu.iota {dimensions = array<i32: 1>} : vector<1x32xi32>
    %c15_i32 = arith.constant 15 : i32
    %30 = vector.broadcast %c15_i32 : i32 to vector<1x32xi32>
    %31 = arith.andi %29, %30 : vector<1x32xi32>
    %c3_i32 = arith.constant 3 : i32
    %32 = vector.broadcast %c3_i32 : i32 to vector<1x32xi32>
    %33 = arith.andi %31, %32 : vector<1x32xi32>
    %c4_i32 = arith.constant 4 : i32
    %34 = vector.broadcast %c4_i32 : i32 to vector<1x32xi32>
    %35 = arith.cmpi sge, %31, %34 : vector<1x32xi32>
    %cst_19 = arith.constant 1.000000e+00 : f32
    %cst_20 = arith.constant 0.000000e+00 : f32
    %36 = vector.broadcast %cst_19 : f32 to vector<1x32xf32>
    %37 = vector.broadcast %cst_20 : f32 to vector<1x32xf32>
    %38 = arith.select %35, %36, %37 : vector<1x32xi1>, vector<1x32xf32>
    %c12_i32 = arith.constant 12 : i32
    %39 = vector.broadcast %c12_i32 : i32 to vector<1x32xi32>
    %40 = arith.cmpi slt, %31, %39 : vector<1x32xi32>
    %cst_21 = arith.constant 1.000000e+00 : f32
    %cst_22 = arith.constant 0.000000e+00 : f32
    %41 = vector.broadcast %cst_21 : f32 to vector<1x32xf32>
    %42 = vector.broadcast %cst_22 : f32 to vector<1x32xf32>
    %43 = arith.select %40, %41, %42 : vector<1x32xi1>, vector<1x32xf32>
    %c1_i32 = arith.constant 1 : i32
    %44 = vector.broadcast %c1_i32 : i32 to vector<1x32xi32>
    %45 = arith.cmpi sge, %33, %44 : vector<1x32xi32>
    %cst_23 = arith.constant 1.000000e+00 : f32
    %cst_24 = arith.constant 0.000000e+00 : f32
    %46 = vector.broadcast %cst_23 : f32 to vector<1x32xf32>
    %47 = vector.broadcast %cst_24 : f32 to vector<1x32xf32>
    %48 = arith.select %45, %46, %47 : vector<1x32xi1>, vector<1x32xf32>
    %c3_i32_25 = arith.constant 3 : i32
    %49 = vector.broadcast %c3_i32_25 : i32 to vector<1x32xi32>
    %50 = arith.cmpi slt, %33, %49 : vector<1x32xi32>
    %cst_26 = arith.constant 1.000000e+00 : f32
    %cst_27 = arith.constant 0.000000e+00 : f32
    %51 = vector.broadcast %cst_26 : f32 to vector<1x32xf32>
    %52 = vector.broadcast %cst_27 : f32 to vector<1x32xf32>
    %53 = arith.select %50, %51, %52 : vector<1x32xi1>, vector<1x32xf32>
    %cst_28 = arith.constant 0.000000e+00 : f32
    %54 = vector.broadcast %cst_28 : f32 to vector<16x32xf32>
    %cst_29 = arith.constant 0.000000e+00 : f32
    %55 = vector.broadcast %cst_29 : f32 to vector<16x16xf32>
    %c0_30 = arith.constant 0 : index
    %c0_31 = arith.constant 0 : index
    %c0_32 = arith.constant 0 : index
    %c0_33 = arith.constant 0 : index
    %56 = vector.load %arg4[%c0_30, %c0_31, %c0_32, %c0_33] : memref<3x9x16x16xf32, #tpu.memory_space<vmem>>, vector<1x1x16x16xf32>
    %57 = vector.shape_cast %56 : vector<1x1x16x16xf32> to vector<16x16xf32>
    %58 = arith.mulf %57, %57 : vector<16x16xf32>
    %59 = arith.addf %55, %58 : vector<16x16xf32>
    %c0_34 = arith.constant 0 : index
    %c123 = arith.constant 123 : index
    %60 = vector.load %arg11[%c0_34, %c123] : memref<16x768xf32, #tpu.memory_space<vmem>>, vector<16x32xf32>
    %61 = arith.mulf %38, %48 : vector<1x32xf32>
    %62 = vector.broadcast %61 : vector<1x32xf32> to vector<16x32xf32>
    %63 = arith.mulf %60, %62 : vector<16x32xf32>
    %cst_35 = arith.constant dense<0.000000e+00> : vector<16x32xf32>
    %64 = tpu.matmul %57, %63, %cst_35 {dimension_numbers = #tpu.dot_dimension_numbers<[1], [0], [0], [1], [0, 0, 1, 1], [], []>} : vector<16x16xf32>, vector<16x32xf32>, vector<16x32xf32> -> vector<16x32xf32>
    %65 = arith.addf %54, %64 : vector<16x32xf32>
    %c0_36 = arith.constant 0 : index
    %c1 = arith.constant 1 : index
    %c0_37 = arith.constant 0 : index
    %c0_38 = arith.constant 0 : index
    %66 = vector.load %arg4[%c0_36, %c1, %c0_37, %c0_38] : memref<3x9x16x16xf32, #tpu.memory_space<vmem>>, vector<1x1x16x16xf32>
    %67 = vector.shape_cast %66 : vector<1x1x16x16xf32> to vector<16x16xf32>
    %68 = arith.mulf %67, %67 : vector<16x16xf32>
    %69 = arith.addf %59, %68 : vector<16x16xf32>
    %c0_39 = arith.constant 0 : index
    %c124 = arith.constant 124 : index
    %70 = vector.load %arg11[%c0_39, %c124] : memref<16x768xf32, #tpu.memory_space<vmem>>, vector<16x32xf32>
    %71 = vector.broadcast %38 : vector<1x32xf32> to vector<16x32xf32>
    %72 = arith.mulf %70, %71 : vector<16x32xf32>
    %cst_40 = arith.constant dense<0.000000e+00> : vector<16x32xf32>
    %73 = tpu.matmul %67, %72, %cst_40 {dimension_numbers = #tpu.dot_dimension_numbers<[1], [0], [0], [1], [0, 0, 1, 1], [], []>} : vector<16x16xf32>, vector<16x32xf32>, vector<16x32xf32> -> vector<16x32xf32>
    %74 = arith.addf %65, %73 : vector<16x32xf32>
    %c0_41 = arith.constant 0 : index
    %c2 = arith.constant 2 : index
    %c0_42 = arith.constant 0 : index
    %c0_43 = arith.constant 0 : index
    %75 = vector.load %arg4[%c0_41, %c2, %c0_42, %c0_43] : memref<3x9x16x16xf32, #tpu.memory_space<vmem>>, vector<1x1x16x16xf32>
    %76 = vector.shape_cast %75 : vector<1x1x16x16xf32> to vector<16x16xf32>
    %77 = arith.mulf %76, %76 : vector<16x16xf32>
    %78 = arith.addf %69, %77 : vector<16x16xf32>
    %c0_44 = arith.constant 0 : index
    %c125 = arith.constant 125 : index
    %79 = vector.load %arg11[%c0_44, %c125] : memref<16x768xf32, #tpu.memory_space<vmem>>, vector<16x32xf32>
    %80 = arith.mulf %38, %53 : vector<1x32xf32>
    %81 = vector.broadcast %80 : vector<1x32xf32> to vector<16x32xf32>
    %82 = arith.mulf %79, %81 : vector<16x32xf32>
    %cst_45 = arith.constant dense<0.000000e+00> : vector<16x32xf32>
    %83 = tpu.matmul %76, %82, %cst_45 {dimension_numbers = #tpu.dot_dimension_numbers<[1], [0], [0], [1], [0, 0, 1, 1], [], []>} : vector<16x16xf32>, vector<16x32xf32>, vector<16x32xf32> -> vector<16x32xf32>
    %84 = arith.addf %74, %83 : vector<16x32xf32>
    %c0_46 = arith.constant 0 : index
    %c3 = arith.constant 3 : index
    %c0_47 = arith.constant 0 : index
    %c0_48 = arith.constant 0 : index
    %85 = vector.load %arg4[%c0_46, %c3, %c0_47, %c0_48] : memref<3x9x16x16xf32, #tpu.memory_space<vmem>>, vector<1x1x16x16xf32>
    %86 = vector.shape_cast %85 : vector<1x1x16x16xf32> to vector<16x16xf32>
    %87 = arith.mulf %86, %86 : vector<16x16xf32>
    %88 = arith.addf %78, %87 : vector<16x16xf32>
    %c0_49 = arith.constant 0 : index
    %c127 = arith.constant 127 : index
    %89 = vector.load %arg11[%c0_49, %c127] : memref<16x768xf32, #tpu.memory_space<vmem>>, vector<16x32xf32>
    %90 = vector.broadcast %48 : vector<1x32xf32> to vector<16x32xf32>
    %91 = arith.mulf %89, %90 : vector<16x32xf32>
    %cst_50 = arith.constant dense<0.000000e+00> : vector<16x32xf32>
    %92 = tpu.matmul %86, %91, %cst_50 {dimension_numbers = #tpu.dot_dimension_numbers<[1], [0], [0], [1], [0, 0, 1, 1], [], []>} : vector<16x16xf32>, vector<16x32xf32>, vector<16x32xf32> -> vector<16x32xf32>
    %93 = arith.addf %84, %92 : vector<16x32xf32>
    %c0_51 = arith.constant 0 : index
    %c4 = arith.constant 4 : index
    %c0_52 = arith.constant 0 : index
    %c0_53 = arith.constant 0 : index
    %94 = vector.load %arg4[%c0_51, %c4, %c0_52, %c0_53] : memref<3x9x16x16xf32, #tpu.memory_space<vmem>>, vector<1x1x16x16xf32>
    %95 = vector.shape_cast %94 : vector<1x1x16x16xf32> to vector<16x16xf32>
    %96 = arith.mulf %95, %95 : vector<16x16xf32>
    %97 = arith.addf %88, %96 : vector<16x16xf32>
    %c0_54 = arith.constant 0 : index
    %c128_55 = arith.constant 128 : index
    %98 = vector.load %arg11[%c0_54, %c128_55] : memref<16x768xf32, #tpu.memory_space<vmem>>, vector<16x32xf32>
    %cst_56 = arith.constant dense<0.000000e+00> : vector<16x32xf32>
    %99 = tpu.matmul %95, %98, %cst_56 {dimension_numbers = #tpu.dot_dimension_numbers<[1], [0], [0], [1], [0, 0, 1, 1], [], []>} : vector<16x16xf32>, vector<16x32xf32>, vector<16x32xf32> -> vector<16x32xf32>
    %100 = arith.addf %93, %99 : vector<16x32xf32>
    %c0_57 = arith.constant 0 : index
    %c5 = arith.constant 5 : index
    %c0_58 = arith.constant 0 : index
    %c0_59 = arith.constant 0 : index
    %101 = vector.load %arg4[%c0_57, %c5, %c0_58, %c0_59] : memref<3x9x16x16xf32, #tpu.memory_space<vmem>>, vector<1x1x16x16xf32>
    %102 = vector.shape_cast %101 : vector<1x1x16x16xf32> to vector<16x16xf32>
    %103 = arith.mulf %102, %102 : vector<16x16xf32>
    %104 = arith.addf %97, %103 : vector<16x16xf32>
    %c0_60 = arith.constant 0 : index
    %c129 = arith.constant 129 : index
    %105 = vector.load %arg11[%c0_60, %c129] : memref<16x768xf32, #tpu.memory_space<vmem>>, vector<16x32xf32>
    %106 = vector.broadcast %53 : vector<1x32xf32> to vector<16x32xf32>
    %107 = arith.mulf %105, %106 : vector<16x32xf32>
    %cst_61 = arith.constant dense<0.000000e+00> : vector<16x32xf32>
    %108 = tpu.matmul %102, %107, %cst_61 {dimension_numbers = #tpu.dot_dimension_numbers<[1], [0], [0], [1], [0, 0, 1, 1], [], []>} : vector<16x16xf32>, vector<16x32xf32>, vector<16x32xf32> -> vector<16x32xf32>
    %109 = arith.addf %100, %108 : vector<16x32xf32>
    %c0_62 = arith.constant 0 : index
    %c6 = arith.constant 6 : index
    %c0_63 = arith.constant 0 : index
    %c0_64 = arith.constant 0 : index
    %110 = vector.load %arg4[%c0_62, %c6, %c0_63, %c0_64] : memref<3x9x16x16xf32, #tpu.memory_space<vmem>>, vector<1x1x16x16xf32>
    %111 = vector.shape_cast %110 : vector<1x1x16x16xf32> to vector<16x16xf32>
    %112 = arith.mulf %111, %111 : vector<16x16xf32>
    %113 = arith.addf %104, %112 : vector<16x16xf32>
    %c0_65 = arith.constant 0 : index
    %c131 = arith.constant 131 : index
    %114 = vector.load %arg11[%c0_65, %c131] : memref<16x768xf32, #tpu.memory_space<vmem>>, vector<16x32xf32>
    %115 = arith.mulf %43, %48 : vector<1x32xf32>
    %116 = vector.broadcast %115 : vector<1x32xf32> to vector<16x32xf32>
    %117 = arith.mulf %114, %116 : vector<16x32xf32>
    %cst_66 = arith.constant dense<0.000000e+00> : vector<16x32xf32>
    %118 = tpu.matmul %111, %117, %cst_66 {dimension_numbers = #tpu.dot_dimension_numbers<[1], [0], [0], [1], [0, 0, 1, 1], [], []>} : vector<16x16xf32>, vector<16x32xf32>, vector<16x32xf32> -> vector<16x32xf32>
    %119 = arith.addf %109, %118 : vector<16x32xf32>
    %c0_67 = arith.constant 0 : index
    %c7 = arith.constant 7 : index
    %c0_68 = arith.constant 0 : index
    %c0_69 = arith.constant 0 : index
    %120 = vector.load %arg4[%c0_67, %c7, %c0_68, %c0_69] : memref<3x9x16x16xf32, #tpu.memory_space<vmem>>, vector<1x1x16x16xf32>
    %121 = vector.shape_cast %120 : vector<1x1x16x16xf32> to vector<16x16xf32>
    %122 = arith.mulf %121, %121 : vector<16x16xf32>
    %123 = arith.addf %113, %122 : vector<16x16xf32>
    %c0_70 = arith.constant 0 : index
    %c132 = arith.constant 132 : index
    %124 = vector.load %arg11[%c0_70, %c132] : memref<16x768xf32, #tpu.memory_space<vmem>>, vector<16x32xf32>
    %125 = vector.broadcast %43 : vector<1x32xf32> to vector<16x32xf32>
    %126 = arith.mulf %124, %125 : vector<16x32xf32>
    %cst_71 = arith.constant dense<0.000000e+00> : vector<16x32xf32>
    %127 = tpu.matmul %121, %126, %cst_71 {dimension_numbers = #tpu.dot_dimension_numbers<[1], [0], [0], [1], [0, 0, 1, 1], [], []>} : vector<16x16xf32>, vector<16x32xf32>, vector<16x32xf32> -> vector<16x32xf32>
    %128 = arith.addf %119, %127 : vector<16x32xf32>
    %c0_72 = arith.constant 0 : index
    %c8 = arith.constant 8 : index
    %c0_73 = arith.constant 0 : index
    %c0_74 = arith.constant 0 : index
    %129 = vector.load %arg4[%c0_72, %c8, %c0_73, %c0_74] : memref<3x9x16x16xf32, #tpu.memory_space<vmem>>, vector<1x1x16x16xf32>
    %130 = vector.shape_cast %129 : vector<1x1x16x16xf32> to vector<16x16xf32>
    %131 = arith.mulf %130, %130 : vector<16x16xf32>
    %132 = arith.addf %123, %131 : vector<16x16xf32>
    %c0_75 = arith.constant 0 : index
    %c133 = arith.constant 133 : index
    %133 = vector.load %arg11[%c0_75, %c133] : memref<16x768xf32, #tpu.memory_space<vmem>>, vector<16x32xf32>
    %134 = arith.mulf %43, %53 : vector<1x32xf32>
    %135 = vector.broadcast %134 : vector<1x32xf32> to vector<16x32xf32>
    %136 = arith.mulf %133, %135 : vector<16x32xf32>
    %cst_76 = arith.constant dense<0.000000e+00> : vector<16x32xf32>
    %137 = tpu.matmul %130, %136, %cst_76 {dimension_numbers = #tpu.dot_dimension_numbers<[1], [0], [0], [1], [0, 0, 1, 1], [], []>} : vector<16x16xf32>, vector<16x32xf32>, vector<16x32xf32> -> vector<16x32xf32>
    %138 = arith.addf %128, %137 : vector<16x32xf32>
    %139 = arith.mulf %25, %25 : vector<16x2xf32>
    %cst_77 = arith.constant dense<0.000000e+00> : vector<16x2xf32>
    %140 = tpu.matmul %132, %139, %cst_77 {dimension_numbers = #tpu.dot_dimension_numbers<[1], [0], [0], [1], [0, 0, 1, 1], [], []>} : vector<16x16xf32>, vector<16x2xf32>, vector<16x2xf32> -> vector<16x2xf32>
    %cst_78 = arith.constant 9.99999993E-9 : f32
    %141 = vector.broadcast %cst_78 : f32 to vector<16x2xf32>
    %142 = arith.addf %140, %141 : vector<16x2xf32>
    %cst_79 = arith.constant 5.000000e-01 : f32
    %143 = vector.broadcast %cst_79 : f32 to vector<16x2xf32>
    %144 = arith.mulf %142, %143 : vector<16x2xf32>
    %145 = math.rsqrt %144 : vector<16x2xf32>
    %cst_80 = arith.constant dense<0.000000e+00> : vector<16x32xf32>
    %146 = tpu.matmul %145, %16, %cst_80 {dimension_numbers = #tpu.dot_dimension_numbers<[1], [0], [0], [1], [0, 0, 1, 1], [], []>} : vector<16x2xf32>, vector<2x32xf32>, vector<16x32xf32> -> vector<16x32xf32>
    %147 = arith.mulf %138, %146 : vector<16x32xf32>
    %c0_81 = arith.constant 0 : index
    %c0_82 = arith.constant 0 : index
    %c0_83 = arith.constant 0 : index
    %148 = vector.load %arg5[%c0_81, %c0_82, %c0_83] : memref<3x16x1xf32, #tpu.memory_space<vmem>>, vector<1x16x1xf32>
    %149 = vector.shape_cast %148 : vector<1x16x1xf32> to vector<16x1xf32>
    %150 = vector.broadcast %149 : vector<16x1xf32> to vector<16x32xf32>
    %151 = arith.addf %147, %150 : vector<16x32xf32>
    %cst_84 = arith.constant 0.000000e+00 : f32
    %152 = vector.broadcast %cst_84 : f32 to vector<16x32xf32>
    %153 = arith.cmpf oge, %151, %152 : vector<16x32xf32>
    %cst_85 = arith.constant 2.000000e-01 : f32
    %154 = vector.broadcast %cst_85 : f32 to vector<16x32xf32>
    %155 = arith.mulf %154, %151 : vector<16x32xf32>
    %156 = arith.select %153, %151, %155 : vector<16x32xi1>, vector<16x32xf32>
    %c0_86 = arith.constant 0 : index
    %c0_87 = arith.constant 0 : index
    %157 = vector.load %arg8[%c0_86, %c0_87] : memref<32x128xf32, #tpu.memory_space<vmem>>, vector<32x128xf32>
    %cst_88 = arith.constant dense<0.000000e+00> : vector<16x128xf32>
    %158 = tpu.matmul %156, %157, %cst_88 {dimension_numbers = #tpu.dot_dimension_numbers<[1], [0], [0], [1], [0, 0, 1, 1], [], []>} : vector<16x32xf32>, vector<32x128xf32>, vector<16x128xf32> -> vector<16x128xf32>
    %159 = tpu.iota {dimensions = array<i32: 0>} : vector<2x128xi32>
    %160 = tpu.iota {dimensions = array<i32: 1>} : vector<2x128xi32>
    %c64_i32 = arith.constant 64 : i32
    %161 = vector.broadcast %c64_i32 : i32 to vector<2x128xi32>
    %162 = arith.muli %159, %161 : vector<2x128xi32>
    %163 = arith.cmpi sge, %160, %162 : vector<2x128xi32>
    %c64_i32_89 = arith.constant 64 : i32
    %164 = vector.broadcast %c64_i32_89 : i32 to vector<2x128xi32>
    %165 = arith.muli %159, %164 : vector<2x128xi32>
    %c64_i32_90 = arith.constant 64 : i32
    %166 = vector.broadcast %c64_i32_90 : i32 to vector<2x128xi32>
    %167 = arith.addi %165, %166 : vector<2x128xi32>
    %168 = arith.cmpi slt, %160, %167 : vector<2x128xi32>
    %169 = arith.andi %163, %168 : vector<2x128xi1>
    %cst_91 = arith.constant 1.000000e+00 : f32
    %cst_92 = arith.constant 0.000000e+00 : f32
    %170 = vector.broadcast %cst_91 : f32 to vector<2x128xf32>
    %171 = vector.broadcast %cst_92 : f32 to vector<2x128xf32>
    %172 = arith.select %169, %170, %171 : vector<2x128xi1>, vector<2x128xf32>
    %c1_93 = arith.constant 1 : index
    %c0_94 = arith.constant 0 : index
    %c0_95 = arith.constant 0 : index
    %173 = vector.load %arg1[%c1_93, %c0_94, %c0_95] : memref<4x16x32xf32, #tpu.memory_space<vmem>>, vector<1x16x32xf32>
    %174 = vector.shape_cast %173 : vector<1x16x32xf32> to vector<16x32xf32>
    %c1_96 = arith.constant 1 : index
    %c0_97 = arith.constant 0 : index
    %c0_98 = arith.constant 0 : index
    %175 = vector.load %arg0[%c1_96, %c0_97, %c0_98] : memref<4x32x2xf32, #tpu.memory_space<vmem>>, vector<1x32x2xf32>
    %176 = vector.shape_cast %175 : vector<1x32x2xf32> to vector<32x2xf32>
    %cst_99 = arith.constant dense<0.000000e+00> : vector<16x2xf32>
    %177 = tpu.matmul %174, %176, %cst_99 {dimension_numbers = #tpu.dot_dimension_numbers<[1], [0], [0], [1], [0, 0, 1, 1], [], []>} : vector<16x32xf32>, vector<32x2xf32>, vector<16x2xf32> -> vector<16x2xf32>
    %c1_100 = arith.constant 1 : index
    %c0_101 = arith.constant 0 : index
    %c0_102 = arith.constant 0 : index
    %178 = vector.load %arg2[%c1_100, %c0_101, %c0_102] : memref<4x16x1xf32, #tpu.memory_space<vmem>>, vector<1x16x1xf32>
    %179 = vector.shape_cast %178 : vector<1x16x1xf32> to vector<16x1xf32>
    %180 = vector.broadcast %179 : vector<16x1xf32> to vector<16x2xf32>
    %181 = arith.addf %177, %180 : vector<16x2xf32>
    %cst_103 = arith.constant dense<0.000000e+00> : vector<16x128xf32>
    %182 = tpu.matmul %181, %172, %cst_103 {dimension_numbers = #tpu.dot_dimension_numbers<[1], [0], [0], [1], [0, 0, 1, 1], [], []>} : vector<16x2xf32>, vector<2x128xf32>, vector<16x128xf32> -> vector<16x128xf32>
    %183 = arith.mulf %158, %182 : vector<16x128xf32>
    %c0_104 = arith.constant 0 : index
    %c128_105 = arith.constant 128 : index
    %184 = vector.load %arg11[%c0_104, %c128_105] : memref<16x768xf32, #tpu.memory_space<vmem>>, vector<16x128xf32>
    tpu.vector_store %arg11[%c0_104, %c128_105], %183 {strides = array<i32>} : memref<16x768xf32, #tpu.memory_space<vmem>>, vector<16x128xf32>,
    %185 = tpu.iota {dimensions = array<i32: 1>} : vector<1x128xi32>
    %c63_i32 = arith.constant 63 : i32
    %186 = vector.broadcast %c63_i32 : i32 to vector<1x128xi32>
    %187 = arith.andi %185, %186 : vector<1x128xi32>
    %c7_i32 = arith.constant 7 : i32
    %188 = vector.broadcast %c7_i32 : i32 to vector<1x128xi32>
    %189 = arith.andi %187, %188 : vector<1x128xi32>
    %c8_i32 = arith.constant 8 : i32
    %190 = vector.broadcast %c8_i32 : i32 to vector<1x128xi32>
    %191 = arith.cmpi sge, %187, %190 : vector<1x128xi32>
    %cst_106 = arith.constant 1.000000e+00 : f32
    %cst_107 = arith.constant 0.000000e+00 : f32
    %192 = vector.broadcast %cst_106 : f32 to vector<1x128xf32>
    %193 = vector.broadcast %cst_107 : f32 to vector<1x128xf32>
    %194 = arith.select %191, %192, %193 : vector<1x128xi1>, vector<1x128xf32>
    %c56_i32 = arith.constant 56 : i32
    %195 = vector.broadcast %c56_i32 : i32 to vector<1x128xi32>
    %196 = arith.cmpi slt, %187, %195 : vector<1x128xi32>
    %cst_108 = arith.constant 1.000000e+00 : f32
    %cst_109 = arith.constant 0.000000e+00 : f32
    %197 = vector.broadcast %cst_108 : f32 to vector<1x128xf32>
    %198 = vector.broadcast %cst_109 : f32 to vector<1x128xf32>
    %199 = arith.select %196, %197, %198 : vector<1x128xi1>, vector<1x128xf32>
    %c1_i32_110 = arith.constant 1 : i32
    %200 = vector.broadcast %c1_i32_110 : i32 to vector<1x128xi32>
    %201 = arith.cmpi sge, %189, %200 : vector<1x128xi32>
    %cst_111 = arith.constant 1.000000e+00 : f32
    %cst_112 = arith.constant 0.000000e+00 : f32
    %202 = vector.broadcast %cst_111 : f32 to vector<1x128xf32>
    %203 = vector.broadcast %cst_112 : f32 to vector<1x128xf32>
    %204 = arith.select %201, %202, %203 : vector<1x128xi1>, vector<1x128xf32>
    %c7_i32_113 = arith.constant 7 : i32
    %205 = vector.broadcast %c7_i32_113 : i32 to vector<1x128xi32>
    %206 = arith.cmpi slt, %189, %205 : vector<1x128xi32>
    %cst_114 = arith.constant 1.000000e+00 : f32
    %cst_115 = arith.constant 0.000000e+00 : f32
    %207 = vector.broadcast %cst_114 : f32 to vector<1x128xf32>
    %208 = vector.broadcast %cst_115 : f32 to vector<1x128xf32>
    %209 = arith.select %206, %207, %208 : vector<1x128xi1>, vector<1x128xf32>
    %cst_116 = arith.constant 0.000000e+00 : f32
    %210 = vector.broadcast %cst_116 : f32 to vector<16x128xf32>
    %cst_117 = arith.constant 0.000000e+00 : f32
    %211 = vector.broadcast %cst_117 : f32 to vector<16x16xf32>
    %c1_118 = arith.constant 1 : index
    %c0_119 = arith.constant 0 : index
    %c0_120 = arith.constant 0 : index
    %c0_121 = arith.constant 0 : index
    %212 = vector.load %arg4[%c1_118, %c0_119, %c0_120, %c0_121] : memref<3x9x16x16xf32, #tpu.memory_space<vmem>>, vector<1x1x16x16xf32>
    %213 = vector.shape_cast %212 : vector<1x1x16x16xf32> to vector<16x16xf32>
    %214 = arith.mulf %213, %213 : vector<16x16xf32>
    %215 = arith.addf %211, %214 : vector<16x16xf32>
    %c0_122 = arith.constant 0 : index
    %c119 = arith.constant 119 : index
    %216 = vector.load %arg11[%c0_122, %c119] : memref<16x768xf32, #tpu.memory_space<vmem>>, vector<16x128xf32>
    %217 = arith.mulf %194, %204 : vector<1x128xf32>
    %218 = vector.broadcast %217 : vector<1x128xf32> to vector<16x128xf32>
    %219 = arith.mulf %216, %218 : vector<16x128xf32>
    %cst_123 = arith.constant dense<0.000000e+00> : vector<16x128xf32>
    %220 = tpu.matmul %213, %219, %cst_123 {dimension_numbers = #tpu.dot_dimension_numbers<[1], [0], [0], [1], [0, 0, 1, 1], [], []>} : vector<16x16xf32>, vector<16x128xf32>, vector<16x128xf32> -> vector<16x128xf32>
    %221 = arith.addf %210, %220 : vector<16x128xf32>
    %c1_124 = arith.constant 1 : index
    %c1_125 = arith.constant 1 : index
    %c0_126 = arith.constant 0 : index
    %c0_127 = arith.constant 0 : index
    %222 = vector.load %arg4[%c1_124, %c1_125, %c0_126, %c0_127] : memref<3x9x16x16xf32, #tpu.memory_space<vmem>>, vector<1x1x16x16xf32>
    %223 = vector.shape_cast %222 : vector<1x1x16x16xf32> to vector<16x16xf32>
    %224 = arith.mulf %223, %223 : vector<16x16xf32>
    %225 = arith.addf %215, %224 : vector<16x16xf32>
    %c0_128 = arith.constant 0 : index
    %c120 = arith.constant 120 : index
    %226 = vector.load %arg11[%c0_128, %c120] : memref<16x768xf32, #tpu.memory_space<vmem>>, vector<16x128xf32>
    %227 = vector.broadcast %194 : vector<1x128xf32> to vector<16x128xf32>
    %228 = arith.mulf %226, %227 : vector<16x128xf32>
    %cst_129 = arith.constant dense<0.000000e+00> : vector<16x128xf32>
    %229 = tpu.matmul %223, %228, %cst_129 {dimension_numbers = #tpu.dot_dimension_numbers<[1], [0], [0], [1], [0, 0, 1, 1], [], []>} : vector<16x16xf32>, vector<16x128xf32>, vector<16x128xf32> -> vector<16x128xf32>
    %230 = arith.addf %221, %229 : vector<16x128xf32>
    %c1_130 = arith.constant 1 : index
    %c2_131 = arith.constant 2 : index
    %c0_132 = arith.constant 0 : index
    %c0_133 = arith.constant 0 : index
    %231 = vector.load %arg4[%c1_130, %c2_131, %c0_132, %c0_133] : memref<3x9x16x16xf32, #tpu.memory_space<vmem>>, vector<1x1x16x16xf32>
    %232 = vector.shape_cast %231 : vector<1x1x16x16xf32> to vector<16x16xf32>
    %233 = arith.mulf %232, %232 : vector<16x16xf32>
    %234 = arith.addf %225, %233 : vector<16x16xf32>
    %c0_134 = arith.constant 0 : index
    %c121 = arith.constant 121 : index
    %235 = vector.load %arg11[%c0_134, %c121] : memref<16x768xf32, #tpu.memory_space<vmem>>, vector<16x128xf32>
    %236 = arith.mulf %194, %209 : vector<1x128xf32>
    %237 = vector.broadcast %236 : vector<1x128xf32> to vector<16x128xf32>
    %238 = arith.mulf %235, %237 : vector<16x128xf32>
    %cst_135 = arith.constant dense<0.000000e+00> : vector<16x128xf32>
    %239 = tpu.matmul %232, %238, %cst_135 {dimension_numbers = #tpu.dot_dimension_numbers<[1], [0], [0], [1], [0, 0, 1, 1], [], []>} : vector<16x16xf32>, vector<16x128xf32>, vector<16x128xf32> -> vector<16x128xf32>
    %240 = arith.addf %230, %239 : vector<16x128xf32>
    %c1_136 = arith.constant 1 : index
    %c3_137 = arith.constant 3 : index
    %c0_138 = arith.constant 0 : index
    %c0_139 = arith.constant 0 : index
    %241 = vector.load %arg4[%c1_136, %c3_137, %c0_138, %c0_139] : memref<3x9x16x16xf32, #tpu.memory_space<vmem>>, vector<1x1x16x16xf32>
    %242 = vector.shape_cast %241 : vector<1x1x16x16xf32> to vector<16x16xf32>
    %243 = arith.mulf %242, %242 : vector<16x16xf32>
    %244 = arith.addf %234, %243 : vector<16x16xf32>
    %c0_140 = arith.constant 0 : index
    %c127_141 = arith.constant 127 : index
    %245 = vector.load %arg11[%c0_140, %c127_141] : memref<16x768xf32, #tpu.memory_space<vmem>>, vector<16x128xf32>
    %246 = vector.broadcast %204 : vector<1x128xf32> to vector<16x128xf32>
    %247 = arith.mulf %245, %246 : vector<16x128xf32>
    %cst_142 = arith.constant dense<0.000000e+00> : vector<16x128xf32>
    %248 = tpu.matmul %242, %247, %cst_142 {dimension_numbers = #tpu.dot_dimension_numbers<[1], [0], [0], [1], [0, 0, 1, 1], [], []>} : vector<16x16xf32>, vector<16x128xf32>, vector<16x128xf32> -> vector<16x128xf32>
    %249 = arith.addf %240, %248 : vector<16x128xf32>
    %c1_143 = arith.constant 1 : index
    %c4_144 = arith.constant 4 : index
    %c0_145 = arith.constant 0 : index
    %c0_146 = arith.constant 0 : index
    %250 = vector.load %arg4[%c1_143, %c4_144, %c0_145, %c0_146] : memref<3x9x16x16xf32, #tpu.memory_space<vmem>>, vector<1x1x16x16xf32>
    %251 = vector.shape_cast %250 : vector<1x1x16x16xf32> to vector<16x16xf32>
    %252 = arith.mulf %251, %251 : vector<16x16xf32>
    %253 = arith.addf %244, %252 : vector<16x16xf32>
    %c0_147 = arith.constant 0 : index
    %c128_148 = arith.constant 128 : index
    %254 = vector.load %arg11[%c0_147, %c128_148] : memref<16x768xf32, #tpu.memory_space<vmem>>, vector<16x128xf32>
    %cst_149 = arith.constant dense<0.000000e+00> : vector<16x128xf32>
    %255 = tpu.matmul %251, %254, %cst_149 {dimension_numbers = #tpu.dot_dimension_numbers<[1], [0], [0], [1], [0, 0, 1, 1], [], []>} : vector<16x16xf32>, vector<16x128xf32>, vector<16x128xf32> -> vector<16x128xf32>
    %256 = arith.addf %249, %255 : vector<16x128xf32>
    %c1_150 = arith.constant 1 : index
    %c5_151 = arith.constant 5 : index
    %c0_152 = arith.constant 0 : index
    %c0_153 = arith.constant 0 : index
    %257 = vector.load %arg4[%c1_150, %c5_151, %c0_152, %c0_153] : memref<3x9x16x16xf32, #tpu.memory_space<vmem>>, vector<1x1x16x16xf32>
    %258 = vector.shape_cast %257 : vector<1x1x16x16xf32> to vector<16x16xf32>
    %259 = arith.mulf %258, %258 : vector<16x16xf32>
    %260 = arith.addf %253, %259 : vector<16x16xf32>
    %c0_154 = arith.constant 0 : index
    %c129_155 = arith.constant 129 : index
    %261 = vector.load %arg11[%c0_154, %c129_155] : memref<16x768xf32, #tpu.memory_space<vmem>>, vector<16x128xf32>
    %262 = vector.broadcast %209 : vector<1x128xf32> to vector<16x128xf32>
    %263 = arith.mulf %261, %262 : vector<16x128xf32>
    %cst_156 = arith.constant dense<0.000000e+00> : vector<16x128xf32>
    %264 = tpu.matmul %258, %263, %cst_156 {dimension_numbers = #tpu.dot_dimension_numbers<[1], [0], [0], [1], [0, 0, 1, 1], [], []>} : vector<16x16xf32>, vector<16x128xf32>, vector<16x128xf32> -> vector<16x128xf32>
    %265 = arith.addf %256, %264 : vector<16x128xf32>
    %c1_157 = arith.constant 1 : index
    %c6_158 = arith.constant 6 : index
    %c0_159 = arith.constant 0 : index
    %c0_160 = arith.constant 0 : index
    %266 = vector.load %arg4[%c1_157, %c6_158, %c0_159, %c0_160] : memref<3x9x16x16xf32, #tpu.memory_space<vmem>>, vector<1x1x16x16xf32>
    %267 = vector.shape_cast %266 : vector<1x1x16x16xf32> to vector<16x16xf32>
    %268 = arith.mulf %267, %267 : vector<16x16xf32>
    %269 = arith.addf %260, %268 : vector<16x16xf32>
    %c0_161 = arith.constant 0 : index
    %c135 = arith.constant 135 : index
    %270 = vector.load %arg11[%c0_161, %c135] : memref<16x768xf32, #tpu.memory_space<vmem>>, vector<16x128xf32>
    %271 = arith.mulf %199, %204 : vector<1x128xf32>
    %272 = vector.broadcast %271 : vector<1x128xf32> to vector<16x128xf32>
    %273 = arith.mulf %270, %272 : vector<16x128xf32>
    %cst_162 = arith.constant dense<0.000000e+00> : vector<16x128xf32>
    %274 = tpu.matmul %267, %273, %cst_162 {dimension_numbers = #tpu.dot_dimension_numbers<[1], [0], [0], [1], [0, 0, 1, 1], [], []>} : vector<16x16xf32>, vector<16x128xf32>, vector<16x128xf32> -> vector<16x128xf32>
    %275 = arith.addf %265, %274 : vector<16x128xf32>
    %c1_163 = arith.constant 1 : index
    %c7_164 = arith.constant 7 : index
    %c0_165 = arith.constant 0 : index
    %c0_166 = arith.constant 0 : index
    %276 = vector.load %arg4[%c1_163, %c7_164, %c0_165, %c0_166] : memref<3x9x16x16xf32, #tpu.memory_space<vmem>>, vector<1x1x16x16xf32>
    %277 = vector.shape_cast %276 : vector<1x1x16x16xf32> to vector<16x16xf32>
    %278 = arith.mulf %277, %277 : vector<16x16xf32>
    %279 = arith.addf %269, %278 : vector<16x16xf32>
    %c0_167 = arith.constant 0 : index
    %c136 = arith.constant 136 : index
    %280 = vector.load %arg11[%c0_167, %c136] : memref<16x768xf32, #tpu.memory_space<vmem>>, vector<16x128xf32>
    %281 = vector.broadcast %199 : vector<1x128xf32> to vector<16x128xf32>
    %282 = arith.mulf %280, %281 : vector<16x128xf32>
    %cst_168 = arith.constant dense<0.000000e+00> : vector<16x128xf32>
    %283 = tpu.matmul %277, %282, %cst_168 {dimension_numbers = #tpu.dot_dimension_numbers<[1], [0], [0], [1], [0, 0, 1, 1], [], []>} : vector<16x16xf32>, vector<16x128xf32>, vector<16x128xf32> -> vector<16x128xf32>
    %284 = arith.addf %275, %283 : vector<16x128xf32>
    %c1_169 = arith.constant 1 : index
    %c8_170 = arith.constant 8 : index
    %c0_171 = arith.constant 0 : index
    %c0_172 = arith.constant 0 : index
    %285 = vector.load %arg4[%c1_169, %c8_170, %c0_171, %c0_172] : memref<3x9x16x16xf32, #tpu.memory_space<vmem>>, vector<1x1x16x16xf32>
    %286 = vector.shape_cast %285 : vector<1x1x16x16xf32> to vector<16x16xf32>
    %287 = arith.mulf %286, %286 : vector<16x16xf32>
    %288 = arith.addf %279, %287 : vector<16x16xf32>
    %c0_173 = arith.constant 0 : index
    %c137 = arith.constant 137 : index
    %289 = vector.load %arg11[%c0_173, %c137] : memref<16x768xf32, #tpu.memory_space<vmem>>, vector<16x128xf32>
    %290 = arith.mulf %199, %209 : vector<1x128xf32>
    %291 = vector.broadcast %290 : vector<1x128xf32> to vector<16x128xf32>
    %292 = arith.mulf %289, %291 : vector<16x128xf32>
    %cst_174 = arith.constant dense<0.000000e+00> : vector<16x128xf32>
    %293 = tpu.matmul %286, %292, %cst_174 {dimension_numbers = #tpu.dot_dimension_numbers<[1], [0], [0], [1], [0, 0, 1, 1], [], []>} : vector<16x16xf32>, vector<16x128xf32>, vector<16x128xf32> -> vector<16x128xf32>
    %294 = arith.addf %284, %293 : vector<16x128xf32>
    %295 = arith.mulf %181, %181 : vector<16x2xf32>
    %cst_175 = arith.constant dense<0.000000e+00> : vector<16x2xf32>
    %296 = tpu.matmul %288, %295, %cst_175 {dimension_numbers = #tpu.dot_dimension_numbers<[1], [0], [0], [1], [0, 0, 1, 1], [], []>} : vector<16x16xf32>, vector<16x2xf32>, vector<16x2xf32> -> vector<16x2xf32>
    %cst_176 = arith.constant 9.99999993E-9 : f32
    %297 = vector.broadcast %cst_176 : f32 to vector<16x2xf32>
    %298 = arith.addf %296, %297 : vector<16x2xf32>
    %cst_177 = arith.constant 5.000000e-01 : f32
    %299 = vector.broadcast %cst_177 : f32 to vector<16x2xf32>
    %300 = arith.mulf %298, %299 : vector<16x2xf32>
    %301 = math.rsqrt %300 : vector<16x2xf32>
    %cst_178 = arith.constant dense<0.000000e+00> : vector<16x128xf32>
    %302 = tpu.matmul %301, %172, %cst_178 {dimension_numbers = #tpu.dot_dimension_numbers<[1], [0], [0], [1], [0, 0, 1, 1], [], []>} : vector<16x2xf32>, vector<2x128xf32>, vector<16x128xf32> -> vector<16x128xf32>
    %303 = arith.mulf %294, %302 : vector<16x128xf32>
    %c1_179 = arith.constant 1 : index
    %c0_180 = arith.constant 0 : index
    %c0_181 = arith.constant 0 : index
    %304 = vector.load %arg5[%c1_179, %c0_180, %c0_181] : memref<3x16x1xf32, #tpu.memory_space<vmem>>, vector<1x16x1xf32>
    %305 = vector.shape_cast %304 : vector<1x16x1xf32> to vector<16x1xf32>
    %306 = vector.broadcast %305 : vector<16x1xf32> to vector<16x128xf32>
    %307 = arith.addf %303, %306 : vector<16x128xf32>
    %cst_182 = arith.constant 0.000000e+00 : f32
    %308 = vector.broadcast %cst_182 : f32 to vector<16x128xf32>
    %309 = arith.cmpf oge, %307, %308 : vector<16x128xf32>
    %cst_183 = arith.constant 2.000000e-01 : f32
    %310 = vector.broadcast %cst_183 : f32 to vector<16x128xf32>
    %311 = arith.mulf %310, %307 : vector<16x128xf32>
    %312 = arith.select %309, %307, %311 : vector<16x128xi1>, vector<16x128xf32>
    %c0_184 = arith.constant 0 : index
    %c0_185 = arith.constant 0 : index
    %313 = vector.load %arg9[%c0_184, %c0_185] : memref<128x512xf32, #tpu.memory_space<vmem>>, vector<128x512xf32>
    %cst_186 = arith.constant dense<0.000000e+00> : vector<16x512xf32>
    %314 = tpu.matmul %312, %313, %cst_186 {dimension_numbers = #tpu.dot_dimension_numbers<[1], [0], [0], [1], [0, 0, 1, 1], [], []>} : vector<16x128xf32>, vector<128x512xf32>, vector<16x512xf32> -> vector<16x512xf32>
    %315 = tpu.iota {dimensions = array<i32: 0>} : vector<2x512xi32>
    %316 = tpu.iota {dimensions = array<i32: 1>} : vector<2x512xi32>
    %c256_i32 = arith.constant 256 : i32
    %317 = vector.broadcast %c256_i32 : i32 to vector<2x512xi32>
    %318 = arith.muli %315, %317 : vector<2x512xi32>
    %319 = arith.cmpi sge, %316, %318 : vector<2x512xi32>
    %c256_i32_187 = arith.constant 256 : i32
    %320 = vector.broadcast %c256_i32_187 : i32 to vector<2x512xi32>
    %321 = arith.muli %315, %320 : vector<2x512xi32>
    %c256_i32_188 = arith.constant 256 : i32
    %322 = vector.broadcast %c256_i32_188 : i32 to vector<2x512xi32>
    %323 = arith.addi %321, %322 : vector<2x512xi32>
    %324 = arith.cmpi slt, %316, %323 : vector<2x512xi32>
    %325 = arith.andi %319, %324 : vector<2x512xi1>
    %cst_189 = arith.constant 1.000000e+00 : f32
    %cst_190 = arith.constant 0.000000e+00 : f32
    %326 = vector.broadcast %cst_189 : f32 to vector<2x512xf32>
    %327 = vector.broadcast %cst_190 : f32 to vector<2x512xf32>
    %328 = arith.select %325, %326, %327 : vector<2x512xi1>, vector<2x512xf32>
    %c2_191 = arith.constant 2 : index
    %c0_192 = arith.constant 0 : index
    %c0_193 = arith.constant 0 : index
    %329 = vector.load %arg1[%c2_191, %c0_192, %c0_193] : memref<4x16x32xf32, #tpu.memory_space<vmem>>, vector<1x16x32xf32>
    %330 = vector.shape_cast %329 : vector<1x16x32xf32> to vector<16x32xf32>
    %c2_194 = arith.constant 2 : index
    %c0_195 = arith.constant 0 : index
    %c0_196 = arith.constant 0 : index
    %331 = vector.load %arg0[%c2_194, %c0_195, %c0_196] : memref<4x32x2xf32, #tpu.memory_space<vmem>>, vector<1x32x2xf32>
    %332 = vector.shape_cast %331 : vector<1x32x2xf32> to vector<32x2xf32>
    %cst_197 = arith.constant dense<0.000000e+00> : vector<16x2xf32>
    %333 = tpu.matmul %330, %332, %cst_197 {dimension_numbers = #tpu.dot_dimension_numbers<[1], [0], [0], [1], [0, 0, 1, 1], [], []>} : vector<16x32xf32>, vector<32x2xf32>, vector<16x2xf32> -> vector<16x2xf32>
    %c2_198 = arith.constant 2 : index
    %c0_199 = arith.constant 0 : index
    %c0_200 = arith.constant 0 : index
    %334 = vector.load %arg2[%c2_198, %c0_199, %c0_200] : memref<4x16x1xf32, #tpu.memory_space<vmem>>, vector<1x16x1xf32>
    %335 = vector.shape_cast %334 : vector<1x16x1xf32> to vector<16x1xf32>
    %336 = vector.broadcast %335 : vector<16x1xf32> to vector<16x2xf32>
    %337 = arith.addf %333, %336 : vector<16x2xf32>
    %cst_201 = arith.constant dense<0.000000e+00> : vector<16x512xf32>
    %338 = tpu.matmul %337, %328, %cst_201 {dimension_numbers = #tpu.dot_dimension_numbers<[1], [0], [0], [1], [0, 0, 1, 1], [], []>} : vector<16x2xf32>, vector<2x512xf32>, vector<16x512xf32> -> vector<16x512xf32>
    %339 = arith.mulf %314, %338 : vector<16x512xf32>
    %c0_202 = arith.constant 0 : index
    %c128_203 = arith.constant 128 : index
    %340 = vector.load %arg11[%c0_202, %c128_203] : memref<16x768xf32, #tpu.memory_space<vmem>>, vector<16x512xf32>
    tpu.vector_store %arg11[%c0_202, %c128_203], %339 {strides = array<i32>} : memref<16x768xf32, #tpu.memory_space<vmem>>, vector<16x512xf32>,
    %341 = tpu.iota {dimensions = array<i32: 1>} : vector<1x512xi32>
    %c255_i32 = arith.constant 255 : i32
    %342 = vector.broadcast %c255_i32 : i32 to vector<1x512xi32>
    %343 = arith.andi %341, %342 : vector<1x512xi32>
    %c15_i32_204 = arith.constant 15 : i32
    %344 = vector.broadcast %c15_i32_204 : i32 to vector<1x512xi32>
    %345 = arith.andi %343, %344 : vector<1x512xi32>
    %c16_i32_205 = arith.constant 16 : i32
    %346 = vector.broadcast %c16_i32_205 : i32 to vector<1x512xi32>
    %347 = arith.cmpi sge, %343, %346 : vector<1x512xi32>
    %cst_206 = arith.constant 1.000000e+00 : f32
    %cst_207 = arith.constant 0.000000e+00 : f32
    %348 = vector.broadcast %cst_206 : f32 to vector<1x512xf32>
    %349 = vector.broadcast %cst_207 : f32 to vector<1x512xf32>
    %350 = arith.select %347, %348, %349 : vector<1x512xi1>, vector<1x512xf32>
    %c240_i32 = arith.constant 240 : i32
    %351 = vector.broadcast %c240_i32 : i32 to vector<1x512xi32>
    %352 = arith.cmpi slt, %343, %351 : vector<1x512xi32>
    %cst_208 = arith.constant 1.000000e+00 : f32
    %cst_209 = arith.constant 0.000000e+00 : f32
    %353 = vector.broadcast %cst_208 : f32 to vector<1x512xf32>
    %354 = vector.broadcast %cst_209 : f32 to vector<1x512xf32>
    %355 = arith.select %352, %353, %354 : vector<1x512xi1>, vector<1x512xf32>
    %c1_i32_210 = arith.constant 1 : i32
    %356 = vector.broadcast %c1_i32_210 : i32 to vector<1x512xi32>
    %357 = arith.cmpi sge, %345, %356 : vector<1x512xi32>
    %cst_211 = arith.constant 1.000000e+00 : f32
    %cst_212 = arith.constant 0.000000e+00 : f32
    %358 = vector.broadcast %cst_211 : f32 to vector<1x512xf32>
    %359 = vector.broadcast %cst_212 : f32 to vector<1x512xf32>
    %360 = arith.select %357, %358, %359 : vector<1x512xi1>, vector<1x512xf32>
    %c15_i32_213 = arith.constant 15 : i32
    %361 = vector.broadcast %c15_i32_213 : i32 to vector<1x512xi32>
    %362 = arith.cmpi slt, %345, %361 : vector<1x512xi32>
    %cst_214 = arith.constant 1.000000e+00 : f32
    %cst_215 = arith.constant 0.000000e+00 : f32
    %363 = vector.broadcast %cst_214 : f32 to vector<1x512xf32>
    %364 = vector.broadcast %cst_215 : f32 to vector<1x512xf32>
    %365 = arith.select %362, %363, %364 : vector<1x512xi1>, vector<1x512xf32>
    %cst_216 = arith.constant 0.000000e+00 : f32
    %366 = vector.broadcast %cst_216 : f32 to vector<16x512xf32>
    %cst_217 = arith.constant 0.000000e+00 : f32
    %367 = vector.broadcast %cst_217 : f32 to vector<16x16xf32>
    %c2_218 = arith.constant 2 : index
    %c0_219 = arith.constant 0 : index
    %c0_220 = arith.constant 0 : index
    %c0_221 = arith.constant 0 : index
    %368 = vector.load %arg4[%c2_218, %c0_219, %c0_220, %c0_221] : memref<3x9x16x16xf32, #tpu.memory_space<vmem>>, vector<1x1x16x16xf32>
    %369 = vector.shape_cast %368 : vector<1x1x16x16xf32> to vector<16x16xf32>
    %370 = arith.mulf %369, %369 : vector<16x16xf32>
    %371 = arith.addf %367, %370 : vector<16x16xf32>
    %c0_222 = arith.constant 0 : index
    %c111 = arith.constant 111 : index
    %372 = vector.load %arg11[%c0_222, %c111] : memref<16x768xf32, #tpu.memory_space<vmem>>, vector<16x512xf32>
    %373 = arith.mulf %350, %360 : vector<1x512xf32>
    %374 = vector.broadcast %373 : vector<1x512xf32> to vector<16x512xf32>
    %375 = arith.mulf %372, %374 : vector<16x512xf32>
    %cst_223 = arith.constant dense<0.000000e+00> : vector<16x512xf32>
    %376 = tpu.matmul %369, %375, %cst_223 {dimension_numbers = #tpu.dot_dimension_numbers<[1], [0], [0], [1], [0, 0, 1, 1], [], []>} : vector<16x16xf32>, vector<16x512xf32>, vector<16x512xf32> -> vector<16x512xf32>
    %377 = arith.addf %366, %376 : vector<16x512xf32>
    %c2_224 = arith.constant 2 : index
    %c1_225 = arith.constant 1 : index
    %c0_226 = arith.constant 0 : index
    %c0_227 = arith.constant 0 : index
    %378 = vector.load %arg4[%c2_224, %c1_225, %c0_226, %c0_227] : memref<3x9x16x16xf32, #tpu.memory_space<vmem>>, vector<1x1x16x16xf32>
    %379 = vector.shape_cast %378 : vector<1x1x16x16xf32> to vector<16x16xf32>
    %380 = arith.mulf %379, %379 : vector<16x16xf32>
    %381 = arith.addf %371, %380 : vector<16x16xf32>
    %c0_228 = arith.constant 0 : index
    %c112 = arith.constant 112 : index
    %382 = vector.load %arg11[%c0_228, %c112] : memref<16x768xf32, #tpu.memory_space<vmem>>, vector<16x512xf32>
    %383 = vector.broadcast %350 : vector<1x512xf32> to vector<16x512xf32>
    %384 = arith.mulf %382, %383 : vector<16x512xf32>
    %cst_229 = arith.constant dense<0.000000e+00> : vector<16x512xf32>
    %385 = tpu.matmul %379, %384, %cst_229 {dimension_numbers = #tpu.dot_dimension_numbers<[1], [0], [0], [1], [0, 0, 1, 1], [], []>} : vector<16x16xf32>, vector<16x512xf32>, vector<16x512xf32> -> vector<16x512xf32>
    %386 = arith.addf %377, %385 : vector<16x512xf32>
    %c2_230 = arith.constant 2 : index
    %c2_231 = arith.constant 2 : index
    %c0_232 = arith.constant 0 : index
    %c0_233 = arith.constant 0 : index
    %387 = vector.load %arg4[%c2_230, %c2_231, %c0_232, %c0_233] : memref<3x9x16x16xf32, #tpu.memory_space<vmem>>, vector<1x1x16x16xf32>
    %388 = vector.shape_cast %387 : vector<1x1x16x16xf32> to vector<16x16xf32>
    %389 = arith.mulf %388, %388 : vector<16x16xf32>
    %390 = arith.addf %381, %389 : vector<16x16xf32>
    %c0_234 = arith.constant 0 : index
    %c113 = arith.constant 113 : index
    %391 = vector.load %arg11[%c0_234, %c113] : memref<16x768xf32, #tpu.memory_space<vmem>>, vector<16x512xf32>
    %392 = arith.mulf %350, %365 : vector<1x512xf32>
    %393 = vector.broadcast %392 : vector<1x512xf32> to vector<16x512xf32>
    %394 = arith.mulf %391, %393 : vector<16x512xf32>
    %cst_235 = arith.constant dense<0.000000e+00> : vector<16x512xf32>
    %395 = tpu.matmul %388, %394, %cst_235 {dimension_numbers = #tpu.dot_dimension_numbers<[1], [0], [0], [1], [0, 0, 1, 1], [], []>} : vector<16x16xf32>, vector<16x512xf32>, vector<16x512xf32> -> vector<16x512xf32>
    %396 = arith.addf %386, %395 : vector<16x512xf32>
    %c2_236 = arith.constant 2 : index
    %c3_237 = arith.constant 3 : index
    %c0_238 = arith.constant 0 : index
    %c0_239 = arith.constant 0 : index
    %397 = vector.load %arg4[%c2_236, %c3_237, %c0_238, %c0_239] : memref<3x9x16x16xf32, #tpu.memory_space<vmem>>, vector<1x1x16x16xf32>
    %398 = vector.shape_cast %397 : vector<1x1x16x16xf32> to vector<16x16xf32>
    %399 = arith.mulf %398, %398 : vector<16x16xf32>
    %400 = arith.addf %390, %399 : vector<16x16xf32>
    %c0_240 = arith.constant 0 : index
    %c127_241 = arith.constant 127 : index
    %401 = vector.load %arg11[%c0_240, %c127_241] : memref<16x768xf32, #tpu.memory_space<vmem>>, vector<16x512xf32>
    %402 = vector.broadcast %360 : vector<1x512xf32> to vector<16x512xf32>
    %403 = arith.mulf %401, %402 : vector<16x512xf32>
    %cst_242 = arith.constant dense<0.000000e+00> : vector<16x512xf32>
    %404 = tpu.matmul %398, %403, %cst_242 {dimension_numbers = #tpu.dot_dimension_numbers<[1], [0], [0], [1], [0, 0, 1, 1], [], []>} : vector<16x16xf32>, vector<16x512xf32>, vector<16x512xf32> -> vector<16x512xf32>
    %405 = arith.addf %396, %404 : vector<16x512xf32>
    %c2_243 = arith.constant 2 : index
    %c4_244 = arith.constant 4 : index
    %c0_245 = arith.constant 0 : index
    %c0_246 = arith.constant 0 : index
    %406 = vector.load %arg4[%c2_243, %c4_244, %c0_245, %c0_246] : memref<3x9x16x16xf32, #tpu.memory_space<vmem>>, vector<1x1x16x16xf32>
    %407 = vector.shape_cast %406 : vector<1x1x16x16xf32> to vector<16x16xf32>
    %408 = arith.mulf %407, %407 : vector<16x16xf32>
    %409 = arith.addf %400, %408 : vector<16x16xf32>
    %c0_247 = arith.constant 0 : index
    %c128_248 = arith.constant 128 : index
    %410 = vector.load %arg11[%c0_247, %c128_248] : memref<16x768xf32, #tpu.memory_space<vmem>>, vector<16x512xf32>
    %cst_249 = arith.constant dense<0.000000e+00> : vector<16x512xf32>
    %411 = tpu.matmul %407, %410, %cst_249 {dimension_numbers = #tpu.dot_dimension_numbers<[1], [0], [0], [1], [0, 0, 1, 1], [], []>} : vector<16x16xf32>, vector<16x512xf32>, vector<16x512xf32> -> vector<16x512xf32>
    %412 = arith.addf %405, %411 : vector<16x512xf32>
    %c2_250 = arith.constant 2 : index
    %c5_251 = arith.constant 5 : index
    %c0_252 = arith.constant 0 : index
    %c0_253 = arith.constant 0 : index
    %413 = vector.load %arg4[%c2_250, %c5_251, %c0_252, %c0_253] : memref<3x9x16x16xf32, #tpu.memory_space<vmem>>, vector<1x1x16x16xf32>
    %414 = vector.shape_cast %413 : vector<1x1x16x16xf32> to vector<16x16xf32>
    %415 = arith.mulf %414, %414 : vector<16x16xf32>
    %416 = arith.addf %409, %415 : vector<16x16xf32>
    %c0_254 = arith.constant 0 : index
    %c129_255 = arith.constant 129 : index
    %417 = vector.load %arg11[%c0_254, %c129_255] : memref<16x768xf32, #tpu.memory_space<vmem>>, vector<16x512xf32>
    %418 = vector.broadcast %365 : vector<1x512xf32> to vector<16x512xf32>
    %419 = arith.mulf %417, %418 : vector<16x512xf32>
    %cst_256 = arith.constant dense<0.000000e+00> : vector<16x512xf32>
    %420 = tpu.matmul %414, %419, %cst_256 {dimension_numbers = #tpu.dot_dimension_numbers<[1], [0], [0], [1], [0, 0, 1, 1], [], []>} : vector<16x16xf32>, vector<16x512xf32>, vector<16x512xf32> -> vector<16x512xf32>
    %421 = arith.addf %412, %420 : vector<16x512xf32>
    %c2_257 = arith.constant 2 : index
    %c6_258 = arith.constant 6 : index
    %c0_259 = arith.constant 0 : index
    %c0_260 = arith.constant 0 : index
    %422 = vector.load %arg4[%c2_257, %c6_258, %c0_259, %c0_260] : memref<3x9x16x16xf32, #tpu.memory_space<vmem>>, vector<1x1x16x16xf32>
    %423 = vector.shape_cast %422 : vector<1x1x16x16xf32> to vector<16x16xf32>
    %424 = arith.mulf %423, %423 : vector<16x16xf32>
    %425 = arith.addf %416, %424 : vector<16x16xf32>
    %c0_261 = arith.constant 0 : index
    %c143 = arith.constant 143 : index
    %426 = vector.load %arg11[%c0_261, %c143] : memref<16x768xf32, #tpu.memory_space<vmem>>, vector<16x512xf32>
    %427 = arith.mulf %355, %360 : vector<1x512xf32>
    %428 = vector.broadcast %427 : vector<1x512xf32> to vector<16x512xf32>
    %429 = arith.mulf %426, %428 : vector<16x512xf32>
    %cst_262 = arith.constant dense<0.000000e+00> : vector<16x512xf32>
    %430 = tpu.matmul %423, %429, %cst_262 {dimension_numbers = #tpu.dot_dimension_numbers<[1], [0], [0], [1], [0, 0, 1, 1], [], []>} : vector<16x16xf32>, vector<16x512xf32>, vector<16x512xf32> -> vector<16x512xf32>
    %431 = arith.addf %421, %430 : vector<16x512xf32>
    %c2_263 = arith.constant 2 : index
    %c7_264 = arith.constant 7 : index
    %c0_265 = arith.constant 0 : index
    %c0_266 = arith.constant 0 : index
    %432 = vector.load %arg4[%c2_263, %c7_264, %c0_265, %c0_266] : memref<3x9x16x16xf32, #tpu.memory_space<vmem>>, vector<1x1x16x16xf32>
    %433 = vector.shape_cast %432 : vector<1x1x16x16xf32> to vector<16x16xf32>
    %434 = arith.mulf %433, %433 : vector<16x16xf32>
    %435 = arith.addf %425, %434 : vector<16x16xf32>
    %c0_267 = arith.constant 0 : index
    %c144 = arith.constant 144 : index
    %436 = vector.load %arg11[%c0_267, %c144] : memref<16x768xf32, #tpu.memory_space<vmem>>, vector<16x512xf32>
    %437 = vector.broadcast %355 : vector<1x512xf32> to vector<16x512xf32>
    %438 = arith.mulf %436, %437 : vector<16x512xf32>
    %cst_268 = arith.constant dense<0.000000e+00> : vector<16x512xf32>
    %439 = tpu.matmul %433, %438, %cst_268 {dimension_numbers = #tpu.dot_dimension_numbers<[1], [0], [0], [1], [0, 0, 1, 1], [], []>} : vector<16x16xf32>, vector<16x512xf32>, vector<16x512xf32> -> vector<16x512xf32>
    %440 = arith.addf %431, %439 : vector<16x512xf32>
    %c2_269 = arith.constant 2 : index
    %c8_270 = arith.constant 8 : index
    %c0_271 = arith.constant 0 : index
    %c0_272 = arith.constant 0 : index
    %441 = vector.load %arg4[%c2_269, %c8_270, %c0_271, %c0_272] : memref<3x9x16x16xf32, #tpu.memory_space<vmem>>, vector<1x1x16x16xf32>
    %442 = vector.shape_cast %441 : vector<1x1x16x16xf32> to vector<16x16xf32>
    %443 = arith.mulf %442, %442 : vector<16x16xf32>
    %444 = arith.addf %435, %443 : vector<16x16xf32>
    %c0_273 = arith.constant 0 : index
    %c145 = arith.constant 145 : index
    %445 = vector.load %arg11[%c0_273, %c145] : memref<16x768xf32, #tpu.memory_space<vmem>>, vector<16x512xf32>
    %446 = arith.mulf %355, %365 : vector<1x512xf32>
    %447 = vector.broadcast %446 : vector<1x512xf32> to vector<16x512xf32>
    %448 = arith.mulf %445, %447 : vector<16x512xf32>
    %cst_274 = arith.constant dense<0.000000e+00> : vector<16x512xf32>
    %449 = tpu.matmul %442, %448, %cst_274 {dimension_numbers = #tpu.dot_dimension_numbers<[1], [0], [0], [1], [0, 0, 1, 1], [], []>} : vector<16x16xf32>, vector<16x512xf32>, vector<16x512xf32> -> vector<16x512xf32>
    %450 = arith.addf %440, %449 : vector<16x512xf32>
    %451 = arith.mulf %337, %337 : vector<16x2xf32>
    %cst_275 = arith.constant dense<0.000000e+00> : vector<16x2xf32>
    %452 = tpu.matmul %444, %451, %cst_275 {dimension_numbers = #tpu.dot_dimension_numbers<[1], [0], [0], [1], [0, 0, 1, 1], [], []>} : vector<16x16xf32>, vector<16x2xf32>, vector<16x2xf32> -> vector<16x2xf32>
    %cst_276 = arith.constant 9.99999993E-9 : f32
    %453 = vector.broadcast %cst_276 : f32 to vector<16x2xf32>
    %454 = arith.addf %452, %453 : vector<16x2xf32>
    %cst_277 = arith.constant 5.000000e-01 : f32
    %455 = vector.broadcast %cst_277 : f32 to vector<16x2xf32>
    %456 = arith.mulf %454, %455 : vector<16x2xf32>
    %457 = math.rsqrt %456 : vector<16x2xf32>
    %cst_278 = arith.constant dense<0.000000e+00> : vector<16x512xf32>
    %458 = tpu.matmul %457, %328, %cst_278 {dimension_numbers = #tpu.dot_dimension_numbers<[1], [0], [0], [1], [0, 0, 1, 1], [], []>} : vector<16x2xf32>, vector<2x512xf32>, vector<16x512xf32> -> vector<16x512xf32>
    %459 = arith.mulf %450, %458 : vector<16x512xf32>
    %c2_279 = arith.constant 2 : index
    %c0_280 = arith.constant 0 : index
    %c0_281 = arith.constant 0 : index
    %460 = vector.load %arg5[%c2_279, %c0_280, %c0_281] : memref<3x16x1xf32, #tpu.memory_space<vmem>>, vector<1x16x1xf32>
    %461 = vector.shape_cast %460 : vector<1x16x1xf32> to vector<16x1xf32>
    %462 = vector.broadcast %461 : vector<16x1xf32> to vector<16x512xf32>
    %463 = arith.addf %459, %462 : vector<16x512xf32>
    %cst_282 = arith.constant 0.000000e+00 : f32
    %464 = vector.broadcast %cst_282 : f32 to vector<16x512xf32>
    %465 = arith.cmpf oge, %463, %464 : vector<16x512xf32>
    %cst_283 = arith.constant 2.000000e-01 : f32
    %466 = vector.broadcast %cst_283 : f32 to vector<16x512xf32>
    %467 = arith.mulf %466, %463 : vector<16x512xf32>
    %468 = arith.select %465, %463, %467 : vector<16x512xi1>, vector<16x512xf32>
    %469 = tpu.iota {dimensions = array<i32: 0>} : vector<2x512xi32>
    %470 = tpu.iota {dimensions = array<i32: 1>} : vector<2x512xi32>
    %c256_i32_284 = arith.constant 256 : i32
    %471 = vector.broadcast %c256_i32_284 : i32 to vector<2x512xi32>
    %472 = arith.muli %469, %471 : vector<2x512xi32>
    %473 = arith.cmpi sge, %470, %472 : vector<2x512xi32>
    %c256_i32_285 = arith.constant 256 : i32
    %474 = vector.broadcast %c256_i32_285 : i32 to vector<2x512xi32>
    %475 = arith.muli %469, %474 : vector<2x512xi32>
    %c256_i32_286 = arith.constant 256 : i32
    %476 = vector.broadcast %c256_i32_286 : i32 to vector<2x512xi32>
    %477 = arith.addi %475, %476 : vector<2x512xi32>
    %478 = arith.cmpi slt, %470, %477 : vector<2x512xi32>
    %479 = arith.andi %473, %478 : vector<2x512xi1>
    %cst_287 = arith.constant 1.000000e+00 : f32
    %cst_288 = arith.constant 0.000000e+00 : f32
    %480 = vector.broadcast %cst_287 : f32 to vector<2x512xf32>
    %481 = vector.broadcast %cst_288 : f32 to vector<2x512xf32>
    %482 = arith.select %479, %480, %481 : vector<2x512xi1>, vector<2x512xf32>
    %c3_289 = arith.constant 3 : index
    %c0_290 = arith.constant 0 : index
    %c0_291 = arith.constant 0 : index
    %483 = vector.load %arg1[%c3_289, %c0_290, %c0_291] : memref<4x16x32xf32, #tpu.memory_space<vmem>>, vector<1x16x32xf32>
    %484 = vector.shape_cast %483 : vector<1x16x32xf32> to vector<16x32xf32>
    %c3_292 = arith.constant 3 : index
    %c0_293 = arith.constant 0 : index
    %c0_294 = arith.constant 0 : index
    %485 = vector.load %arg0[%c3_292, %c0_293, %c0_294] : memref<4x32x2xf32, #tpu.memory_space<vmem>>, vector<1x32x2xf32>
    %486 = vector.shape_cast %485 : vector<1x32x2xf32> to vector<32x2xf32>
    %cst_295 = arith.constant dense<0.000000e+00> : vector<16x2xf32>
    %487 = tpu.matmul %484, %486, %cst_295 {dimension_numbers = #tpu.dot_dimension_numbers<[1], [0], [0], [1], [0, 0, 1, 1], [], []>} : vector<16x32xf32>, vector<32x2xf32>, vector<16x2xf32> -> vector<16x2xf32>
    %c3_296 = arith.constant 3 : index
    %c0_297 = arith.constant 0 : index
    %c0_298 = arith.constant 0 : index
    %488 = vector.load %arg2[%c3_296, %c0_297, %c0_298] : memref<4x16x1xf32, #tpu.memory_space<vmem>>, vector<1x16x1xf32>
    %489 = vector.shape_cast %488 : vector<1x16x1xf32> to vector<16x1xf32>
    %490 = vector.broadcast %489 : vector<16x1xf32> to vector<16x2xf32>
    %491 = arith.addf %487, %490 : vector<16x2xf32>
    %cst_299 = arith.constant dense<0.000000e+00> : vector<16x512xf32>
    %492 = tpu.matmul %491, %482, %cst_299 {dimension_numbers = #tpu.dot_dimension_numbers<[1], [0], [0], [1], [0, 0, 1, 1], [], []>} : vector<16x2xf32>, vector<2x512xf32>, vector<16x512xf32> -> vector<16x512xf32>
    %493 = arith.mulf %468, %492 : vector<16x512xf32>
    %c0_300 = arith.constant 0 : index
    %c0_301 = arith.constant 0 : index
    %494 = vector.load %arg6[%c0_300, %c0_301] : memref<3x16xf32, #tpu.memory_space<vmem>>, vector<3x16xf32>
    %cst_302 = arith.constant dense<0.000000e+00> : vector<3x512xf32>
    %495 = tpu.matmul %494, %493, %cst_302 {dimension_numbers = #tpu.dot_dimension_numbers<[1], [0], [0], [1], [0, 0, 1, 1], [], []>} : vector<3x16xf32>, vector<16x512xf32>, vector<3x512xf32> -> vector<3x512xf32>
    %c0_303 = arith.constant 0 : index
    %c0_304 = arith.constant 0 : index
    %496 = vector.load %arg7[%c0_303, %c0_304] : memref<3x1xf32, #tpu.memory_space<vmem>>, vector<3x1xf32>
    %497 = vector.broadcast %496 : vector<3x1xf32> to vector<3x512xf32>
    %498 = arith.addf %495, %497 : vector<3x512xf32>
    %c0_305 = arith.constant 0 : index
    %c0_306 = arith.constant 0 : index
    %499 = vector.load %arg10[%c0_305, %c0_306] : memref<3x512xf32, #tpu.memory_space<vmem>>, vector<3x512xf32>
    tpu.vector_store %arg10[%c0_305, %c0_306], %498 {strides = array<i32>} : memref<3x512xf32, #tpu.memory_space<vmem>>, vector<3x512xf32>,
    return
  }
}

</mosaic_0001>

<bundles_post_ra>
// kernel: tile.7
= control target key start
LH: loop header
LB: loop body
LE: loop exit
PB: predicated region body
PF: predicated region fallthrough
CT: control target
= control target key end

     0   :  { %vm68_vm0 = vcmask 1047556   ;;  %vm70_vm1 = vcmask 130048   ;;  %vm89_vm2 = vcmask 261248   ;;  %s195_s0 = inlined_call_operand.vmem [shape: f32[16,2,16], index: 0, kind: input, shape index: {}]   ;;  %s196_s1 = inlined_call_operand.vmem [shape: f32[16,32], index: 1, kind: output, shape index: {}]  }
   0x1   :  { %v110_v0 = vld [vmem:[%s195_s0 + $0xe] sm:$0x3]  ;;  %v111_v1 = vld [vmem:[%s195_s0 + $0xc] sm:$0x3]  ;;  %v112_v2 = vld [vmem:[%s195_s0 + $0xa] sm:$0x3] }
   0x2   :  { %39 = vst [vmem:[#allocation0 + $0x38] sm:$0x3] %v110_v0  ;;  %v113_v3 = vld [vmem:[%s195_s0 + $0x8] sm:$0x3]  ;;  %v114_v4 = vld [vmem:[%s195_s0 + $0x6] sm:$0x3] }
   0x3   :  { %43 = vst [vmem:[#allocation0 + $0x30] sm:$0x3] %v111_v1  ;;  %v115_v5 = vld [vmem:[%s195_s0 + $0x4] sm:$0x3]  ;;  %v116_v6 = vld [vmem:[%s195_s0 + $0x2] sm:$0x3] }
   0x4   :  { %47 = vst [vmem:[#allocation0 + $0x28] sm:$0x3] %v112_v2  ;;  %v64_v7 = vld [vmem:[%s195_s0] sm:$0x3]  ;;  %v102_v8 = vld [vmem:[%s195_s0 + $0x1e] sm:$0x3] }
   0x5   :  { %51 = vst [vmem:[#allocation0 + $0x20] sm:$0x3] %v113_v3  ;;  %v103_v9 = vld [vmem:[%s195_s0 + $0x1c] sm:$0x3]  ;;  %v104_v10 = vld [vmem:[%s195_s0 + $0x1a] sm:$0x3] }
   0x6   :  { %55 = vst [vmem:[#allocation0 + $0x18] sm:$0x3] %v114_v4  ;;  %v105_v11 = vld [vmem:[%s195_s0 + $0x18] sm:$0x3]  ;;  %v106_v12 = vld [vmem:[%s195_s0 + $0x16] sm:$0x3] }
   0x7   :  { %59 = vst [vmem:[#allocation0 + $0x10] sm:$0x3] %v115_v5  ;;  %v107_v13 = vld [vmem:[%s195_s0 + $0x14] sm:$0x3]  ;;  %v108_v14 = vld [vmem:[%s195_s0 + $0x12] sm:$0x3] }
   0x8   :  { %63 = vst [vmem:[#allocation0 + $0x8] sm:$0x3] %v116_v6  ;;  %v109_v15 = vld [vmem:[%s195_s0 + $0x10] sm:$0x3]  ;;  %s120_s0 = smov 16  }
   0x9   :  { %65 = vst [vmem:[#allocation0] sm:$0x3] %v64_v7 }
   0xa   :  { %7 = vst [vmem:[#allocation0 + $0x78] sm:$0x3] %v102_v8 }
   0xb   :  { %11 = vst [vmem:[#allocation0 + $0x70] sm:$0x3] %v103_v9 }
   0xc   :  { %15 = vst [vmem:[#allocation0 + $0x68] sm:$0x3] %v104_v10  ;;  %v84_v16 = vld [vmem:[#allocation0 + $0x1] ss:$8 sm:$0xf0]  }
   0xd   :  { %19 = vst [vmem:[#allocation0 + $0x60] sm:$0x3] %v105_v11  ;;  %v67_v23 = vld [vmem:[#allocation0] ss:$8 sm:$0xf0]  }
   0xe   :  { %23 = vst [vmem:[#allocation0 + $0x58] sm:$0x3] %v106_v12 }
   0xf   :  { %27 = vst [vmem:[#allocation0 + $0x50] sm:$0x3] %v107_v13 }
  0x10   :  { %v82_v17 = vld [vmem:[#allocation0 + $0x1] ss:$8 sm:$0xf]   ;;  %31 = vst [vmem:[#allocation0 + $0x48] sm:$0x3] %v108_v14 }
  0x11   :  { %v86_v18 = vsel %vm68_vm0, %v84_v16, %v82_v17  ;;  %35 = vst [vmem:[#allocation0 + $0x40] sm:$0x3] %v109_v15  ;;  %v66_v22 = vld [vmem:[#allocation0] ss:$8 sm:$0xf]  }
  0x12   :  { %87 = vrot.lane.b32.xlu0 %v86_v18, %s120_s0  ;;  %v69_v24 = vsel %vm68_vm0, %v67_v23, %v66_v22 }
  0x13   :  { %71 = vst.msk [vmem:[%s196_s1] sm:$0xff] %vm70_vm1, %v69_v24  }
  0x14   :  { %v94_v19 = vld [vmem:[#allocation0 + $0x41] ss:$8 sm:$0xf0]   ;;  %v75_v26 = vld [vmem:[#allocation0 + $0x40] ss:$8 sm:$0xf0]  }
  0x18   :  { %v92_v20 = vld [vmem:[#allocation0 + $0x41] ss:$8 sm:$0xf]   ;;  %v73_v25 = vld [vmem:[#allocation0 + $0x40] ss:$8 sm:$0xf]  }
  0x19   :  { %v96_v21 = vsel %vm68_vm0, %v94_v19, %v92_v20  ;;  %v77_v27 = vsel %vm68_vm0, %v75_v26, %v73_v25 }
  0x1a   :  { %97 = vrot.lane.b32.xlu0 %v96_v21, %s120_s0  ;;  %117 = vst.msk [vmem:[%s196_s1 + $0x8] sm:$0xff] %vm70_vm1, %v77_v27  }
  0x84   :  { %v88_v28 = vpop.permute.xlu0 %87  }
  0x85   :  { %90 = vst.msk [vmem:[%s196_s1] sm:$0xff] %vm89_vm2, %v88_v28  }
  0x8c   :  { %v98_v29 = vpop.permute.xlu0 %97  }
  0x8d   :  { %118 = vst.msk [vmem:[%s196_s1 + $0x8] sm:$0xff] %vm89_vm2, %v98_v29  }

// kernel: stylegan_xl_forward.1
= control target key start
LH: loop header
LB: loop body
LE: loop exit
PB: predicated region body
PF: predicated region fallthrough
CT: control target
= control target key end

     0   :  { %v4729_v2 = vmov 0   ;;  %vm77_vm0 = vcmask 261120   ;;  %v49_v9 = vlaneseq  ;;  %v4730_v14 = vmov 0.0   ;;  %s4731_s29 = smov 1   ;;  %s4732_s30 = smov 125   ;;  %s6767_s0 = inlined_call_operand.vmem [shape: f32[4,32,2], index: 0, kind: input, shape index: {}]   ;;  %s6768_s2 = inlined_call_operand.vmem [shape: f32[4,16,1], index: 2, kind: input, shape index: {}]   ;;  %s6769_s1 = inlined_call_operand.vmem [shape: f32[4,16,32], index: 1, kind: input, shape index: {}]   ;;  %s6770_s3 = inlined_call_operand.vmem [shape: f32[16,32], index: 3, kind: input, shape index: {}]   ;;  %s6771_s4 = inlined_call_operand.vmem [shape: f32[3,9,16,16], index: 4, kind: input, shape index: {}]   ;;  %s6772_s5 = inlined_call_operand.vmem [shape: f32[3,16,1], index: 5, kind: input, shape index: {}]   ;;  %s6773_s8 = inlined_call_operand.vmem [shape: f32[32,128], index: 8, kind: input, shape index: {}]   ;;  %s6774_s9 = inlined_call_operand.vmem [shape: f32[128,512], index: 9, kind: input, shape index: {}]   ;;  %s6775_s7 = inlined_call_operand.vmem [shape: f32[3,1], index: 7, kind: input, shape index: {}]   ;;  %s6776_s6 = inlined_call_operand.vmem [shape: f32[3,16], index: 6, kind: input, shape index: {}]   ;;  %s6777_s10 = inlined_call_operand.vmem [shape: f32[3,512], index: 10, kind: output, shape index: {}]  }
   0x1   :  { %v64_v0 = vld [vmem:[%s6767_s0 + $0x18] sm:$0xff]  ;;  %v63_v1 = vld [vmem:[%s6767_s0 + $0x10] sm:$0xff]  ;;  %4339 = vset.pattern.permute.xlu0 %v4729_v2  ;;  %4400 = vset.pattern.permute.xlu1 %v4729_v2  ;;  %v65_v3 = vld [vmem:[%s6768_s2] sm:$0xff]  ;;  %vm114_vm4 = vcmask 1041408   ;;  %35 = vst [vmem:[#allocation2] sm:$0xff] %v4730_v14  ;;  %s4733_s11 = smov 123  }
   0x2   :  { %96 = vmatpush.msra.mxu0 %v64_v0  ;;  %4401 = vset.pattern.permute.xlu2 %v4729_v2  ;;  %v62_v4 = vld [vmem:[%s6767_s0 + $0x8] sm:$0xff]  ;;  %v61_v5 = vld [vmem:[%s6767_s0] sm:$0xff]  ;;  %v4833_v10 = vshrl.u32 %v49_v9, 7  ;;  %v4836_v12 = vand.u32 127, %v49_v9  ;;  %36 = vst [vmem:[#allocation2 + $0x8] sm:$0xff] %v4730_v14  ;;  %s4734_s12 = smov 5  }
   0x3   :  { %69 = vperm.xlu0 %4339, %v65_v3   ;;  %v59_v6 = vld [vmem:[%s6769_s1] sm:$0xff]  ;;  %v66_v7 = vld [vmem:[%s6768_s2 + $0x8] sm:$0xff]  ;;  %42 = vst [vmem:[#allocation2 + $0x38] sm:$0xff] %v4730_v14  ;;  %s4735_s13 = smov 124   ;;  %vm107_vm9 = vcmask 15360   ;;  %s4736_s14 = smov 3  }
   0x4   :  { %97 = vmatpush.msra.mxu0 %v63_v1  ;;  %v60_v8 = vld [vmem:[%s6769_s1 + $0x8] sm:$0xff]  ;;  %v53_v11 = vmul.u32 16, %v4833_v10  ;;  %v145_v16 = vand.u32 15, %v4836_v12  ;;  %v47_v32 = vld [vmem:[%s6770_s3] sm:$0xff]  ;;  %s4738_s19 = smov 4   ;;  %vm248_vm10 = vcmask 39936  }
   0x5   :  { %v48_v36 = vld [vmem:[%s6770_s3 + $0x8] sm:$0xff]  ;;  %s4737_s3 = smov 127   ;;  %vm206_vm11 = vcmask 130048   ;;  %vm310_vm12 = vcmask 23552   ;;  %vm201_vm13 = vcmask 31744   ;;  %vm373_vm14 = vcmask 7168  }
   0x6   :  { %98 = vmatpush.msra.mxu0 %v62_v4  ;;  %v55_v13 = vadd.s32 16, %v53_v11  ;;  %vm54_vm1 = vcmp.ge.s32.totalorder %v4836_v12, %v53_v11  ;;  %v146_v17 = vand.u32 3, %v145_v16  ;;  %vm147_vm5 = vcmp.ge.s32.totalorder %v145_v16, 4  ;;  %v4914_v11 = vld [vmem:[%s6771_s4 + $0x20] sm:$0xff]  ;;  %s4743_s15 = smov 7   ;;  %s4744_s18 = smov 8  }
   0x7   :  { %v148_v18 = vsel %vm147_vm5, 1.0, %v4730_v14  ;;  %vm149_vm8 = vcmp.lt.s32.totalorder %v145_v16, 12  ;;  %v285_v16 = vmul.f32 %v4914_v11, %v4914_v11  ;;  %s4745_s22 = smov 111   ;;  %s4746_s23 = smov 113  }
   0x8   :  { %99 = vmatpush.msra.mxu0 %v61_v5  ;;  %vm56_vm2 = vcmp.lt.s32.totalorder %v4836_v12, %v55_v13  ;;  %vm153_vm6 = vcmp.lt.s32.totalorder %v146_v17, 3  ;;  %vm151_vm7 = vcmp.ge.s32.totalorder %v146_v17, 1  ;;  %v150_v23 = vsel %vm149_vm8, 1.0, %v4730_v14  ;;  %v4921_v17 = vld [vmem:[%s6771_s4 + $0x30] sm:$0xff]  ;;  %s4749_s24 = smov 17   ;;  %s4750_s25 = smov 15  }
   0x9   :  { %4060 = vmatmul.msk.f32.vlgmr.msra.gmra.mxu0 %vm77_vm0, %v59_v6  ;;  %vm57_vm3 = vmand %vm54_vm1, %vm56_vm2  ;;  %v154_v19 = vsel %vm153_vm6, 1.0, %v4730_v14  ;;  %v152_v20 = vsel %vm151_vm7, 1.0, %v4730_v14  ;;  %v4900_v6 = vld [vmem:[%s6771_s4] sm:$0xff] }
   0xa   :  { %v4841_v15 = vsel %vm57_vm3, 1.0, %v4730_v14  ;;  %v289_v21 = vmul.f32 %v154_v19, %v148_v18  ;;  %455 = vrot.lane.b32.xlu1 %v154_v19, %s4731_s29  ;;  %v165_v22 = vmul.f32 %v152_v20, %v148_v18  ;;  %v611_v24 = vmul.f32 %v154_v19, %v150_v23  ;;  %v4931_v19 = vld [vmem:[%s6771_s4 + $0x18] sm:$0xff] }
   0xb   :  { %74 = vperm.xlu0 %4339, %v66_v7   ;;  %4062 = vmatpush.msk.msra.mxu1 %vm114_vm4, %v4841_v15  ;;  %v506_v25 = vmul.f32 %v152_v20, %v150_v23  ;;  %v4905_v7 = vld [vmem:[%s6771_s4 + $0x10] sm:$0xff] }
   0xc   :  { %167 = vrot.lane.b32.xlu2 %v165_v22, %s4733_s11  ;;  %v177_v9 = vmul.f32 %v4905_v7, %v4905_v7  ;;  %v349_v22 = vmul.f32 %v4921_v17, %v4921_v17 }
  0x11   :  { %4061 = vmatmul.msk.f32.gmra.mxu0 %vm77_vm0, %v60_v8  ;;  %v157_v8 = vmul.f32 %v4900_v6, %v4900_v6 }
  0x13   :  { %291 = vrot.lane.b32.xlu0 %v289_v21, %s4732_s30  ;;  %v179_v13 = vadd.f32 %v177_v9, %v157_v8 }
  0x14   :  { %182 = vrot.lane.b32.xlu2 %v148_v18, %s4735_s13  ;;  %v4926_v18 = vld [vmem:[%s6771_s4 + $0x8] sm:$0xff] }
  0x15   :  { %v287_v21 = vadd.f32 %v285_v16, %v179_v13 }
  0x1b   :  { %613 = vrot.lane.b32.xlu0 %v611_v24, %s4734_s12  ;;  %v178_v24 = vmul.f32 %v4931_v19, %v4931_v19 }
  0x1c   :  { %508 = vrot.lane.b32.xlu2 %v506_v25, %s4736_s14  ;;  %v4944_v25 = vld [vmem:[%s6771_s4 + $0x40] sm:$0xff] }
  0x66   :  { %v168_v35 = vpop.permute.xlu2 %167 }
  0x67   :  { %v170_v47 = vmul.f32 0.0, %v168_v35 }
  0x6e   :  { %v183_v39 = vpop.permute.xlu2 %182 }
  0x6f   :  { %v185_v42 = vmul.f32 0.0, %v183_v39 }
  0x71   :  { %v4345_v57 = vpack.i.bf16 %v185_v42, %v150_v23  ;;  %v158_v23 = vmul.f32 %v4926_v18, %v4926_v18 }
  0x75   :  { %v70_v26 = vpop.permute.xlu0 %69 }
  0x76   :  { %v509_v62 = vpop.permute.xlu2 %508 }
  0x7c   :  { %v456_v41 = vpop.permute.xlu1 %455 }
  0x7d   :  { %v75_v29 = vpop.permute.xlu0 %74 }
  0x85   :  { %v292_v52 = vpop.permute.xlu0 %291 }
  0x86   :  { %v101_v27 = vpop.f32.mrf.mxu0  ;;  %v294_v54 = vmul.f32 0.0, %v292_v52 }
  0x87   :  { %v4859_v28 = vadd.f32 %v101_v27, %v70_v26  ;;  %v4949_v26 = vld [vmem:[%s6771_s4 + $0x28] sm:$0xff]  ;;  %v351_v27 = vadd.f32 %v349_v22, %v287_v21  ;;  %v5021_v22 = vld [vmem:[%s6771_s4 + $0x78] sm:$0xff] }
  0x89   :  { %4063 = vmatmul.msk.f32.vlgmr.msra.gmra.mxu1 %vm107_vm9, %v4859_v28 }
  0x8e   :  { %v104_v30 = vpop.f32.mrf.mxu0 }
  0x8f   :  { %v4863_v31 = vadd.f32 %v104_v30, %v75_v29  ;;  %v412_v29 = vmul.f32 %v4944_v25, %v4944_v25  ;;  %v180_v30 = vadd.f32 %v178_v24, %v158_v23 }
  0x91   :  { %4064 = vmatmul.msk.f32.gmra.mxu1 %vm107_vm9, %v4863_v31 }
 0x106   :  { %v135_v33 = vpop.f32.mrf.mxu1 }
 0x107   :  { %v141_v34 = vmul.f32 %v135_v33, %v47_v32  ;;  %v286_v32 = vmul.f32 %v4949_v26, %v4949_v26  ;;  %v4958_v33 = vld [vmem:[%s6771_s4 + $0x38] sm:$0xff] }
 0x109   :  { %143 = vst.msk [vmem:[#allocation2 + $0x8] sm:$0xff] %vm77_vm0, %v141_v34 }
 0x10e   :  { %v138_v37 = vpop.f32.mrf.mxu1 }
 0x10f   :  { %v142_v38 = vmul.f32 %v138_v37, %v48_v36  ;;  %v4083_v37 = vld [vmem:[%s6771_s4 + $0x50] sm:$0xff] }
 0x110   :  { %v4875_v40 = vld [vmem:[#allocation2 + $0x8] sm:$0xff] }
 0x111   :  { %144 = vst.msk [vmem:[#allocation2 + $0x38] sm:$0xff] %vm77_vm0, %v142_v38  ;;  %v458_v44 = vmul.f32 %v456_v41, %v4875_v40  ;;  %v186_v56 = vmul.f32 %v183_v39, %v4875_v40  ;;  %v171_v58 = vmul.f32 %v168_v35, %v4875_v40  ;;  %v295_v60 = vmul.f32 %v292_v52, %v4875_v40 }
 0x112   :  { %v511_v0 = vmul.f32 %v509_v62, %v4875_v40  ;;  %v414_v38 = vadd.f32 %v412_v29, %v351_v27 }
 0x113   :  { %v4360_v59 = vpack.i.bf16 %v171_v58, %v170_v47  ;;  %v4365_v61 = vpack.i.bf16 %v295_v60, %v294_v54  ;;  %v4084_v60 = vld [vmem:[%s6771_s4 + $0x58] sm:$0xff] }
 0x118   :  { %v4877_v43 = vld [vmem:[#allocation2 + $0x38] sm:$0xff] }
 0x119   :  { %v459_v45 = vmul.f32 %v456_v41, %v4877_v43  ;;  %v188_v46 = vmul.f32 %v183_v39, %v4877_v43  ;;  %v173_v48 = vmul.f32 %v168_v35, %v4877_v43  ;;  %v297_v53 = vmul.f32 %v292_v52, %v4877_v43 }
 0x11a   :  { %v512_v63 = vmul.f32 %v509_v62, %v4877_v43  ;;  %v450_v39 = vmul.f32 %v4083_v37, %v4083_v37  ;;  %v288_v41 = vadd.f32 %v286_v32, %v180_v30 }
 0x11b   :  { %v4340_v49 = vpack.i.bf16 %v458_v44, %v459_v45  ;;  %v4355_v50 = vpack.i.bf16 %v185_v42, %v188_v46  ;;  %v4350_v51 = vpack.i.bf16 %v173_v48, %v170_v47  ;;  %v4370_v55 = vpack.i.bf16 %v297_v53, %v294_v54  ;;  %v4970_v45 = vld [vmem:[%s6771_s4 + $0x60] sm:$0xff]  ;;  %v4975_v46 = vld [vmem:[%s6771_s4 + $0x48] sm:$0xff]  ;;  %v4982_v48 = vld [vmem:[%s6771_s4 + $0x70] sm:$0xff] }
 0x11c   :  { %v4385_v1 = vpack.i.bf16 %v511_v0, %v512_v63  ;;  %v350_v42 = vmul.f32 %v4958_v33, %v4958_v33  ;;  %v658_v47 = vmul.f32 %v4863_v31, %v4863_v31  ;;  %v413_v52 = vmul.f32 %v4975_v46, %v4975_v46  ;;  %v5001_v0 = vld [vmem:[%s6771_s4 + $0x68] sm:$0xff] }
 0x11d   :  { %4341 = vrot.lane.b32.xlu1 %v4340_v49, %s4737_s3  ;;  %4356 = vrot.lane.b32.xlu0 %v4355_v50, %s4738_s19  ;;  %v452_v49 = vadd.f32 %v450_v39, %v414_v38  ;;  %v502_v50 = vmul.f32 %v4970_v45, %v4970_v45  ;;  %v657_v53 = vmul.f32 %v4859_v28, %v4859_v28 }
 0x11e   :  { %4351 = vrot.lane.b32.xlu2 %v4350_v51, %s4734_s12  ;;  %v352_v51 = vadd.f32 %v350_v42, %v288_v41  ;;  %v555_v31 = vmul.f32 %v4982_v48, %v4982_v48  ;;  %v451_v63 = vmul.f32 %v4084_v60, %v4084_v60  ;;  %v556_v39 = vmul.f32 %v5021_v22, %v5021_v22 }
 0x120   :  { %v415_v62 = vadd.f32 %v413_v52, %v352_v51 }
 0x122   :  { %v453_v9 = vadd.f32 %v451_v63, %v415_v62 }
 0x125   :  { %354 = vrot.lane.b32.xlu1 %v152_v20, %s4737_s3  ;;  %4371 = vrot.lane.b32.xlu0 %v4370_v55, %s4736_s14  ;;  %v4933_v20 = vpop.permute.xlu0 %613 }
 0x126   :  { %195 = vrot.lane.b32.xlu2 %v186_v56, %s4738_s19  ;;  %v617_v16 = vmul.f32 %v4933_v20, %v4877_v43  ;;  %v616_v30 = vmul.f32 %v4933_v20, %v4875_v40 }
 0x128   :  { %v4390_v41 = vpack.i.bf16 %v616_v30, %v617_v16 }
 0x12d   :  { %4346 = vrot.lane.b32.xlu1 %v4345_v57, %s4738_s19 }
 0x135   :  { %4361 = vrot.lane.b32.xlu1 %v4360_v59, %s4734_s12  ;;  %s4741_s12 = smov 121  }
 0x13d   :  { %4366 = vrot.lane.b32.xlu1 %v4365_v61, %s4736_s14  ;;  %v504_v61 = vadd.f32 %v502_v50, %v452_v49  ;;  %s4742_s14 = smov 120  }
 0x13f   :  { %v557_v8 = vadd.f32 %v555_v31, %v504_v61 }
 0x145   :  { %4386 = vrot.lane.b32.xlu1 %v4385_v1, %s4732_s30  ;;  %s4740_s30 = smov 9  }
 0x178   :  { %v4352_v2 = vpop.permute.xlu2 %4351 }
 0x179   :  { %v4354_v3 = vunpack.i.h.bf16 %v4352_v2  ;;  %v4353_v4 = vunpack.i.l.bf16 %v4352_v2 }
 0x17b   :  { %v250_v5 = vsel %vm248_vm10, %v4353_v4, %v4354_v3  ;;  %v5006_v3 = vld [vmem:[%s6771_s4 + $0x80] sm:$0xff] }
 0x17c   :  { %273 = vmatpush.msra.mxu3 %v250_v5  ;;  %v503_v5 = vmul.f32 %v5001_v0, %v5001_v0  ;;  %v607_v13 = vmul.f32 %v5006_v3, %v5006_v3 }
 0x17e   :  { %v505_v32 = vadd.f32 %v503_v5, %v453_v9  ;;  %v4107_v5 = vld [vmem:[%s6769_s1 + $0x18] sm:$0xff] }
 0x180   :  { %v196_v42 = vpop.permute.xlu2 %195 }
 0x18f   :  { %v4342_v34 = vpop.permute.xlu1 %4341  ;;  %v4960_v35 = vpop.permute.xlu0 %4356 }
 0x190   :  { %v4343_v36 = vunpack.i.l.bf16 %v4342_v34  ;;  %v4344_v44 = vunpack.i.h.bf16 %v4342_v34  ;;  %v4359_v23 = vunpack.i.h.bf16 %v4960_v35  ;;  %v4358_v24 = vunpack.i.l.bf16 %v4960_v35  ;;  %v4096_v35 = vld [vmem:[%s6771_s4 + $0x88] sm:$0xff] }
 0x191   :  { %v609_v34 = vadd.f32 %v607_v13, %v557_v8  ;;  %v608_v49 = vmul.f32 %v4096_v35, %v4096_v35  ;;  %v741_v8 = vld [vmem:[%s6772_s5] sm:$0xff]  ;;  %v742_v13 = vld [vmem:[%s6772_s5 + $0x8] sm:$0xff] }
 0x192   :  { %488 = vmatpush.msrb.mxu0 %v4343_v36  ;;  %745 = vperm.xlu1 %4400, %v741_v8  }
 0x194   :  { %489 = vmatpush.msrb.mxu0 %v4344_v44  ;;  %v202_v44 = vsel %vm201_vm13, %v4359_v23, %v196_v42 }
 0x195   :  { %4085 = vmatmul.msk.f32.vlgmr.msrb.gmra.mxu0 %vm206_vm11, %v4083_v37 }
 0x196   :  { %679 = vmatpush.msra.mxu0 %v658_v47  ;;  %v558_v47 = vadd.f32 %v556_v39, %v505_v32 }
 0x197   :  { %v355_v54 = vpop.permute.xlu1 %354  ;;  %v4372_v55 = vpop.permute.xlu0 %4371 }
 0x198   :  { %v357_v56 = vmul.f32 0.0, %v355_v54  ;;  %v358_v57 = vmul.f32 %v355_v54, %v4875_v40  ;;  %v360_v58 = vmul.f32 %v355_v54, %v4877_v43  ;;  %680 = vmatpush.msra.mxu0 %v657_v53  ;;  %v4374_v59 = vunpack.i.h.bf16 %v4372_v55  ;;  %v4112_v54 = vld [vmem:[%s6768_s2 + $0x10] sm:$0xff] }
 0x199   :  { %v4373_v28 = vunpack.i.l.bf16 %v4372_v55  ;;  %v610_v31 = vadd.f32 %v608_v49, %v558_v47  ;;  %v794_v49 = vmul.u32 64, %v4833_v10 }
 0x19a   :  { %v4380_v1 = vpack.i.bf16 %v358_v57, %v357_v56  ;;  %v4375_v2 = vpack.i.bf16 %v360_v58, %v357_v56 }
 0x19b   :  { %v312_v4 = vsel %vm310_vm12, %v4373_v28, %v4374_v59  ;;  %vm795_vm7 = vcmp.ge.s32.totalorder %v4836_v12, %v794_v49 }
 0x19c   :  { %335 = vmatpush.msrb.mxu1 %v312_v4  ;;  %4381 = vrot.lane.b32.xlu0 %v4380_v1, %s4731_s29  ;;  %v4106_v1 = vld [vmem:[%s6769_s1 + $0x10] sm:$0xff] }
 0x19d   :  { %4376 = vrot.lane.b32.xlu2 %v4375_v2, %s4731_s29  ;;  %4086 = vmatmul.msk.f32.gmra.mxu0 %vm206_vm11, %v4084_v60  ;;  %v4108_v60 = vld [vmem:[%s6767_s0 + $0x20] sm:$0xff] }
 0x19f   :  { %v4347_v21 = vpop.permute.xlu1 %4346 }
 0x1a0   :  { %v4349_v27 = vunpack.i.h.bf16 %v4347_v21  ;;  %v4348_v29 = vunpack.i.l.bf16 %v4347_v21 }
 0x1a2   :  { %v563_v36 = vmul.f32 %v4348_v29, %v4875_v40  ;;  %v564_v37 = vmul.f32 %v4348_v29, %v4877_v43  ;;  %v203_v38 = vsel %vm201_vm13, %v4349_v27, %v4358_v24 }
 0x1a3   :  { %227 = vmatpush.msra.mxu2 %v203_v38 }
 0x1a4   :  { %v4395_v20 = vpack.i.bf16 %v563_v36, %v564_v37 }
 0x1a5   :  { %4391 = vrot.lane.b32.xlu2 %v4390_v41, %s4733_s11  ;;  %228 = vmatpush.msra.mxu2 %v202_v44  ;;  %s4747_s11 = smov 112  }
 0x1a6   :  { %4099 = vmatmul.msk.f32.vlgmr.msra.gmra.mxu0 %vm206_vm11, %v609_v34  ;;  %4396 = vrot.lane.b32.xlu0 %v4395_v20, %s4735_s13  ;;  %s4748_s13 = smov 16  }
 0x1a7   :  { %v4362_v50 = vpop.permute.xlu1 %4361  ;;  %4067 = vmatmul.msk.f32.vlgmr.msra.gmra.mxu2 %vm206_vm11, %v4905_v7 }
 0x1a8   :  { %v4364_v51 = vunpack.i.h.bf16 %v4362_v50  ;;  %v4363_v52 = vunpack.i.l.bf16 %v4362_v50 }
 0x1aa   :  { %v249_v53 = vsel %vm248_vm10, %v4363_v52, %v4364_v51  ;;  %v796_v51 = vadd.s32 64, %v794_v49 }
 0x1ab   :  { %274 = vmatpush.msra.mxu3 %v249_v53 }
 0x1ac   :  { %4069 = vmatmul.msk.f32.vlgmr.msra.gmra.mxu3 %vm206_vm11, %v4900_v6  ;;  %vm797_vm8 = vcmp.lt.s32.totalorder %v4836_v12, %v796_v51 }
 0x1ad   :  { %436 = vmatpush.msrb.mxu3 %v4877_v43  ;;  %750 = vperm.xlu2 %4401, %v742_v13   ;;  %vm798_vm10 = vmand %vm795_vm7, %vm797_vm8  ;;  %vm1051_vm7 = vcmask 56320   ;;  %vm943_vm8 = vcmask 64512  }
 0x1ae   :  { %4100 = vmatmul.msk.f32.gmra.mxu0 %vm206_vm11, %v610_v31  ;;  %813 = vperm.xlu0 %4339, %v4112_v54   ;;  %v5119_v52 = vsel %vm798_vm10, 1.0, %v4730_v14  ;;  %vm1282_vm10 = vcmask 990208  }
 0x1af   :  { %437 = vmatpush.msrb.mxu3 %v4875_v40  ;;  %v4367_v7 = vpop.permute.xlu1 %4366  ;;  %4068 = vmatmul.msk.f32.gmra.mxu2 %vm206_vm11, %v4931_v19 }
 0x1b0   :  { %v4369_v55 = vunpack.i.h.bf16 %v4367_v7  ;;  %v4368_v56 = vunpack.i.l.bf16 %v4367_v7  ;;  %4116 = vmatpush.msk.msrb.mxu0 %vm114_vm4, %v5119_v52 }
 0x1b2   :  { %v311_v57 = vsel %vm310_vm12, %v4368_v56, %v4369_v55 }
 0x1b3   :  { %336 = vmatpush.msrb.mxu1 %v311_v57 }
 0x1b4   :  { %4073 = vmatmul.msk.f32.vlgmr.msrb.gmra.mxu1 %vm206_vm11, %v4914_v11  ;;  %4070 = vmatmul.msk.f32.gmra.mxu3 %vm206_vm11, %v4926_v18 }
 0x1b7   :  { %v4387_v43 = vpop.permute.xlu1 %4386 }
 0x1b8   :  { %v4388_v6 = vunpack.i.l.bf16 %v4387_v43  ;;  %v4389_v58 = vunpack.i.h.bf16 %v4387_v43  ;;  %v764_v43 = vld [vmem:[%s6773_s8 + $0x18] sm:$0xff] }
 0x1ba   :  { %541 = vmatpush.msra.mxu1 %v4388_v6 }
 0x1bc   :  { %542 = vmatpush.msra.mxu1 %v4389_v58  ;;  %4081 = vmatmul.msk.f32.vlgmr.msrb.gmra.mxu3 %vm206_vm11, %v4944_v25 }
 0x1bd   :  { %4074 = vmatmul.msk.f32.gmra.mxu1 %vm206_vm11, %v4949_v26 }
 0x1be   :  { %4101 = vmatpush.msk.msrb.mxu1 %vm114_vm4, %v4841_v15  ;;  %v4111_v15 = vld [vmem:[%s6767_s0 + $0x38] sm:$0xff] }
 0x1c4   :  { %4082 = vmatmul.msk.f32.gmra.mxu3 %vm206_vm11, %v4975_v46  ;;  %v4109_v46 = vld [vmem:[%s6767_s0 + $0x28] sm:$0xff] }
 0x1c5   :  { %4089 = vmatmul.msk.f32.vlgmr.msra.gmra.mxu1 %vm206_vm11, %v4970_v45  ;;  %v4110_v45 = vld [vmem:[%s6767_s0 + $0x30] sm:$0xff] }
 0x1cd   :  { %4090 = vmatmul.msk.f32.gmra.mxu1 %vm206_vm11, %v5001_v0 }
 0x1f7   :  { %v4377_v40 = vpop.permute.xlu2 %4376 }
 0x1f8   :  { %v4379_v11 = vunpack.i.h.bf16 %v4377_v40  ;;  %v4378_v18 = vunpack.i.l.bf16 %v4377_v40 }
 0x1fa   :  { %v375_v19 = vsel %vm373_vm14, %v4378_v18, %v4379_v11  ;;  %v763_v18 = vld [vmem:[%s6773_s8 + $0x10] sm:$0xff] }
 0x1fb   :  { %398 = vmatpush.msrb.mxu2 %v375_v19 }
 0x1ff   :  { %v4392_v25 = vpop.permute.xlu2 %4391 }
 0x200   :  { %v4393_v26 = vunpack.i.l.bf16 %v4392_v25  ;;  %v4394_v59 = vunpack.i.h.bf16 %v4392_v25  ;;  %v762_v25 = vld [vmem:[%s6773_s8 + $0x8] sm:$0xff] }
 0x202   :  { %646 = vmatpush.msra.mxu3 %v4393_v26 }
 0x204   :  { %647 = vmatpush.msra.mxu3 %v4394_v59  ;;  %v746_v57 = vpop.permute.xlu1 %745  ;;  %v761_v59 = vld [vmem:[%s6773_s8] sm:$0xff]  ;;  %s4739_s8 = smov 119  }
 0x205   :  { %4097 = vmatmul.msk.f32.vlgmr.msra.gmra.mxu3 %vm206_vm11, %v5006_v3 }
 0x206   :  { %839 = vmatpush.msrb.mxu3 %v4111_v15 }
 0x208   :  { %840 = vmatpush.msrb.mxu3 %v4110_v45 }
 0x20a   :  { %841 = vmatpush.msrb.mxu3 %v4109_v46 }
 0x20c   :  { %842 = vmatpush.msrb.mxu3 %v4108_v60 }
 0x20d   :  { %4098 = vmatmul.msk.f32.gmra.mxu3 %vm206_vm11, %v4096_v35 }
 0x20e   :  { %v4382_v61 = vpop.permute.xlu0 %4381 }
 0x20f   :  { %v4384_v28 = vunpack.i.h.bf16 %v4382_v61  ;;  %v4383_v62 = vunpack.i.l.bf16 %v4382_v61 }
 0x211   :  { %v374_v63 = vsel %vm373_vm14, %v4383_v62, %v4384_v28 }
 0x212   :  { %399 = vmatpush.msrb.mxu2 %v374_v63  ;;  %v5084_v0 = vpop.f32.mrf.mxu0 }
 0x213   :  { %4077 = vmatmul.msk.f32.vlgmr.msrb.gmra.mxu2 %vm206_vm11, %v4921_v17  ;;  %v4113_v17 = vld [vmem:[%s6768_s2 + $0x18] sm:$0xff] }
 0x214   :  { %818 = vperm.xlu1 %4400, %v4113_v17  }
 0x215   :  { %4114 = vmatmul.msk.f32.vlgmr.msrb.gmra.mxu3 %vm77_vm0, %v4106_v1  ;;  %v5144_v1 = vand.u32 63, %v4836_v12 }
 0x217   :  { %vm888_vm12 = vcmp.ge.s32.totalorder %v5144_v1, 8 }
 0x218   :  { %v4397_v2 = vpop.permute.xlu0 %4396  ;;  %v5149_v8 = vsel %vm888_vm12, 1.0, %v4730_v14  ;;  %vm1409_vm12 = vcmask 973824  }
 0x219   :  { %v4398_v3 = vunpack.i.l.bf16 %v4397_v2  ;;  %v4399_v9 = vunpack.i.h.bf16 %v4397_v2 }
 0x21a   :  { %v5092_v4 = vpop.f32.mrf.mxu0 }
 0x21b   :  { %4078 = vmatmul.msk.f32.gmra.mxu2 %vm206_vm11, %v4958_v33 }
 0x21c   :  { %593 = vmatpush.msra.mxu2 %v4398_v3 }
 0x21d   :  { %4115 = vmatmul.msk.f32.gmra.mxu3 %vm77_vm0, %v4107_v5  ;;  %v887_v5 = vand.u32 7, %v5144_v1 }
 0x21e   :  { %594 = vmatpush.msra.mxu2 %v4399_v9 }
 0x21f   :  { %vm892_vm13 = vcmp.ge.s32.totalorder %v887_v5, 1 }
 0x220   :  { %v814_v6 = vpop.permute.xlu0 %813  ;;  %783 = vmatpush.msrb.mxu2 %v764_v43 }
 0x222   :  { %784 = vmatpush.msrb.mxu2 %v763_v18 }
 0x223   :  { %v682_v16 = vpop.f32.mrf.mxu0  ;;  %4093 = vmatmul.msk.f32.vlgmr.msra.gmra.mxu2 %vm206_vm11, %v4982_v48 }
 0x224   :  { %v683_v33 = vadd.f32 1e-08, %v682_v16  ;;  %785 = vmatpush.msrb.mxu2 %v762_v25  ;;  %v893_v16 = vsel %vm892_vm13, 1.0, %v4730_v14 }
 0x226   :  { %v688_v21 = vmul.f32 0.5, %v683_v33  ;;  %786 = vmatpush.msrb.mxu2 %v761_v59 }
 0x228   :  { %4702 = vrsqrt.f32 %v688_v21  ;;  %vm696_vm1 = vweird.f32 %v688_v21 }
 0x22a   :  { %v230_v31 = vpop.f32.mrf.mxu2 }
 0x22b   :  { %v685_v23 = vpop.f32.mrf.mxu0  ;;  %4094 = vmatmul.msk.f32.gmra.mxu2 %vm206_vm11, %v5021_v22 }
 0x22c   :  { %v686_v24 = vadd.f32 1e-08, %v685_v23 }
 0x22e   :  { %v4703_v27 = vpop.eup %4702  ;;  %v689_v29 = vmul.f32 0.5, %v686_v24 }
 0x22f   :  { %v691_v30 = vmul.f32 %v4703_v27, %v688_v21  ;;  %vm697_vm15 = vweird.f32 %v4703_v27  ;;  %v276_v20 = vpop.f32.mrf.mxu3  ;;  %v907_v21 = vmul.f32 %v893_v16, %v5149_v8 }
 0x230   :  { %4704 = vrsqrt.f32 %v689_v29  ;;  %vm698_vm2 = vmor %vm696_vm1, %vm697_vm15  ;;  %vm706_vm5 = vweird.f32 %v689_v29  ;;  %v277_v26 = vadd.f32 %v276_v20, %v230_v31  ;;  %vm894_vm15 = vcmp.lt.s32.totalorder %v887_v5, 7 }
 0x231   :  { %v692_v32 = vmul.f32 %v4703_v27, %v691_v30  ;;  %v338_v56 = vpop.f32.mrf.mxu1  ;;  %v5153_v13 = vsel %vm894_vm15, 1.0, %v4730_v14  ;;  %909 = vrot.lane.b32.xlu2 %v907_v21, %s4739_s8  ;;  %v4119_v21 = vld [vmem:[%s6771_s4 + $0x90] sm:$0xff] }
 0x232   :  { %v233_v7 = vpop.f32.mrf.mxu2  ;;  %v344_v45 = vadd.f32 %v338_v56, %v277_v26  ;;  %1199 = vrot.lane.b32.xlu0 %v5153_v13, %s4731_s29  ;;  %v1030_v18 = vmul.f32 %v5153_v13, %v5149_v8 }
 0x233   :  { %v693_v34 = vmul.f32 0.5, %v692_v32 }
 0x235   :  { %v694_v36 = vsub.f32 1.5, %v693_v34 }
 0x236   :  { %v4705_v37 = vpop.eup %4704 }
 0x237   :  { %v701_v48 = vmul.f32 %v4705_v37, %v689_v29  ;;  %v695_v38 = vmul.f32 %v4703_v27, %v694_v36  ;;  %vm707_vm3 = vweird.f32 %v4705_v37  ;;  %v279_v47 = vpop.f32.mrf.mxu3 }
 0x238   :  { %vm708_vm6 = vmor %vm706_vm5, %vm707_vm3  ;;  %v280_v28 = vadd.f32 %v279_v47, %v233_v7  ;;  %vm890_vm3 = vcmp.lt.s32.totalorder %v5144_v1, 56  ;;  %vm989_vm5 = vcmask 72704  }
 0x239   :  { %v702_v39 = vmul.f32 %v4705_v37, %v701_v48  ;;  %v699_v41 = vsel %vm698_vm2, %v4703_v27, %v695_v38 }
 0x23a   :  { %4102 = vmatmul.msk.f32.vlgmr.msrb.gmra.mxu1 %vm107_vm9, %v699_v41  ;;  %v341_v19 = vpop.f32.mrf.mxu1 }
 0x23b   :  { %v703_v42 = vmul.f32 0.5, %v702_v39  ;;  %v345_v2 = vadd.f32 %v341_v19, %v280_v28 }
 0x23d   :  { %v704_v22 = vsub.f32 1.5, %v703_v42 }
 0x23f   :  { %v705_v35 = vmul.f32 %v4705_v37, %v704_v22  ;;  %v439_v50 = vpop.f32.mrf.mxu3 }
 0x241   :  { %v709_v44 = vsel %vm708_vm6, %v4705_v37, %v705_v35  ;;  %v751_v35 = vpop.permute.xlu2 %750  ;;  %vm1218_vm6 = vcmask 1039360  }
 0x242   :  { %4103 = vmatmul.msk.f32.gmra.mxu1 %vm107_vm9, %v709_v44  ;;  %v544_v63 = vpop.f32.mrf.mxu1 }
 0x247   :  { %v442_v53 = vpop.f32.mrf.mxu3 }
 0x24a   :  { %v547_v23 = vpop.f32.mrf.mxu1 }
 0x286   :  { %v819_v15 = vpop.permute.xlu1 %818 }
 0x288   :  { %v649_v54 = vpop.f32.mrf.mxu3 }
 0x28b   :  { %v910_v49 = vpop.permute.xlu2 %909 }
 0x28c   :  { %v912_v31 = vmul.f32 0.0, %v910_v49 }
 0x290   :  { %v652_v55 = vpop.f32.mrf.mxu3 }
 0x296   :  { %v401_v40 = vpop.f32.mrf.mxu2 }
 0x297   :  { %v407_v62 = vadd.f32 %v401_v40, %v344_v45 }
 0x298   :  { %v844_v58 = vpop.f32.mrf.mxu3 }
 0x299   :  { %v5126_v11 = vadd.f32 %v844_v58, %v814_v6  ;;  %v445_v3 = vadd.f32 %v439_v50, %v407_v62 }
 0x29b   :  { %4117 = vmatmul.msk.f32.vlgmr.msrb.gmra.mxu0 %vm107_vm9, %v5126_v11  ;;  %v497_v9 = vadd.f32 %v5084_v0, %v445_v3 }
 0x29d   :  { %v550_v24 = vadd.f32 %v544_v63, %v497_v9 }
 0x29e   :  { %v404_v61 = vpop.f32.mrf.mxu2 }
 0x29f   :  { %v408_v17 = vadd.f32 %v404_v61, %v345_v2 }
 0x2a0   :  { %v847_v46 = vpop.f32.mrf.mxu3 }
 0x2a1   :  { %v5139_v60 = vadd.f32 %v847_v46, %v819_v15  ;;  %v446_v27 = vadd.f32 %v442_v53, %v408_v17  ;;  %v891_v15 = vsel %vm890_vm3, 1.0, %v4730_v14 }
 0x2a2   :  { %v1261_v45 = vmul.f32 %v893_v16, %v891_v15  ;;  %v1388_v46 = vmul.f32 %v5153_v13, %v891_v15 }
 0x2a3   :  { %4118 = vmatmul.msk.f32.gmra.mxu0 %vm107_vm9, %v5139_v60  ;;  %v498_v0 = vadd.f32 %v5092_v4, %v446_v27 }
 0x2a5   :  { %v551_v36 = vadd.f32 %v547_v23, %v498_v0 }
 0x2a6   :  { %v596_v33 = vpop.f32.mrf.mxu2 }
 0x2a7   :  { %v602_v29 = vadd.f32 %v596_v33, %v550_v24 }
 0x2a9   :  { %v655_v30 = vadd.f32 %v649_v54, %v602_v29 }
 0x2ae   :  { %v599_v32 = vpop.f32.mrf.mxu2 }
 0x2af   :  { %v603_v48 = vadd.f32 %v599_v32, %v551_v36 }
 0x2b1   :  { %v656_v41 = vadd.f32 %v652_v55, %v603_v48  ;;  %v1446_v48 = vmul.f32 %v5139_v60, %v5139_v60 }
 0x2b7   :  { %v733_v34 = vpop.f32.mrf.mxu1 }
 0x2b8   :  { %v739_v37 = vmul.f32 %v733_v34, %v655_v30 }
 0x2ba   :  { %v753_v38 = vadd.f32 %v746_v57, %v739_v37  ;;  %v1200_v57 = vpop.permute.xlu0 %1199 }
 0x2bb   :  { %v1203_v6 = vmul.f32 0.0, %v1200_v57 }
 0x2bc   :  { %v757_v39 = vmul.f32 0.2, %v753_v38  ;;  %vm755_vm1 = vcmp.ge.f32.partialorder %v753_v38, 0.0 }
 0x2be   :  { %v759_v42 = vsel %vm755_vm1, %v753_v38, %v757_v39 }
 0x2bf   :  { %v736_v22 = vpop.f32.mrf.mxu1  ;;  %4104 = vmatmul.msk.f32.vlgmr.msrb.gmra.mxu2 %vm77_vm0, %v759_v42 }
 0x2c0   :  { %v740_v44 = vmul.f32 %v736_v22, %v656_v41  ;;  %v1445_v41 = vmul.f32 %v5126_v11, %v5126_v11  ;;  %v4120_v11 = vld [vmem:[%s6771_s4 + $0x98] sm:$0xff] }
 0x2c2   :  { %v754_v20 = vadd.f32 %v751_v35, %v740_v44 }
 0x2c4   :  { %v758_v47 = vmul.f32 0.2, %v754_v20  ;;  %vm756_vm2 = vcmp.ge.f32.partialorder %v754_v20, 0.0 }
 0x2c6   :  { %v760_v4 = vsel %vm756_vm2, %v754_v20, %v758_v47 }
 0x2c7   :  { %4105 = vmatmul.msk.f32.gmra.mxu2 %vm77_vm0, %v760_v4 }
 0x318   :  { %v876_v50 = vpop.f32.mrf.mxu0 }
 0x320   :  { %v879_v55 = vpop.f32.mrf.mxu0 }
 0x342   :  { %v788_v51 = vpop.f32.mrf.mxu2 }
 0x343   :  { %v5163_v53 = vmul.f32 %v876_v50, %v788_v51 }
 0x345   :  { %v913_v54 = vmul.f32 %v910_v49, %v5163_v53  ;;  %v1202_v26 = vmul.f32 %v1200_v57, %v5163_v53 }
 0x347   :  { %v4407_v7 = vpack.i.bf16 %v913_v54, %v912_v31  ;;  %v4417_v59 = vpack.i.bf16 %v1203_v6, %v1202_v26 }
 0x349   :  { %4408 = vrot.lane.b32.xlu2 %v4407_v7, %s4740_s30  ;;  %v899_v7 = vmul.f32 %v4119_v21, %v4119_v21 }
 0x34a   :  { %v791_v56 = vpop.f32.mrf.mxu2 }
 0x34b   :  { %v5166_v43 = vmul.f32 %v879_v55, %v791_v56  ;;  %v5220_v56 = vld [vmem:[%s6771_s4 + $0xa8] sm:$0xff] }
 0x34d   :  { %v1204_v58 = vmul.f32 %v1200_v57, %v5166_v43  ;;  %v915_v40 = vmul.f32 %v910_v49, %v5166_v43  ;;  %v5225_v57 = vld [vmem:[%s6771_s4 + $0xb0] sm:$0xff] }
 0x34f   :  { %v4412_v19 = vpack.i.bf16 %v1203_v6, %v1204_v58  ;;  %v4402_v25 = vpack.i.bf16 %v915_v40, %v912_v31  ;;  %v5211_v31 = vld [vmem:[%s6771_s4 + $0xa0] sm:$0xff]  ;;  %v900_v6 = vmul.f32 %v4120_v11, %v4120_v11  ;;  %v920_v58 = vmul.f32 %v5220_v56, %v5220_v56 }
 0x350   :  { %v919_v55 = vmul.f32 %v5211_v31, %v5211_v31 }
 0x351   :  { %1032 = vrot.lane.b32.xlu2 %v1030_v18, %s4741_s12  ;;  %4413 = vrot.lane.b32.xlu0 %v4412_v19, %s4737_s3  ;;  %v1026_v18 = vmul.f32 %v5225_v57, %v5225_v57 }
 0x352   :  { %4403 = vrot.lane.b32.xlu1 %v4402_v25, %s4740_s30  ;;  %v921_v40 = vadd.f32 %v919_v55, %v899_v7  ;;  %v5234_v25 = vld [vmem:[%s6771_s4 + $0xb8] sm:$0xff] }
 0x359   :  { %1095 = vrot.lane.b32.xlu2 %v893_v16, %s4737_s3  ;;  %924 = vrot.lane.b32.xlu0 %v5149_v8, %s4742_s14 }
 0x35a   :  { %4418 = vrot.lane.b32.xlu1 %v4417_v59, %s4737_s3  ;;  %v922_v59 = vadd.f32 %v920_v58, %v900_v6 }
 0x362   :  { %1263 = vrot.lane.b32.xlu1 %v1261_v45, %s4743_s15  ;;  %v1028_v45 = vadd.f32 %v1026_v18, %v921_v40 }
 0x36a   :  { %1390 = vrot.lane.b32.xlu1 %v1388_v46, %s4740_s30 }
 0x3a3   :  { %v4409_v61 = vpop.permute.xlu2 %4408 }
 0x3a4   :  { %v4411_v5 = vunpack.i.h.bf16 %v4409_v61  ;;  %v4410_v8 = vunpack.i.l.bf16 %v4409_v61 }
 0x3a6   :  { %v990_v13 = vsel %vm989_vm5, %v4410_v8, %v4411_v5  ;;  %v5267_v5 = vld [vmem:[%s6771_s4 + $0xf0] sm:$0xff] }
 0x3ab   :  { %v1033_v28 = vpop.permute.xlu2 %1032 }
 0x3ac   :  { %v1035_v62 = vmul.f32 0.0, %v1033_v28  ;;  %v1038_v63 = vmul.f32 %v1033_v28, %v5166_v43  ;;  %v1036_v42 = vmul.f32 %v1033_v28, %v5163_v53  ;;  %v5249_v28 = vld [vmem:[%s6771_s4 + $0xc0] sm:$0xff] }
 0x3ae   :  { %v4432_v1 = vpack.i.bf16 %v1038_v63, %v1035_v62  ;;  %v4427_v47 = vpack.i.bf16 %v1036_v42, %v1035_v62  ;;  %v5254_v62 = vld [vmem:[%s6771_s4 + $0xd0] sm:$0xff]  ;;  %v4139_v63 = vld [vmem:[%s6771_s4 + $0xe0] sm:$0xff] }
 0x3b0   :  { %4433 = vrot.lane.b32.xlu2 %v4432_v1, %s4743_s15  ;;  %v1090_v1 = vmul.f32 %v5249_v28, %v5249_v28 }
 0x3b3   :  { %v1096_v39 = vpop.permute.xlu2 %1095 }
 0x3b4   :  { %v1098_v22 = vmul.f32 0.0, %v1096_v39  ;;  %v1101_v35 = vmul.f32 %v1096_v39, %v5166_v43  ;;  %v1099_v54 = vmul.f32 %v1096_v39, %v5163_v53 }
 0x3b6   :  { %v4447_v4 = vpack.i.bf16 %v1101_v35, %v1098_v22  ;;  %v4457_v19 = vpack.i.bf16 %v1099_v54, %v1098_v22  ;;  %v5318_v22 = vld [vmem:[%s6771_s4 + $0x108] sm:$0xff] }
 0x3c3   :  { %v4414_v2 = vpop.permute.xlu0 %4413 }
 0x3c4   :  { %v4404_v3 = vpop.permute.xlu1 %4403  ;;  %v4416_v17 = vunpack.i.h.bf16 %v4414_v2  ;;  %v4415_v16 = vunpack.i.l.bf16 %v4414_v2  ;;  %v1152_v2 = vmul.f32 %v5254_v62, %v5254_v62 }
 0x3c5   :  { %v4406_v14 = vunpack.i.h.bf16 %v4404_v3  ;;  %v4405_v9 = vunpack.i.l.bf16 %v4404_v3 }
 0x3c6   :  { %v1220_v23 = vsel %vm1218_vm6, %v4415_v16, %v4416_v17  ;;  %v5273_v17 = vld [vmem:[%s6771_s4 + $0xc8] sm:$0xff]  ;;  %v5278_v16 = vld [vmem:[%s6771_s4 + $0xd8] sm:$0xff] }
 0x3c7   :  { %v991_v33 = vsel %vm989_vm5, %v4405_v9, %v4406_v14  ;;  %v1092_v14 = vadd.f32 %v1090_v1, %v1028_v45  ;;  %v1190_v9 = vmul.f32 %v4139_v63, %v4139_v63 }
 0x3c8   :  { %1014 = vmatpush.msra.mxu2 %v991_v33  ;;  %v5283_v33 = vld [vmem:[%s6771_s4 + $0x100] sm:$0xff] }
 0x3ca   :  { %1015 = vmatpush.msra.mxu2 %v990_v13  ;;  %v1091_v13 = vmul.f32 %v5273_v17, %v5273_v17 }
 0x3cb   :  { %v925_v24 = vpop.permute.xlu0 %924  ;;  %4125 = vmatmul.msk.f32.vlgmr.msra.gmra.mxu2 %vm206_vm11, %v4119_v21  ;;  %v1153_v21 = vmul.f32 %v5278_v16, %v5278_v16 }
 0x3cc   :  { %1243 = vmatpush.msrb.mxu2 %v1220_v23  ;;  %v927_v27 = vmul.f32 0.0, %v925_v24  ;;  %v930_v29 = vmul.f32 %v925_v24, %v5166_v43  ;;  %v4419_v0 = vpop.permute.xlu1 %4418  ;;  %v928_v30 = vmul.f32 %v925_v24, %v5163_v53  ;;  %v1154_v23 = vadd.f32 %v1152_v2, %v1092_v14 }
 0x3cd   :  { %v4421_v32 = vunpack.i.h.bf16 %v4419_v0  ;;  %v4420_v34 = vunpack.i.l.bf16 %v4419_v0  ;;  %v1257_v24 = vmul.f32 %v5267_v5, %v5267_v5 }
 0x3ce   :  { %937 = vrot.lane.b32.xlu2 %v928_v30, %s4744_s18  ;;  %v4422_v36 = vpack.i.bf16 %v927_v27, %v891_v15  ;;  %v4437_v37 = vpack.i.bf16 %v927_v27, %v930_v29  ;;  %v1027_v15 = vmul.f32 %v5234_v25, %v5234_v25  ;;  %v4140_v27 = vld [vmem:[%s6771_s4 + $0xe8] sm:$0xff]  ;;  %v5298_v30 = vld [vmem:[%s6771_s4 + $0xf8] sm:$0xff] }
 0x3cf   :  { %v1219_v38 = vsel %vm1218_vm6, %v4420_v34, %v4421_v32  ;;  %v1191_v0 = vmul.f32 %v4140_v27, %v4140_v27  ;;  %v5303_v32 = vld [vmem:[%s6771_s4 + $0x110] sm:$0xff]  ;;  %v1192_v34 = vadd.f32 %v1190_v9, %v1154_v23 }
 0x3d0   :  { %1244 = vmatpush.msrb.mxu2 %v1219_v38  ;;  %4423 = vrot.lane.b32.xlu0 %v4422_v36, %s4744_s18  ;;  %v1029_v3 = vadd.f32 %v1027_v15, %v922_v59  ;;  %v1321_v36 = vmul.f32 %v5283_v33, %v5283_v33  ;;  %v1258_v38 = vmul.f32 %v5298_v30, %v5298_v30  ;;  %v5333_v15 = vld [vmem:[#allocation2] sm:$0xff] }
 0x3d1   :  { %4438 = vrot.lane.b32.xlu1 %v4437_v37, %s4744_s18  ;;  %v1384_v39 = vmul.f32 %v5303_v32, %v5303_v32 }
 0x3d2   :  { %1467 = vmatpush.msra.mxu2 %v1446_v48  ;;  %v1093_v29 = vadd.f32 %v1091_v13, %v1029_v3  ;;  %v1259_v48 = vadd.f32 %v1257_v24, %v1192_v34 }
 0x3d3   :  { %4126 = vmatmul.msk.f32.gmra.mxu2 %vm206_vm11, %v4120_v11 }
 0x3d4   :  { %1468 = vmatpush.msra.mxu2 %v1445_v41  ;;  %v1264_v44 = vpop.permute.xlu1 %1263  ;;  %v1155_v37 = vadd.f32 %v1153_v21, %v1093_v29  ;;  %v4161_v41 = vld [vmem:[%s6772_s5 + $0x18] sm:$0xff]  ;;  %v1323_v35 = vadd.f32 %v1321_v36, %v1259_v48 }
 0x3d5   :  { %v1266_v20 = vmul.f32 %v1264_v44, %v5163_v53  ;;  %v1267_v60 = vmul.f32 0.0, %v1264_v44  ;;  %v1268_v50 = vmul.f32 %v1264_v44, %v5166_v43 }
 0x3d6   :  { %v1193_v42 = vadd.f32 %v1191_v0, %v1155_v37 }
 0x3d7   :  { %v4452_v49 = vpack.i.bf16 %v1267_v60, %v1266_v20  ;;  %v4442_v51 = vpack.i.bf16 %v1267_v60, %v1268_v50  ;;  %v1386_v20 = vadd.f32 %v1384_v39, %v1323_v35  ;;  %v1322_v60 = vmul.f32 %v5318_v22, %v5318_v22 }
 0x3d8   :  { %4428 = vrot.lane.b32.xlu0 %v4427_v47, %s4743_s15  ;;  %v1260_v44 = vadd.f32 %v1258_v38, %v1193_v42  ;;  %v5325_v47 = vld [vmem:[%s6771_s4 + $0x118] sm:$0xff]  ;;  %v4168_v38 = vld [vmem:[%s6768_s2 + $0x20] sm:$0xff] }
 0x3d9   :  { %4448 = vrot.lane.b32.xlu1 %v4447_v4, %s4731_s29  ;;  %4453 = vrot.lane.b32.xlu2 %v4452_v49, %s4741_s12  ;;  %v1385_v49 = vmul.f32 %v5325_v47, %v5325_v47 }
 0x3da   :  { %v1324_v4 = vadd.f32 %v1322_v60, %v1260_v44 }
 0x3db   :  { %4141 = vmatmul.msk.f32.vlgmr.msrb.gmra.mxu2 %vm206_vm11, %v4139_v63 }
 0x3dc   :  { %v5236_v26 = vpop.permute.xlu1 %1390  ;;  %v1387_v11 = vadd.f32 %v1385_v49, %v1324_v4 }
 0x3dd   :  { %v5242_v46 = vmul.f32 0.0, %v5236_v26  ;;  %v1395_v61 = vmul.f32 %v5236_v26, %v5166_v43  ;;  %v1393_v9 = vmul.f32 %v5236_v26, %v5163_v53 }
 0x3df   :  { %v4472_v8 = vpack.i.bf16 %v5242_v46, %v1395_v61 }
 0x3e0   :  { %4443 = vrot.lane.b32.xlu0 %v4442_v51, %s4741_s12 }
 0x3e3   :  { %4142 = vmatmul.msk.f32.gmra.mxu2 %vm206_vm11, %v4140_v27 }
 0x3e8   :  { %4458 = vrot.lane.b32.xlu0 %v4457_v19, %s4731_s29 }
 0x3eb   :  { %4155 = vmatmul.msk.f32.vlgmr.msra.gmra.mxu2 %vm206_vm11, %v1386_v20 }
 0x3f0   :  { %4473 = vrot.lane.b32.xlu0 %v4472_v8, %s4739_s8 }
 0x3f3   :  { %4156 = vmatmul.msk.f32.gmra.mxu2 %vm206_vm11, %v1387_v11 }
 0x3f8   :  { %1539 = vperm.xlu0 %4339, %v4161_v41  }
 0x40a   :  { %v4434_v50 = vpop.permute.xlu2 %4433 }
 0x40b   :  { %v4436_v51 = vunpack.i.h.bf16 %v4434_v50  ;;  %v4435_v54 = vunpack.i.l.bf16 %v4434_v50 }
 0x40d   :  { %v1053_v7 = vsel %vm1051_vm7, %v4435_v54, %v4436_v51 }
 0x40e   :  { %1076 = vmatpush.msra.mxu3 %v1053_v7 }
 0x428   :  { %v938_v1 = vpop.permute.xlu2 %937 }
 0x433   :  { %v4454_v26 = vpop.permute.xlu2 %4453 }
 0x434   :  { %v4456_v34 = vunpack.i.h.bf16 %v4454_v26  ;;  %v4455_v36 = vunpack.i.l.bf16 %v4454_v26  ;;  %v1608_v26 = vld [vmem:[%s6774_s9 + $0x1d0] sm:$0xff] }
 0x442   :  { %v4424_v55 = vpop.permute.xlu0 %4423 }
 0x443   :  { %v4426_v6 = vunpack.i.h.bf16 %v4424_v55  ;;  %v4425_v58 = vunpack.i.l.bf16 %v4424_v55  ;;  %v4439_v40 = vpop.permute.xlu1 %4438 }
 0x444   :  { %v4441_v18 = vunpack.i.h.bf16 %v4439_v40  ;;  %v4440_v19 = vunpack.i.l.bf16 %v4439_v40 }
 0x445   :  { %v1331_v59 = vmul.f32 %v4425_v58, %v5166_v43  ;;  %v1332_v45 = vmul.f32 %v5333_v15, %v4425_v58  ;;  %v1329_v61 = vmul.f32 %v4425_v58, %v5163_v53 }
 0x446   :  { %v945_v63 = vsel %vm943_vm8, %v4426_v6, %v4440_v19  ;;  %v944_v8 = vsel %vm943_vm8, %v4441_v18, %v938_v1 }
 0x447   :  { %968 = vmatpush.msra.mxu1 %v945_v63  ;;  %v4467_v2 = vpack.i.bf16 %v1332_v45, %v1331_v59  ;;  %v4462_v3 = vpack.i.bf16 %v1332_v45, %v1329_v61 }
 0x449   :  { %969 = vmatpush.msra.mxu1 %v944_v8  ;;  %4468 = vrot.lane.b32.xlu1 %v4467_v2, %s4742_s14 }
 0x44a   :  { %4463 = vrot.lane.b32.xlu2 %v4462_v3, %s4742_s14  ;;  %4123 = vmatmul.msk.f32.vlgmr.msra.gmra.mxu1 %vm206_vm11, %v5211_v31  ;;  %v4429_v14 = vpop.permute.xlu0 %4428  ;;  %v4477_v31 = vpack.i.bf16 %v5242_v46, %v1393_v9  ;;  %v1283_v46 = vsel %vm1282_vm10, %v4455_v36, %v4456_v34  ;;  %v1602_v34 = vld [vmem:[%s6774_s9 + $0x1a0] sm:$0xff]  ;;  %v1603_v36 = vld [vmem:[%s6774_s9 + $0x1a8] sm:$0xff] }
 0x44b   :  { %1176 = vmatpush.msrb.mxu1 %v5166_v43  ;;  %v4431_v13 = vunpack.i.h.bf16 %v4429_v14  ;;  %v4430_v21 = vunpack.i.l.bf16 %v4429_v14  ;;  %v4449_v23 = vpop.permute.xlu1 %4448  ;;  %v4160_v43 = vld [vmem:[%s6772_s5 + $0x10] sm:$0xff] }
 0x44c   :  { %v4451_v24 = vunpack.i.h.bf16 %v4449_v23  ;;  %v4450_v27 = vunpack.i.l.bf16 %v4449_v23 }
 0x44d   :  { %1177 = vmatpush.msrb.mxu1 %v5163_v53  ;;  %v1052_v29 = vsel %vm1051_vm7, %v4430_v21, %v4431_v13  ;;  %vm1345_vm7 = vcmask 982016  }
 0x44e   :  { %1077 = vmatpush.msra.mxu3 %v1052_v29  ;;  %v1115_v0 = vsel %vm373_vm14, %v4450_v27, %v4451_v24  ;;  %v5368_v35 = vpop.f32.mrf.mxu2 }
 0x44f   :  { %1138 = vmatpush.msra.mxu0 %v1115_v0  ;;  %4129 = vmatmul.msk.f32.vlgmr.msra.gmra.mxu3 %vm206_vm11, %v5225_v57  ;;  %v1610_v0 = vld [vmem:[%s6774_s9 + $0x1e0] sm:$0xff] }
 0x451   :  { %4478 = vrot.lane.b32.xlu1 %v4477_v31, %s4739_s8  ;;  %v1607_v31 = vld [vmem:[%s6774_s9 + $0x1c8] sm:$0xff] }
 0x452   :  { %1534 = vperm.xlu2 %4401, %v4160_v43   ;;  %4124 = vmatmul.msk.f32.gmra.mxu1 %vm206_vm11, %v5220_v56  ;;  %v4444_v53 = vpop.permute.xlu0 %4443  ;;  %v4169_v56 = vld [vmem:[%s6768_s2 + $0x28] sm:$0xff]  ;;  %v1612_v43 = vld [vmem:[%s6774_s9 + $0x1f0] sm:$0xff] }
 0x453   :  { %v4446_v37 = vunpack.i.h.bf16 %v4444_v53  ;;  %v4445_v48 = vunpack.i.l.bf16 %v4444_v53  ;;  %1660 = vmatpush.msrb.mxu2 %v1612_v43  ;;  %v1609_v53 = vld [vmem:[%s6774_s9 + $0x1d8] sm:$0xff] }
 0x454   :  { %v1561_v43 = vld [vmem:[%s6774_s9 + $0x58] sm:$0xff] }
 0x455   :  { %v1284_v57 = vsel %vm1282_vm10, %v4445_v48, %v4446_v37  ;;  %v1604_v37 = vld [vmem:[%s6774_s9 + $0x1b0] sm:$0xff]  ;;  %1661 = vmatpush.msrb.mxu2 %v1608_v26  ;;  %v1605_v48 = vld [vmem:[%s6774_s9 + $0x1b8] sm:$0xff] }
 0x456   :  { %1307 = vmatpush.msrb.mxu3 %v1284_v57  ;;  %v5378_v60 = vpop.f32.mrf.mxu2  ;;  %v1598_v57 = vld [vmem:[%s6774_s9 + $0x180] sm:$0xff]  ;;  %v1557_v26 = vld [vmem:[%s6774_s9 + $0x38] sm:$0xff] }
 0x457   :  { %4130 = vmatmul.msk.f32.gmra.mxu3 %vm206_vm11, %v5234_v25  ;;  %1662 = vmatpush.msrb.mxu2 %v1604_v37  ;;  %v1552_v37 = vld [vmem:[%s6774_s9 + $0x10] sm:$0xff] }
 0x458   :  { %1308 = vmatpush.msrb.mxu3 %v1283_v46  ;;  %v1600_v46 = vld [vmem:[%s6774_s9 + $0x190] sm:$0xff] }
 0x459   :  { %1740 = vperm.xlu1 %4400, %v4168_v38   ;;  %v1599_v38 = vld [vmem:[%s6774_s9 + $0x188] sm:$0xff]  ;;  %1663 = vmatpush.msrb.mxu2 %v1600_v46 }
 0x45a   :  { %4157 = vmatpush.msk.msra.mxu3 %vm114_vm4, %v5119_v52  ;;  %1745 = vperm.xlu2 %4401, %v4169_v56   ;;  %v4459_v39 = vpop.permute.xlu0 %4458  ;;  %v1601_v56 = vld [vmem:[%s6774_s9 + $0x198] sm:$0xff] }
 0x45b   :  { %4137 = vmatmul.msk.f32.vlgmr.msrb.gmra.mxu1 %vm206_vm11, %v5254_v62  ;;  %v4461_v41 = vunpack.i.h.bf16 %v4459_v39  ;;  %v4460_v42 = vunpack.i.l.bf16 %v4459_v39  ;;  %v1595_v39 = vld [vmem:[%s6774_s9 + $0x168] sm:$0xff] }
 0x45d   :  { %v1114_v25 = vsel %vm373_vm14, %v4460_v42, %v4461_v41  ;;  %v1596_v41 = vld [vmem:[%s6774_s9 + $0x170] sm:$0xff]  ;;  %v1597_v42 = vld [vmem:[%s6774_s9 + $0x178] sm:$0xff] }
 0x45e   :  { %1139 = vmatpush.msra.mxu0 %v1114_v25  ;;  %v1590_v25 = vld [vmem:[%s6774_s9 + $0x140] sm:$0xff]  ;;  %1664 = vmatpush.msrb.mxu2 %v1596_v41  ;;  %v4167_v41 = vld [vmem:[%s6767_s0 + $0x58] sm:$0xff] }
 0x45f   :  { %4133 = vmatmul.msk.f32.vlgmr.msra.gmra.mxu0 %vm206_vm11, %v5249_v28  ;;  %4145 = vmatmul.msk.f32.vlgmr.msrb.gmra.mxu3 %vm206_vm11, %v5267_v5  ;;  %v5384_v28 = vpop.f32.mrf.mxu2 }
 0x462   :  { %v4474_v44 = vpop.permute.xlu0 %4473 }
 0x463   :  { %4138 = vmatmul.msk.f32.gmra.mxu1 %vm206_vm11, %v5278_v16  ;;  %v4476_v52 = vunpack.i.h.bf16 %v4474_v44  ;;  %v4475_v62 = vunpack.i.l.bf16 %v4474_v44  ;;  %v1591_v44 = vld [vmem:[%s6774_s9 + $0x148] sm:$0xff] }
 0x465   :  { %v1411_v20 = vsel %vm1409_vm12, %v4475_v62, %v4476_v52  ;;  %v1592_v52 = vld [vmem:[%s6774_s9 + $0x150] sm:$0xff]  ;;  %v1593_v62 = vld [vmem:[%s6774_s9 + $0x158] sm:$0xff] }
 0x466   :  { %1434 = vmatpush.msra.mxu1 %v1411_v20  ;;  %v1586_v20 = vld [vmem:[%s6774_s9 + $0x120] sm:$0xff]  ;;  %1665 = vmatpush.msrb.mxu2 %v1592_v52 }
 0x467   :  { %4134 = vmatmul.msk.f32.gmra.mxu0 %vm206_vm11, %v5273_v17  ;;  %4146 = vmatmul.msk.f32.gmra.mxu3 %vm206_vm11, %v5298_v30  ;;  %v5386_v5 = vpop.f32.mrf.mxu2 }
 0x46f   :  { %v1470_v4 = vpop.f32.mrf.mxu2 }
 0x470   :  { %v1471_v49 = vadd.f32 1e-08, %v1470_v4  ;;  %v1587_v4 = vld [vmem:[%s6774_s9 + $0x128] sm:$0xff] }
 0x472   :  { %v1476_v16 = vmul.f32 0.5, %v1471_v49  ;;  %v1588_v49 = vld [vmem:[%s6774_s9 + $0x130] sm:$0xff] }
 0x473   :  { %1666 = vmatpush.msrb.mxu2 %v1588_v49 }
 0x474   :  { %4706 = vrsqrt.f32 %v1476_v16  ;;  %vm1484_vm13 = vweird.f32 %v1476_v16 }
 0x477   :  { %v1473_v11 = vpop.f32.mrf.mxu2 }
 0x478   :  { %v1474_v50 = vadd.f32 1e-08, %v1473_v11  ;;  %v1582_v11 = vld [vmem:[%s6774_s9 + $0x100] sm:$0xff] }
 0x47a   :  { %v4707_v51 = vpop.eup %4706  ;;  %v1477_v54 = vmul.f32 0.5, %v1474_v50  ;;  %v1583_v50 = vld [vmem:[%s6774_s9 + $0x108] sm:$0xff] }
 0x47b   :  { %v1479_v7 = vmul.f32 %v4707_v51, %v1476_v16  ;;  %vm1485_vm15 = vweird.f32 %v4707_v51  ;;  %v1589_v16 = vld [vmem:[%s6774_s9 + $0x138] sm:$0xff] }
 0x47c   :  { %4708 = vrsqrt.f32 %v1477_v54  ;;  %vm1486_vm1 = vmor %vm1484_vm13, %vm1485_vm15  ;;  %vm1494_vm2 = vweird.f32 %v1477_v54 }
 0x47d   :  { %v1480_v55 = vmul.f32 %v4707_v51, %v1479_v7 }
 0x47f   :  { %v1481_v6 = vmul.f32 0.5, %v1480_v55  ;;  %v1578_v55 = vld [vmem:[%s6774_s9 + $0xe0] sm:$0xff] }
 0x481   :  { %v1482_v17 = vsub.f32 1.5, %v1481_v6  ;;  %v1579_v6 = vld [vmem:[%s6774_s9 + $0xe8] sm:$0xff] }
 0x482   :  { %v4709_v30 = vpop.eup %4708 }
 0x483   :  { %v1489_v58 = vmul.f32 %v4709_v30, %v1477_v54  ;;  %v1483_v40 = vmul.f32 %v4707_v51, %v1482_v17  ;;  %vm1495_vm3 = vweird.f32 %v4709_v30  ;;  %v1585_v54 = vld [vmem:[%s6774_s9 + $0x118] sm:$0xff]  ;;  %v1580_v17 = vld [vmem:[%s6774_s9 + $0xf0] sm:$0xff] }
 0x484   :  { %vm1496_vm5 = vmor %vm1494_vm2, %vm1495_vm3 }
 0x485   :  { %v1490_v18 = vmul.f32 %v4709_v30, %v1489_v58  ;;  %v1487_v19 = vsel %vm1486_vm1, %v4707_v51, %v1483_v40  ;;  %v1584_v51 = vld [vmem:[%s6774_s9 + $0x110] sm:$0xff]  ;;  %v1581_v58 = vld [vmem:[%s6774_s9 + $0xf8] sm:$0xff]  ;;  %v1574_v40 = vld [vmem:[%s6774_s9 + $0xc0] sm:$0xff] }
 0x486   :  { %4158 = vmatmul.msk.f32.vlgmr.msra.gmra.mxu3 %vm107_vm9, %v1487_v19  ;;  %1667 = vmatpush.msrb.mxu2 %v1584_v51  ;;  %v1576_v19 = vld [vmem:[%s6774_s9 + $0xd0] sm:$0xff] }
 0x487   :  { %v1491_v59 = vmul.f32 0.5, %v1490_v18  ;;  %v1575_v18 = vld [vmem:[%s6774_s9 + $0xc8] sm:$0xff] }
 0x488   :  { %1668 = vmatpush.msrb.mxu2 %v1580_v17 }
 0x489   :  { %v1492_v45 = vsub.f32 1.5, %v1491_v59  ;;  %v1577_v59 = vld [vmem:[%s6774_s9 + $0xd8] sm:$0xff] }
 0x48a   :  { %1669 = vmatpush.msrb.mxu2 %v1576_v19 }
 0x48b   :  { %v1493_v61 = vmul.f32 %v4709_v30, %v1492_v45  ;;  %v1570_v45 = vld [vmem:[%s6774_s9 + $0xa0] sm:$0xff] }
 0x48d   :  { %v1497_v63 = vsel %vm1496_vm5, %v4709_v30, %v1493_v61  ;;  %v1571_v61 = vld [vmem:[%s6774_s9 + $0xa8] sm:$0xff] }
 0x48e   :  { %4159 = vmatmul.msk.f32.gmra.mxu3 %vm107_vm9, %v1497_v63  ;;  %v1572_v63 = vld [vmem:[%s6774_s9 + $0xb0] sm:$0xff] }
 0x48f   :  { %1670 = vmatpush.msrb.mxu2 %v1572_v63 }
 0x4a4   :  { %v4464_v1 = vpop.permute.xlu2 %4463 }
 0x4a5   :  { %v4466_v3 = vunpack.i.h.bf16 %v4464_v1  ;;  %v4465_v8 = vunpack.i.l.bf16 %v4464_v1  ;;  %v1573_v1 = vld [vmem:[%s6774_s9 + $0xb8] sm:$0xff] }
 0x4a7   :  { %v1346_v21 = vsel %vm1345_vm7, %v4465_v8, %v4466_v3  ;;  %v1567_v3 = vld [vmem:[%s6774_s9 + $0x88] sm:$0xff]  ;;  %v1568_v8 = vld [vmem:[%s6774_s9 + $0x90] sm:$0xff] }
 0x4a8   :  { %1671 = vmatpush.msrb.mxu2 %v1568_v8 }
 0x4bb   :  { %v4469_v2 = vpop.permute.xlu1 %4468 }
 0x4bc   :  { %v4471_v14 = vunpack.i.h.bf16 %v4469_v2  ;;  %v4470_v9 = vunpack.i.l.bf16 %v4469_v2  ;;  %v1566_v2 = vld [vmem:[%s6774_s9 + $0x80] sm:$0xff] }
 0x4be   :  { %v1347_v13 = vsel %vm1345_vm7, %v4470_v9, %v4471_v14  ;;  %v1569_v14 = vld [vmem:[%s6774_s9 + $0x98] sm:$0xff] }
 0x4bf   :  { %1370 = vmatpush.msrb.mxu0 %v1347_v13  ;;  %v1562_v13 = vld [vmem:[%s6774_s9 + $0x60] sm:$0xff] }
 0x4c1   :  { %1371 = vmatpush.msrb.mxu0 %v1346_v21  ;;  %v1563_v21 = vld [vmem:[%s6774_s9 + $0x68] sm:$0xff] }
 0x4c2   :  { %4149 = vmatmul.msk.f32.vlgmr.msrb.gmra.mxu0 %vm206_vm11, %v5283_v33  ;;  %v1611_v33 = vld [vmem:[%s6774_s9 + $0x1e8] sm:$0xff] }
 0x4c3   :  { %v4479_v23 = vpop.permute.xlu1 %4478  ;;  %1614 = vmatpush.msra.mxu0 %v1610_v0 }
 0x4c4   :  { %v4481_v24 = vunpack.i.h.bf16 %v4479_v23  ;;  %v4480_v27 = vunpack.i.l.bf16 %v4479_v23  ;;  %v1564_v23 = vld [vmem:[%s6774_s9 + $0x70] sm:$0xff] }
 0x4c5   :  { %1672 = vmatpush.msrb.mxu2 %v1564_v23  ;;  %v1709_v23 = vmul.u32 256, %v4833_v10 }
 0x4c6   :  { %v1410_v29 = vsel %vm1409_vm12, %v4480_v27, %v4481_v24  ;;  %v1565_v24 = vld [vmem:[%s6774_s9 + $0x78] sm:$0xff]  ;;  %v1558_v27 = vld [vmem:[%s6774_s9 + $0x40] sm:$0xff] }
 0x4c7   :  { %1435 = vmatpush.msra.mxu1 %v1410_v29  ;;  %v5506_v30 = vpop.f32.mrf.mxu1  ;;  %v1559_v29 = vld [vmem:[%s6774_s9 + $0x48] sm:$0xff]  ;;  %vm1710_vm15 = vcmp.ge.s32.totalorder %v4836_v12, %v1709_v23 }
 0x4c8   :  { %4153 = vmatmul.msk.f32.vlgmr.msra.gmra.mxu1 %vm206_vm11, %v5303_v32  ;;  %v1613_v32 = vld [vmem:[%s6774_s9 + $0x1f8] sm:$0xff] }
 0x4c9   :  { %1637 = vmatpush.msrb.mxu1 %v1611_v33  ;;  %1683 = vmatpush.msrb.mxu3 %v1613_v32  ;;  %v1560_v33 = vld [vmem:[%s6774_s9 + $0x50] sm:$0xff]  ;;  %v1554_v32 = vld [vmem:[%s6774_s9 + $0x20] sm:$0xff] }
 0x4ca   :  { %4150 = vmatmul.msk.f32.gmra.mxu0 %vm206_vm11, %v5318_v22  ;;  %v1606_v22 = vld [vmem:[%s6774_s9 + $0x1c0] sm:$0xff]  ;;  %1673 = vmatpush.msrb.mxu2 %v1560_v33  ;;  %v5629_v33 = vadd.s32 128, %v4836_v12 }
 0x4cb   :  { %1615 = vmatpush.msra.mxu0 %v1606_v22  ;;  %1638 = vmatpush.msrb.mxu1 %v1607_v31  ;;  %v1555_v22 = vld [vmem:[%s6774_s9 + $0x28] sm:$0xff]  ;;  %v1556_v31 = vld [vmem:[%s6774_s9 + $0x30] sm:$0xff] }
 0x4cc   :  { %1684 = vmatpush.msrb.mxu3 %v1609_v53  ;;  %1674 = vmatpush.msrb.mxu2 %v1556_v31  ;;  %vm1711_vm2 = vcmp.ge.s32.totalorder %v5629_v33, %v1709_v23 }
 0x4cd   :  { %1616 = vmatpush.msra.mxu0 %v1602_v34  ;;  %1639 = vmatpush.msrb.mxu1 %v1603_v36  ;;  %v1550_v34 = vld [vmem:[%s6774_s9] sm:$0xff]  ;;  %v1551_v36 = vld [vmem:[%s6774_s9 + $0x8] sm:$0xff] }
 0x4ce   :  { %1685 = vmatpush.msrb.mxu3 %v1605_v48  ;;  %v1553_v48 = vld [vmem:[%s6774_s9 + $0x18] sm:$0xff]  ;;  %1675 = vmatpush.msrb.mxu2 %v1552_v37 }
 0x4cf   :  { %1617 = vmatpush.msra.mxu0 %v1598_v57  ;;  %1640 = vmatpush.msrb.mxu1 %v1599_v38  ;;  %v974_v0 = vpop.f32.mrf.mxu1  ;;  %v1018_v57 = vadd.f32 %v5368_v35, %v5506_v30  ;;  %v4165_v35 = vld [vmem:[%s6767_s0 + $0x48] sm:$0xff]  ;;  %v1535_v30 = vpop.permute.xlu2 %1534 }
 0x4d0   :  { %4154 = vmatmul.msk.f32.gmra.mxu1 %vm206_vm11, %v5325_v47  ;;  %1686 = vmatpush.msrb.mxu3 %v1601_v56  ;;  %v1594_v47 = vld [vmem:[%s6774_s9 + $0x160] sm:$0xff] }
 0x4d1   :  { %1618 = vmatpush.msra.mxu0 %v1594_v47  ;;  %1641 = vmatpush.msrb.mxu1 %v1595_v39 }
 0x4d2   :  { %1687 = vmatpush.msrb.mxu3 %v1597_v42  ;;  %v5495_v7 = vpop.f32.mrf.mxu3  ;;  %v4166_v42 = vld [vmem:[%s6767_s0 + $0x50] sm:$0xff] }
 0x4d3   :  { %1619 = vmatpush.msra.mxu0 %v1590_v25  ;;  %1642 = vmatpush.msrb.mxu1 %v1591_v44  ;;  %v1085_v56 = vadd.f32 %v5495_v7, %v1018_v57  ;;  %v1021_v25 = vadd.f32 %v5378_v60, %v974_v0  ;;  %v1714_v0 = vadd.s32 256, %v1709_v23 }
 0x4d4   :  { %1688 = vmatpush.msrb.mxu3 %v1593_v62  ;;  %v4164_v62 = vld [vmem:[%s6767_s0 + $0x40] sm:$0xff] }
 0x4d5   :  { %1620 = vmatpush.msra.mxu0 %v1586_v20  ;;  %1643 = vmatpush.msrb.mxu1 %v1587_v4  ;;  %vm1715_vm1 = vcmp.lt.s32.totalorder %v4836_v12, %v1714_v0  ;;  %vm1716_vm3 = vcmp.lt.s32.totalorder %v5629_v33, %v1714_v0 }
 0x4d6   :  { %1689 = vmatpush.msrb.mxu3 %v1589_v16  ;;  %vm1719_vm5 = vmand %vm1710_vm15, %vm1715_vm1 }
 0x4d7   :  { %1621 = vmatpush.msra.mxu0 %v1582_v11  ;;  %1644 = vmatpush.msrb.mxu1 %v1583_v50  ;;  %v5647_v10 = vsel %vm1719_vm5, 1.0, %v5333_v15 }
 0x4d8   :  { %1690 = vmatpush.msrb.mxu3 %v1585_v54  ;;  %v1179_v38 = vpop.f32.mrf.mxu1  ;;  %6817 = vst [vmem:[#allocation3_spill] sm:$0xff] %v5647_v10 }
 0x4d9   :  { %1622 = vmatpush.msra.mxu0 %v1578_v55  ;;  %1645 = vmatpush.msrb.mxu1 %v1579_v6 }
 0x4da   :  { %1691 = vmatpush.msrb.mxu3 %v1581_v58  ;;  %v1082_v9 = vpop.f32.mrf.mxu3 }
 0x4db   :  { %1623 = vmatpush.msra.mxu0 %v1574_v40  ;;  %1646 = vmatpush.msrb.mxu1 %v1575_v18  ;;  %v1086_v52 = vadd.f32 %v1082_v9, %v1021_v25  ;;  %v4163_v9 = vld [vmem:[%s6769_s1 + $0x28] sm:$0xff] }
 0x4dc   :  { %1692 = vmatpush.msrb.mxu3 %v1577_v59  ;;  %v1141_v53 = vpop.f32.mrf.mxu0 }
 0x4dd   :  { %1624 = vmatpush.msra.mxu0 %v1570_v45  ;;  %1647 = vmatpush.msrb.mxu1 %v1571_v61  ;;  %v1147_v47 = vadd.f32 %v1141_v53, %v1085_v56 }
 0x4de   :  { %1693 = vmatpush.msrb.mxu3 %v1573_v1 }
 0x4df   :  { %1625 = vmatpush.msra.mxu0 %v1566_v2  ;;  %1648 = vmatpush.msrb.mxu1 %v1567_v3  ;;  %v1185_v44 = vadd.f32 %v1179_v38, %v1147_v47  ;;  %v1540_v2 = vpop.permute.xlu0 %1539  ;;  %v1741_v47 = vpop.permute.xlu1 %1740 }
 0x4e0   :  { %1694 = vmatpush.msrb.mxu3 %v1569_v14  ;;  %v1182_v20 = vpop.f32.mrf.mxu1  ;;  %v4162_v14 = vld [vmem:[%s6769_s1 + $0x20] sm:$0xff] }
 0x4e1   :  { %1626 = vmatpush.msra.mxu0 %v1562_v13  ;;  %1649 = vmatpush.msrb.mxu1 %v1563_v21  ;;  %v1252_v49 = vadd.f32 %v5384_v28, %v1185_v44  ;;  %v1903_v13 = vand.u32 255, %v4836_v12 }
 0x4e2   :  { %1695 = vmatpush.msrb.mxu3 %v1565_v24  ;;  %v1310_v46 = vpop.f32.mrf.mxu3 }
 0x4e3   :  { %1627 = vmatpush.msra.mxu0 %v1558_v27  ;;  %1650 = vmatpush.msrb.mxu1 %v1559_v29  ;;  %v1316_v60 = vadd.f32 %v1310_v46, %v1252_v49  ;;  %v1907_v21 = vand.u32 15, %v1903_v13  ;;  %vm1911_vm12 = vcmp.ge.s32.totalorder %v1903_v13, 16 }
 0x4e4   :  { %1696 = vmatpush.msrb.mxu3 %v1561_v43  ;;  %v1144_v39 = vpop.f32.mrf.mxu0  ;;  %v1915_v24 = vsel %vm1911_vm12, 1.0, %v5333_v15  ;;  %v5632_v43 = vadd.s32 256, %v4836_v12 }
 0x4e5   :  { %1628 = vmatpush.msra.mxu0 %v1554_v32  ;;  %1651 = vmatpush.msrb.mxu1 %v1555_v22  ;;  %v1148_v16 = vadd.f32 %v1144_v39, %v1086_v52  ;;  %vm1927_vm13 = vcmp.ge.s32.totalorder %v1907_v21, 1  ;;  %v5635_v32 = vadd.s32 384, %v4836_v12  ;;  %v1904_v22 = vand.u32 255, %v5629_v33 }
 0x4e6   :  { %1697 = vmatpush.msrb.mxu3 %v1557_v26  ;;  %v5625_v27 = vsel %vm1927_vm13, 1.0, %v5333_v15  ;;  %vm1712_vm7 = vcmp.ge.s32.totalorder %v5632_v43, %v1709_v23  ;;  %vm1720_vm13 = vmand %vm1711_vm2, %vm1716_vm3  ;;  %vm1935_vm5 = vcmp.lt.s32.totalorder %v1907_v21, 15 }
 0x4e7   :  { %1629 = vmatpush.msra.mxu0 %v1550_v34  ;;  %1652 = vmatpush.msrb.mxu1 %v1551_v36  ;;  %v1186_v50 = vadd.f32 %v1182_v20, %v1148_v16  ;;  %v1960_v29 = vmul.f32 %v5625_v27, %v1915_v24  ;;  %vm1718_vm12 = vcmp.lt.s32.totalorder %v5635_v32, %v1714_v0  ;;  %v5653_v12 = vsel %vm1720_vm13, 1.0, %v5333_v15 }
 0x4e8   :  { %1698 = vmatpush.msrb.mxu3 %v1553_v48  ;;  %6818 = vst [vmem:[#allocation4_spill] sm:$0xff] %v5653_v12  ;;  %4175 = vmatpush.msk.msra.mxu2 %vm114_vm4, %v5653_v12  ;;  %v1908_v26 = vand.u32 15, %v1904_v22  ;;  %v4482_v34 = vpack.i.bf16 1.0, %v1915_v24  ;;  %v5681_v57 = vsel %vm1935_vm5, 1.0, %v5333_v15  ;;  %vm2207_vm13 = vcmask 138240  }
 0x4e9   :  { %1766 = vmatpush.msrb.mxu0 %v4167_v41  ;;  %v1253_v55 = vadd.f32 %v5386_v5, %v1186_v50  ;;  %1968 = vrot.lane.b32.xlu1 %v1960_v29, %s4745_s22  ;;  %v2329_v38 = vmul.f32 %v5681_v57, %v1915_v24 }
 0x4ea   :  { %v1313_v4 = vpop.f32.mrf.mxu3  ;;  %4172 = vmatpush.msk.msra.mxu1 %vm114_vm4, %v5647_v10  ;;  %vm1936_vm2 = vcmp.lt.s32.totalorder %v1908_v26, 15  ;;  %4483 = vrot.lane.b32.xlu0 %v4482_v34, %s4747_s11  ;;  %vm1928_vm3 = vcmp.ge.s32.totalorder %v1908_v26, 1 }
 0x4eb   :  { %1767 = vmatpush.msrb.mxu0 %v4166_v42  ;;  %v1317_v40 = vadd.f32 %v1313_v4, %v1253_v55  ;;  %v5670_v36 = vsel %vm1936_vm2, 1.0, %v5333_v15  ;;  %v5676_v37 = vsel %vm1928_vm3, 1.0, %v5333_v15  ;;  %v1746_v42 = vpop.permute.xlu2 %1745 }
 0x4ec   :  { %v4497_v48 = vpack.i.bf16 %v5676_v37, %v5625_v27  ;;  %1970 = vrot.lane.b32.xlu2 %v5676_v37, %s4745_s22 }
 0x4ed   :  { %1768 = vmatpush.msrb.mxu0 %v4165_v35 }
 0x4ef   :  { %1769 = vmatpush.msrb.mxu0 %v4164_v62 }
 0x4f1   :  { %2339 = vrot.lane.b32.xlu1 %v5670_v36, %s4746_s23 }
 0x4f2   :  { %2337 = vrot.lane.b32.xlu0 %v2329_v38, %s4746_s23 }
 0x4f9   :  { %4498 = vrot.lane.b32.xlu1 %v4497_v48, %s4737_s3 }
 0x509   :  { %v1521_v54 = vpop.f32.mrf.mxu3 }
 0x511   :  { %v1524_v63 = vpop.f32.mrf.mxu3 }
 0x53f   :  { %v1373_v11 = vpop.f32.mrf.mxu0 }
 0x540   :  { %v1379_v51 = vadd.f32 %v1373_v11, %v1316_v60 }
 0x545   :  { %v1437_v7 = vpop.f32.mrf.mxu1 }
 0x546   :  { %v1443_v6 = vadd.f32 %v1437_v7, %v1379_v51 }
 0x547   :  { %v1376_v58 = vpop.f32.mrf.mxu0 }
 0x548   :  { %v1527_v17 = vmul.f32 %v1521_v54, %v1443_v6  ;;  %v1380_v19 = vadd.f32 %v1376_v58, %v1317_v40  ;;  %v5723_v58 = vpop.permute.xlu2 %1970 }
 0x54a   :  { %v1542_v18 = vadd.f32 %v1535_v30, %v1527_v17 }
 0x54c   :  { %vm1544_vm8 = vcmp.ge.f32.partialorder %v1542_v18, 0.0  ;;  %v1546_v59 = vmul.f32 0.2, %v1542_v18 }
 0x54d   :  { %v1440_v28 = vpop.f32.mrf.mxu1 }
 0x54e   :  { %v1444_v45 = vadd.f32 %v1440_v28, %v1380_v19  ;;  %v1548_v61 = vsel %vm1544_vm8, %v1542_v18, %v1546_v59  ;;  %vm1717_vm8 = vcmp.lt.s32.totalorder %v5632_v43, %v1714_v0 }
 0x54f   :  { %1630 = vmatmul.f32.vlgmr.msra.gmra.mxu0 %v1548_v61  ;;  %1653 = vmatmul.f32.vlgmr.msrb.gmra.mxu1 %v1548_v61  ;;  %vm1721_vm15 = vmand %vm1712_vm7, %vm1717_vm8  ;;  %vm2014_vm7 = vcmask 916480   ;;  %vm1976_vm8 = vcmask 908288  }
 0x550   :  { %v1528_v1 = vmul.f32 %v1524_v63, %v1444_v45  ;;  %1676 = vmatmul.f32.vlgmr.msrb.gmra.mxu2 %v1548_v61  ;;  %1699 = vmatmul.f32.vlgmr.msrb.gmra.mxu3 %v1548_v61  ;;  %v5658_v31 = vsel %vm1721_vm15, 1.0, %v5333_v15  ;;  %vm2394_vm15 = vcmask 121856  }
 0x551   :  { %4178 = vmatpush.msk.msra.mxu3 %vm114_vm4, %v5658_v31 }
 0x552   :  { %v1543_v5 = vadd.f32 %v1540_v2, %v1528_v1 }
 0x554   :  { %vm1545_vm10 = vcmp.ge.f32.partialorder %v1543_v5, 0.0  ;;  %v1547_v3 = vmul.f32 0.2, %v1543_v5 }
 0x556   :  { %v1549_v8 = vsel %vm1545_vm10, %v1543_v5, %v1547_v3  ;;  %vm1713_vm10 = vcmp.ge.s32.totalorder %v5635_v32, %v1709_v23 }
 0x557   :  { %1633 = vmatmul.f32.gmra.mxu0 %v1549_v8  ;;  %1656 = vmatmul.f32.gmra.mxu1 %v1549_v8  ;;  %vm1722_vm1 = vmand %vm1713_vm10, %vm1718_vm12  ;;  %vm2345_vm10 = vcmask 924672   ;;  %vm1920_vm12 = vcmp.lt.s32.totalorder %v1904_v22, 240 }
 0x558   :  { %1679 = vmatmul.f32.gmra.mxu2 %v1549_v8  ;;  %1702 = vmatmul.f32.gmra.mxu3 %v1549_v8  ;;  %v5665_v53 = vsel %vm1722_vm1, 1.0, %v5333_v15 }
 0x559   :  { %6819 = vst [vmem:[#allocation5_spill] sm:$0xff] %v5665_v53  ;;  %4181 = vmatpush.msk.msra.mxu0 %vm114_vm4, %v5665_v53 }
 0x55b   :  { %v1969_v20 = vpop.permute.xlu1 %1968 }
 0x55c   :  { %v5708_v49 = vpop.permute.xlu0 %4483  ;;  %v1977_v59 = vsel %vm1976_vm8, %v1969_v20, %v5723_v58  ;;  %v1985_v2 = vmul.f32 %v5333_v15, %v1969_v20 }
 0x55d   :  { %v4486_v16 = vunpack.i.h.bf16 %v5708_v49  ;;  %v4485_v11 = vunpack.i.l.bf16 %v5708_v49 }
 0x55f   :  { %4170 = vmatmul.msk.f32.vlgmr.msrb.gmra.mxu0 %vm77_vm0, %v4162_v14  ;;  %v2015_v7 = vsel %vm2014_vm7, %v4485_v11, %v4486_v16  ;;  %v2023_v17 = vmul.f32 %v5333_v15, %v4485_v11 }
 0x563   :  { %v5712_v51 = vpop.permute.xlu1 %2339 }
 0x564   :  { %v2338_v61 = vpop.permute.xlu0 %2337 }
 0x565   :  { %v2346_v13 = vsel %vm2345_vm10, %v2338_v61, %v5712_v51  ;;  %v2354_v21 = vmul.f32 %v5333_v15, %v2338_v61 }
 0x567   :  { %4171 = vmatmul.msk.f32.gmra.mxu0 %vm77_vm0, %v4163_v9 }
 0x56b   :  { %v5735_v5 = vpop.permute.xlu1 %4498 }
 0x56c   :  { %v6790_v29 = vunpack.i.h.bf16 %v5735_v5  ;;  %v4500_v0 = vunpack.i.l.bf16 %v5735_v5 }
 0x5cc   :  { %v1631_v46 = vpop.f32.mrf.mxu0  ;;  %v1654_v35 = vpop.f32.mrf.mxu1 }
 0x5d3   :  { %v1677_v52 = vpop.f32.mrf.mxu2  ;;  %v1700_v62 = vpop.f32.mrf.mxu3 }
 0x5d4   :  { %v1634_v56 = vpop.f32.mrf.mxu0  ;;  %v1657_v4 = vpop.f32.mrf.mxu1 }
 0x5db   :  { %v1680_v60 = vpop.f32.mrf.mxu2  ;;  %v1703_v50 = vpop.f32.mrf.mxu3 }
 0x5dc   :  { %v1771_v39 = vpop.f32.mrf.mxu0 }
 0x5dd   :  { %v5688_v41 = vadd.f32 %v1771_v39, %v1741_v47  ;;  %v2536_v47 = vsel %vm1218_vm6, %v4500_v0, %v6790_v29 }
 0x5df   :  { %4173 = vmatmul.msk.f32.vlgmr.msra.gmra.mxu1 %vm107_vm9, %v5688_v41  ;;  %4176 = vmatmul.msk.f32.vlgmr.msra.gmra.mxu2 %vm107_vm9, %v5688_v41 }
 0x5e0   :  { %4179 = vmatmul.msk.f32.vlgmr.msra.gmra.mxu3 %vm107_vm9, %v5688_v41  ;;  %4182 = vmatmul.msk.f32.vlgmr.msra.gmra.mxu0 %vm107_vm9, %v5688_v41 }
 0x5e4   :  { %v1774_v25 = vpop.f32.mrf.mxu0 }
 0x5e5   :  { %v5698_v44 = vadd.f32 %v1774_v25, %v1746_v42 }
 0x5e7   :  { %4174 = vmatmul.msk.f32.gmra.mxu1 %vm107_vm9, %v5698_v44  ;;  %4177 = vmatmul.msk.f32.gmra.mxu2 %vm107_vm9, %v5698_v44 }
 0x5e8   :  { %4180 = vmatmul.msk.f32.gmra.mxu3 %vm107_vm9, %v5698_v44  ;;  %4183 = vmatmul.msk.f32.gmra.mxu0 %vm107_vm9, %v5698_v44 }
 0x65c   :  { %v1812_v54 = vpop.f32.mrf.mxu1 }
 0x65d   :  { %v5717_v55 = vmul.f32 %v1812_v54, %v1631_v46  ;;  %v1881_v6 = vpop.f32.mrf.mxu0 }
 0x65e   :  { %v5720_v30 = vmul.f32 %v1881_v6, %v1700_v62 }
 0x65f   :  { %1895 = vst [vmem:[#allocation2 + $0x8] sm:$0xff] %v5717_v55  ;;  %v2024_v40 = vmul.f32 %v2015_v7, %v5717_v55  ;;  %v1986_v14 = vmul.f32 %v1977_v59, %v5717_v55  ;;  %v2355_v11 = vmul.f32 %v2346_v13, %v5717_v55  ;;  %v2545_v33 = vmul.f32 %v2536_v47, %v5717_v55 }
 0x660   :  { %1898 = vst [vmem:[#allocation2 + $0x20] sm:$0xff] %v5720_v30 }
 0x661   :  { %v4492_v18 = vpack.i.bf16 %v2024_v40, %v2023_v17  ;;  %v4507_v26 = vpack.i.bf16 %v1986_v14, %v1985_v2 }
 0x662   :  { %v1835_v19 = vpop.f32.mrf.mxu2 }
 0x663   :  { %v5729_v28 = vmul.f32 %v1835_v19, %v1654_v35  ;;  %v1858_v45 = vpop.f32.mrf.mxu3  ;;  %4493 = vrot.lane.b32.xlu0 %v4492_v18, %s4748_s13  ;;  %v4522_v35 = vpack.i.bf16 %v5670_v36, %v5681_v57 }
 0x664   :  { %v5732_v63 = vmul.f32 %v1858_v45, %v1677_v52  ;;  %v1815_v1 = vpop.f32.mrf.mxu1  ;;  %v2549_v52 = vmul.f32 %v5333_v15, %v4500_v0  ;;  %v5808_v45 = vld [vmem:[%s6771_s4 + $0x130] sm:$0xff]  ;;  %v5831_v0 = vld [vmem:[%s6771_s4 + $0x138] sm:$0xff] }
 0x665   :  { %v5737_v3 = vmul.f32 %v1815_v1, %v1634_v56  ;;  %v1884_v8 = vpop.f32.mrf.mxu0 }
 0x666   :  { %1897 = vst [vmem:[#allocation2 + $0x18] sm:$0xff] %v5732_v63  ;;  %v5741_v9 = vmul.f32 %v1884_v8, %v1703_v50  ;;  %v4517_v50 = vpack.i.bf16 %v2355_v11, %v2354_v21  ;;  %v4527_v22 = vpack.i.bf16 %v2545_v33, %v2549_v52 }
 0x667   :  { %1899 = vst [vmem:[#allocation2 + $0x38] sm:$0xff] %v5737_v3  ;;  %v2360_v23 = vmul.f32 %v2346_v13, %v5737_v3  ;;  %v2029_v24 = vmul.f32 %v2015_v7, %v5737_v3  ;;  %v2550_v42 = vmul.f32 %v2536_v47, %v5737_v3  ;;  %v1991_v25 = vmul.f32 %v1977_v59, %v5737_v3 }
 0x668   :  { %1902 = vst [vmem:[#allocation2 + $0x50] sm:$0xff] %v5741_v9 }
 0x669   :  { %v4512_v34 = vpack.i.bf16 %v2360_v23, %v2354_v21  ;;  %v4487_v48 = vpack.i.bf16 %v2029_v24, %v2023_v17  ;;  %v4532_v62 = vpack.i.bf16 %v2550_v42, %v2549_v52  ;;  %v4502_v20 = vpack.i.bf16 %v1991_v25, %v1985_v2 }
 0x66a   :  { %v1838_v38 = vpop.f32.mrf.mxu2 }
 0x66b   :  { %v5752_v46 = vmul.f32 %v1838_v38, %v1657_v4  ;;  %v1861_v56 = vpop.f32.mrf.mxu3  ;;  %4508 = vrot.lane.b32.xlu0 %v4507_v26, %s4749_s24  ;;  %4513 = vrot.lane.b32.xlu1 %v4512_v34, %s4750_s25  ;;  %v5774_v4 = vsel %vm1920_vm12, 1.0, %v5333_v15  ;;  %v6791_v15 = vmov 1.0  }
 0x66c   :  { %v5759_v39 = vmul.f32 %v1861_v56, %v1680_v60  ;;  %4488 = vrot.lane.b32.xlu2 %v4487_v48, %s4748_s13  ;;  %v3026_v60 = vmul.f32 %v5676_v37, %v5774_v4  ;;  %v4537_v54 = vpack.i.bf16 %v5774_v4, %v6791_v15 }
 0x66e   :  { %1901 = vst [vmem:[#allocation2 + $0x48] sm:$0xff] %v5759_v39 }
 0x673   :  { %4523 = vrot.lane.b32.xlu0 %v4522_v35, %s4731_s29  ;;  %4533 = vrot.lane.b32.xlu1 %v4532_v62, %s4731_s29 }
 0x674   :  { %4503 = vrot.lane.b32.xlu2 %v4502_v20, %s4749_s24 }
 0x67b   :  { %3033 = vrot.lane.b32.xlu0 %v5625_v27, %s4750_s25  ;;  %3035 = vrot.lane.b32.xlu1 %v3026_v60, %s4750_s25 }
 0x67c   :  { %4518 = vrot.lane.b32.xlu2 %v4517_v50, %s4750_s25  ;;  %v5861_v50 = vld [vmem:[%s6771_s4 + $0x120] sm:$0xff] }
 0x684   :  { %4528 = vrot.lane.b32.xlu2 %v4527_v22, %s4731_s29 }
 0x68c   :  { %4538 = vrot.lane.b32.xlu2 %v4537_v54, %s4748_s13 }
 0x694   :  { %3415 = vrot.lane.b32.xlu2 %v5681_v57, %s4749_s24 }
 0x6c6   :  { %v5790_v37 = vpop.permute.xlu2 %4488 }
 0x6c7   :  { %v6787_v27 = vunpack.i.h.bf16 %v5790_v37  ;;  %v4490_v7 = vunpack.i.l.bf16 %v5790_v37 }
 0x6c9   :  { %v2067_v6 = vsel %vm206_vm11, %v4490_v7, %v6787_v27 }
 0x6ca   :  { %2099 = vmatpush.msrb.mxu1 %v2067_v6 }
 0x6ce   :  { %v5797_v17 = vpop.permute.xlu2 %4503 }
 0x6cf   :  { %v6784_v18 = vunpack.i.h.bf16 %v5797_v17  ;;  %v4505_v19 = vunpack.i.l.bf16 %v5797_v17 }
 0x6d1   :  { %v2212_v2 = vsel %vm2207_vm13, %v4505_v19, %v6784_v18 }
 0x6d5   :  { %v5799_v40 = vpop.permute.xlu0 %4493 }
 0x6d6   :  { %v6786_v57 = vunpack.i.h.bf16 %v5799_v40  ;;  %v4495_v59 = vunpack.i.l.bf16 %v5799_v40  ;;  %v5813_v1 = vpop.permute.xlu2 %4518 }
 0x6d7   :  { %v6780_v26 = vunpack.i.h.bf16 %v5813_v1  ;;  %v4520_v34 = vunpack.i.l.bf16 %v5813_v1 }
 0x6d8   :  { %v2063_v61 = vsel %vm206_vm11, %v4495_v59, %v6786_v57 }
 0x6d9   :  { %2100 = vmatpush.msrb.mxu1 %v2063_v61  ;;  %v2395_v47 = vsel %vm2394_vm15, %v4520_v34, %v6780_v26 }
 0x6da   :  { %4188 = vmatmul.msk.f32.vlgmr.msrb.gmra.mxu1 %vm206_vm11, %v5808_v45 }
 0x6db   :  { %2244 = vmatpush.msra.mxu1 %v2212_v2 }
 0x6dd   :  { %v5820_v8 = vpop.permute.xlu0 %4508  ;;  %v5822_v14 = vpop.permute.xlu1 %4513 }
 0x6de   :  { %v6782_v13 = vunpack.i.h.bf16 %v5820_v8  ;;  %v4510_v21 = vunpack.i.l.bf16 %v5820_v8  ;;  %v6781_v23 = vunpack.i.h.bf16 %v5822_v14  ;;  %v4515_v24 = vunpack.i.l.bf16 %v5822_v14  ;;  %v5843_v56 = vpop.permute.xlu2 %4528 }
 0x6df   :  { %v6778_v11 = vunpack.i.h.bf16 %v5843_v56  ;;  %v4530_v60 = vunpack.i.l.bf16 %v5843_v56 }
 0x6e0   :  { %v2208_v48 = vsel %vm2207_vm13, %v4510_v21, %v6782_v13  ;;  %v2399_v38 = vsel %vm2394_vm15, %v4515_v24, %v6781_v23 }
 0x6e1   :  { %2245 = vmatpush.msra.mxu1 %v2208_v48  ;;  %v2584_v2 = vsel %vm373_vm14, %v4530_v60, %v6778_v11  ;;  %v5986_v11 = vld [vmem:[%s6771_s4 + $0x170] sm:$0xff] }
 0x6e2   :  { %4189 = vmatmul.msk.f32.gmra.mxu1 %vm206_vm11, %v5831_v0 }
 0x6e3   :  { %2431 = vmatpush.msrb.mxu1 %v2399_v38 }
 0x6e5   :  { %2432 = vmatpush.msrb.mxu1 %v2395_v47  ;;  %v5848_v42 = vpop.permute.xlu0 %4523  ;;  %v5850_v25 = vpop.permute.xlu1 %4533 }
 0x6e6   :  { %v6789_v35 = vunpack.i.h.bf16 %v5848_v42  ;;  %v4525_v52 = vunpack.i.l.bf16 %v5848_v42  ;;  %v6779_v62 = vunpack.i.h.bf16 %v5850_v25  ;;  %v4535_v20 = vunpack.i.l.bf16 %v5850_v25  ;;  %v5881_v34 = vpop.permute.xlu2 %4538 }
 0x6e8   :  { %v2848_v33 = vsel %vm373_vm14, %v4525_v52, %v6789_v35  ;;  %v2588_v22 = vsel %vm373_vm14, %v4535_v20, %v6779_v62  ;;  %v2861_v54 = vmul.f32 %v4525_v52, %v5737_v3  ;;  %v2856_v7 = vmul.f32 %v4525_v52, %v5717_v55  ;;  %v5891_v52 = vld [vmem:[%s6771_s4 + $0x128] sm:$0xff] }
 0x6e9   :  { %v2862_v6 = vmul.f32 %v2848_v33, %v5752_v46  ;;  %v2857_v19 = vmul.f32 %v2848_v33, %v5729_v28  ;;  %v1905_v33 = vand.u32 255, %v5632_v43 }
 0x6ea   :  { %4196 = vmatmul.msk.f32.vlgmr.msra.gmra.mxu1 %vm206_vm11, %v5861_v50 }
 0x6eb   :  { %2620 = vmatpush.msra.mxu1 %v2588_v22  ;;  %v4547_v59 = vpack.i.bf16 %v2862_v6, %v2861_v54  ;;  %v4542_v61 = vpack.i.bf16 %v2857_v19, %v2856_v7  ;;  %v6788_v22 = vunpack.i.h.bf16 %v5881_v34  ;;  %v4540_v54 = vunpack.i.l.bf16 %v5881_v34 }
 0x6ec   :  { %v3408_v6 = vmul.f32 %v5670_v36, %v5774_v4  ;;  %vm1913_vm1 = vcmp.ge.s32.totalorder %v1905_v33, 16  ;;  %v1909_v4 = vand.u32 15, %v1905_v33  ;;  %v5933_v33 = vld [vmem:[%s6771_s4 + $0x148] sm:$0xff] }
 0x6ed   :  { %2621 = vmatpush.msra.mxu1 %v2584_v2  ;;  %v3034_v21 = vpop.permute.xlu0 %3033  ;;  %4548 = vrot.lane.b32.xlu0 %v4547_v59, %s4737_s3  ;;  %v5879_v24 = vpop.permute.xlu1 %3035  ;;  %v3230_v43 = vsel %vm206_vm11, %v4540_v54, %v6788_v22  ;;  %v5911_v59 = vld [vmem:[%s6771_s4 + $0x140] sm:$0xff]  ;;  %v3243_v36 = vmul.f32 %v4540_v54, %v5737_v3 }
 0x6ee   :  { %v3049_v48 = vmul.f32 %v3034_v21, %v5717_v55  ;;  %4543 = vrot.lane.b32.xlu1 %v4542_v61, %s4737_s3  ;;  %v3041_v38 = vsel %vm2394_vm15, %v3034_v21, %v5879_v24  ;;  %v3054_v20 = vmul.f32 %v3034_v21, %v5737_v3  ;;  %v5914_v61 = vld [vmem:[#allocation2] sm:$0xff]  ;;  %v3238_v21 = vmul.f32 %v4540_v54, %v5717_v55 }
 0x6ef   :  { %v3050_v47 = vmul.f32 %v3041_v38, %v5729_v28  ;;  %v3055_v60 = vmul.f32 %v3041_v38, %v5752_v46  ;;  %v1917_v2 = vsel %vm1913_vm1, 1.0, %v5914_v61  ;;  %v3239_v38 = vmul.f32 %v3230_v43, %v5729_v28 }
 0x6f0   :  { %vm1929_vm2 = vcmp.ge.s32.totalorder %v1909_v4, 1  ;;  %vm1937_vm3 = vcmp.lt.s32.totalorder %v1909_v4, 15  ;;  %v5968_v4 = vld [vmem:[%s6771_s4 + $0x168] sm:$0xff] }
 0x6f1   :  { %v4557_v7 = vpack.i.bf16 %v3050_v47, %v3049_v48  ;;  %v4552_v19 = vpack.i.bf16 %v3055_v60, %v3054_v20  ;;  %v3244_v48 = vmul.f32 %v3230_v43, %v5752_v46  ;;  %v4562_v47 = vpack.i.bf16 %v3243_v36, %v1917_v2  ;;  %v5954_v43 = vld [vmem:[%s6771_s4 + $0x158] sm:$0xff]  ;;  %v5961_v36 = vld [vmem:[%s6771_s4 + $0x160] sm:$0xff] }
 0x6f2   :  { %4197 = vmatmul.msk.f32.gmra.mxu1 %vm206_vm11, %v5891_v52  ;;  %v5928_v60 = vsel %vm1929_vm2, 1.0, %v5914_v61 }
 0x6f3   :  { %4558 = vrot.lane.b32.xlu2 %v4557_v7, %s4746_s23  ;;  %v4567_v20 = vpack.i.bf16 %v3238_v21, %v3244_v48  ;;  %v1962_v54 = vmul.f32 %v5928_v60, %v1917_v2  ;;  %v5940_v7 = vsel %vm1937_vm3, 1.0, %v5914_v61 }
 0x6f5   :  { %3417 = vrot.lane.b32.xlu0 %v3408_v6, %s4749_s24  ;;  %v2331_v6 = vmul.f32 %v5940_v7, %v1917_v2  ;;  %v3416_v2 = vpop.permute.xlu2 %3415 }
 0x6f6   :  { %4553 = vrot.lane.b32.xlu1 %v4552_v19, %s4746_s23  ;;  %v5947_v19 = vld [vmem:[%s6771_s4 + $0x150] sm:$0xff]  ;;  %v3431_v23 = vmul.f32 %v3416_v2, %v5717_v55 }
 0x6f7   :  { %v2520_v10 = vmul.f32 %v5947_v19, %v5947_v19 }
 0x6fa   :  { %4206 = vmatmul.msk.f32.vlgmr.msrb.gmra.mxu1 %vm206_vm11, %v5911_v59 }
 0x6fb   :  { %2733 = vmatpush.msrb.mxu1 %v5737_v3  ;;  %3260 = vrot.lane.b32.xlu2 %v3239_v38, %s4747_s11 }
 0x6fd   :  { %2734 = vmatpush.msrb.mxu1 %v5717_v55  ;;  %4563 = vrot.lane.b32.xlu0 %v4562_v47, %s4747_s11 }
 0x6fe   :  { %4568 = vrot.lane.b32.xlu1 %v4567_v20, %s4747_s11 }
 0x702   :  { %4207 = vmatmul.msk.f32.gmra.mxu1 %vm206_vm11, %v5933_v33 }
 0x705   :  { %1972 = vrot.lane.b32.xlu0 %v1962_v54, %s4745_s22 }
 0x70a   :  { %4216 = vmatmul.msk.f32.vlgmr.msra.gmra.mxu1 %vm206_vm11, %v5947_v19 }
 0x70d   :  { %2341 = vrot.lane.b32.xlu0 %v2331_v6, %s4746_s23 }
 0x712   :  { %4217 = vmatmul.msk.f32.gmra.mxu1 %vm206_vm11, %v5954_v43 }
 0x71a   :  { %4226 = vmatmul.msk.f32.vlgmr.msrb.gmra.mxu1 %vm206_vm11, %v5961_v36 }
 0x722   :  { %4227 = vmatmul.msk.f32.gmra.mxu1 %vm206_vm11, %v5968_v4 }
 0x74d   :  { %v5991_v26 = vpop.permute.xlu2 %4558 }
 0x75f   :  { %v5972_v21 = vpop.permute.xlu0 %4548 }
 0x760   :  { %v6783_v48 = vunpack.i.h.bf16 %v5972_v21  ;;  %v4550_v38 = vunpack.i.l.bf16 %v5972_v21  ;;  %v5976_v47 = vpop.permute.xlu1 %4543 }
 0x761   :  { %v6785_v20 = vunpack.i.h.bf16 %v5976_v47  ;;  %v4545_v54 = vunpack.i.l.bf16 %v5976_v47 }
 0x762   :  { %v2900_v6 = vsel %vm1218_vm6, %v4550_v38, %v6783_v48  ;;  %v3436_v38 = vmul.f32 %v3416_v2, %v5737_v3  ;;  %v4560_v48 = vunpack.i.l.bf16 %v5991_v26 }
 0x763   :  { %2932 = vmatpush.msra.mxu1 %v2900_v6  ;;  %v2896_v62 = vsel %vm1218_vm6, %v4545_v54, %v6785_v20  ;;  %v6794_v6 = vunpack.i.h.bf16 %v5991_v26 }
 0x765   :  { %2933 = vmatpush.msra.mxu1 %v2896_v62 }
 0x766   :  { %4236 = vmatmul.msk.f32.vlgmr.msra.gmra.mxu1 %vm206_vm11, %v5986_v11 }
 0x767   :  { %v5996_v13 = vpop.permute.xlu0 %3417 }
 0x768   :  { %v3423_v18 = vsel %vm2207_vm13, %v3416_v2, %v5996_v13  ;;  %v6003_v54 = vpop.permute.xlu1 %4553  ;;  %v3089_v2 = vsel %vm2345_vm10, %v4560_v48, %v6794_v6  ;;  %v1998_v6 = vmul.f32 %v5808_v45, %v5808_v45 }
 0x769   :  { %v3432_v62 = vmul.f32 %v3423_v18, %v5729_v28  ;;  %v3437_v20 = vmul.f32 %v3423_v18, %v5752_v46  ;;  %v6795_v57 = vunpack.i.h.bf16 %v6003_v54  ;;  %v4555_v55 = vunpack.i.l.bf16 %v6003_v54 }
 0x76b   :  { %v3093_v3 = vsel %vm2345_vm10, %v4555_v55, %v6795_v57  ;;  %v4572_v27 = vpack.i.bf16 %v3437_v20, %v3436_v38  ;;  %v4577_v22 = vpack.i.bf16 %v3432_v62, %v3431_v23  ;;  %v6035_v62 = vpop.permute.xlu2 %3260  ;;  %v1946_v57 = vmul.f32 %v5861_v50, %v5861_v50 }
 0x76c   :  { %3125 = vmatpush.msrb.mxu1 %v3093_v3  ;;  %6820 = vst [vmem:[#allocation6_spill] sm:$0xff] %v6035_v62 }
 0x76d   :  { %4573 = vrot.lane.b32.xlu1 %v4572_v27, %s4745_s22  ;;  %4578 = vrot.lane.b32.xlu2 %v4577_v22, %s4745_s22 }
 0x76e   :  { %3126 = vmatpush.msrb.mxu1 %v3089_v2 }
 0x76f   :  { %v6017_v18 = vpop.permute.xlu0 %4563 }
 0x770   :  { %v4566_v35 = vunpack.i.h.bf16 %v6017_v18  ;;  %v6797_v29 = vunpack.i.l.bf16 %v6017_v18  ;;  %v6021_v15 = vpop.permute.xlu1 %4568 }
 0x771   :  { %v4571_v23 = vunpack.i.h.bf16 %v6021_v15  ;;  %v6793_v20 = vunpack.i.l.bf16 %v6021_v15 }
 0x772   :  { %v2016_v27 = vsel %vm2014_vm7, %v4486_v16, %v6797_v29 }
 0x773   :  { %v3282_v22 = vsel %vm2014_vm7, %v4566_v35, %v6793_v20  ;;  %v2025_v48 = vmul.f32 %v2016_v27, %v5729_v28  ;;  %v2030_v38 = vmul.f32 %v2016_v27, %v5752_v46  ;;  %v3278_v55 = vsel %vm2014_vm7, %v4571_v23, %v6035_v62 }
 0x774   :  { %3314 = vmatpush.msra.mxu1 %v3282_v22 }
 0x775   :  { %2532 = vrot.lane.b32.xlu2 %v5928_v60, %s4737_s3  ;;  %v4582_v49 = vpack.i.bf16 %v2025_v48, %v2030_v38 }
 0x776   :  { %3315 = vmatpush.msra.mxu1 %v3278_v55  ;;  %v6822_v55 = vmov 1.0  }
 0x777   :  { %v6041_v16 = vpop.permute.xlu0 %1972  ;;  %4583 = vrot.lane.b32.xlu1 %v4582_v49, %s4748_s13  ;;  %v6796_v49 = vand.u32 255, %v5635_v32 }
 0x778   :  { %v1978_v35 = vsel %vm1976_vm8, %v5723_v58, %v6041_v16 }
 0x779   :  { %v1987_v3 = vmul.f32 %v1978_v35, %v5729_v28  ;;  %v1992_v2 = vmul.f32 %v1978_v35, %v5752_v46 }
 0x77b   :  { %v4587_v27 = vpack.i.bf16 %v1987_v3, %v1992_v2  ;;  %v6096_v3 = vld [vmem:[%s6771_s4 + $0x188] sm:$0xff]  ;;  %v6103_v2 = vld [vmem:[%s6771_s4 + $0x190] sm:$0xff] }
 0x77d   :  { %4588 = vrot.lane.b32.xlu0 %v4587_v27, %s4749_s24  ;;  %2844 = vrot.lane.b32.xlu2 %v5940_v7, %s4731_s29 }
 0x77f   :  { %v6052_v23 = vpop.permute.xlu0 %2341 }
 0x780   :  { %6821 = vst [vmem:[#allocation7_spill] sm:$0xff] %v6052_v23  ;;  %v2347_v22 = vsel %vm2345_vm10, %v5712_v51, %v6052_v23  ;;  %v6069_v51 = vand.u32 15, %v6796_v49 }
 0x781   :  { %v2356_v48 = vmul.f32 %v2347_v22, %v5729_v28  ;;  %v2361_v58 = vmul.f32 %v2347_v22, %v5752_v46 }
 0x782   :  { %vm1930_vm5 = vcmp.ge.s32.totalorder %v6069_v51, 1  ;;  %vm1938_vm12 = vcmp.lt.s32.totalorder %v6069_v51, 15 }
 0x783   :  { %v4592_v38 = vpack.i.bf16 %v2356_v48, %v2361_v58  ;;  %v6075_v35 = vsel %vm1930_vm5, 1.0, %v5914_v61  ;;  %v6825_v48 = vunpack.i.h.bf16 %v5735_v5  ;;  %v6826_v5 = vunpack.i.h.bf16 %v5848_v42 }
 0x785   :  { %4593 = vrot.lane.b32.xlu1 %v4592_v38, %s4750_s25  ;;  %3226 = vrot.lane.b32.xlu2 %v6822_v55, %s4748_s13 }
 0x78d   :  { %3037 = vrot.lane.b32.xlu1 %v5928_v60, %s4750_s25  ;;  %2012 = vrot.lane.b32.xlu2 %v6822_v55, %s4747_s11  ;;  %v6082_v60 = vld [vmem:[%s6771_s4 + $0x178] sm:$0xff] }
 0x78e   :  { %4237 = vmatmul.msk.f32.gmra.mxu1 %vm206_vm11, %v6082_v60 }
 0x795   :  { %3419 = vrot.lane.b32.xlu1 %v5940_v7, %s4749_s24  ;;  %v6089_v7 = vld [vmem:[%s6771_s4 + $0x180] sm:$0xff] }
 0x796   :  { %4246 = vmatmul.msk.f32.vlgmr.msrb.gmra.mxu1 %vm206_vm11, %v6089_v7 }
 0x79d   :  { %1974 = vrot.lane.b32.xlu1 %v6075_v35, %s4745_s22 }
 0x79e   :  { %4247 = vmatmul.msk.f32.gmra.mxu1 %vm206_vm11, %v6096_v3 }
 0x7a6   :  { %4256 = vmatmul.msk.f32.vlgmr.msra.gmra.mxu1 %vm206_vm11, %v6103_v2 }
 0x7c7   :  { %v6107_v27 = vpop.permute.xlu2 %4578 }
 0x7c8   :  { %6823 = vst [vmem:[#allocation8_spill] sm:$0xff] %v6107_v27  ;;  %v4580_v23 = vunpack.i.l.bf16 %v6107_v27 }
 0x7cf   :  { %v6109_v22 = vpop.permute.xlu2 %2532 }
 0x7d0   :  { %6824 = vst [vmem:[#allocation9_spill] sm:$0xff] %v6109_v22  ;;  %v2537_v58 = vsel %vm1218_vm6, %v6825_v48, %v6109_v22  ;;  %v2709_v22 = vmul.f32 %v5961_v36, %v5961_v36 }
 0x7d1   :  { %v2546_v38 = vmul.f32 %v2537_v58, %v5729_v28  ;;  %v2551_v55 = vmul.f32 %v2537_v58, %v5752_v46 }
 0x7d3   :  { %v4597_v20 = vpack.i.bf16 %v2546_v38, %v2551_v55  ;;  %v2000_v38 = vadd.f32 %v1998_v6, %v1946_v57 }
 0x7d5   :  { %4598 = vrot.lane.b32.xlu0 %v4597_v20, %s4731_s29  ;;  %v2325_v20 = vmul.f32 %v5911_v59, %v5911_v59 }
 0x7d7   :  { %v6122_v49 = vpop.permute.xlu2 %2844  ;;  %v2327_v12 = vadd.f32 %v2325_v20, %v2000_v38  ;;  %v6152_v20 = vld [vmem:[%s6771_s4 + $0x198] sm:$0xff] }
 0x7d8   :  { %v2849_v48 = vsel %vm373_vm14, %v6826_v5, %v6122_v49  ;;  %4257 = vmatmul.msk.f32.gmra.mxu1 %vm206_vm11, %v6152_v20 }
 0x7d9   :  { %v2858_v29 = vmul.f32 %v2849_v48, %v5732_v63  ;;  %v2863_v58 = vmul.f32 %v2849_v48, %v5759_v39 }
 0x7db   :  { %v4602_v55 = vpack.i.bf16 %v2858_v29, %v2863_v58  ;;  %v6828_v29 = vunpack.i.h.bf16 %v5881_v34 }
 0x7dd   :  { %4603 = vrot.lane.b32.xlu0 %v4602_v55, %s4737_s3  ;;  %v2522_v55 = vadd.f32 %v2520_v10, %v2327_v12  ;;  %v2102_v10 = vpop.f32.mrf.mxu1 }
 0x7df   :  { %v6136_v42 = vpop.permute.xlu1 %4573  ;;  %v6138_v5 = vpop.permute.xlu2 %3226  ;;  %v2711_v12 = vadd.f32 %v2709_v22, %v2522_v55 }
 0x7e0   :  { %6827 = vst [vmem:[#allocation10_spill] sm:$0xff] %v6138_v5  ;;  %v6806_v57 = vunpack.i.h.bf16 %v6136_v42  ;;  %v4575_v6 = vunpack.i.l.bf16 %v6136_v42  ;;  %v3231_v48 = vsel %vm206_vm11, %v6828_v29, %v6138_v5  ;;  %v6829_v29 = vunpack.i.h.bf16 %v6107_v27 }
 0x7e1   :  { %v3240_v58 = vmul.f32 %v3231_v48, %v5732_v63  ;;  %v3245_v38 = vmul.f32 %v3231_v48, %v5759_v39  ;;  %v3594_v5 = vmul.f32 %v5698_v44, %v5698_v44  ;;  %v1947_v44 = vmul.f32 %v5891_v52, %v5891_v52 }
 0x7e2   :  { %v3475_v62 = vsel %vm1976_vm8, %v4575_v6, %v6806_v57  ;;  %v3471_v48 = vsel %vm1976_vm8, %v4580_v23, %v6829_v29  ;;  %v2822_v6 = vmul.f32 %v5986_v11, %v5986_v11  ;;  %v1999_v23 = vmul.f32 %v5831_v0, %v5831_v0 }
 0x7e3   :  { %3507 = vmatpush.msrb.mxu1 %v3475_v62  ;;  %v4612_v34 = vpack.i.bf16 %v3240_v58, %v3245_v38  ;;  %v3593_v62 = vmul.f32 %v5688_v41, %v5688_v41  ;;  %v6830_v38 = vunpack.i.l.bf16 %v6017_v18  ;;  %v6188_v41 = vld [vmem:[%s6771_s4 + $0x1a0] sm:$0xff]  ;;  %v2326_v57 = vmul.f32 %v5933_v33, %v5933_v33 }
 0x7e4   :  { %v2824_v29 = vadd.f32 %v2822_v6, %v2711_v12  ;;  %v6831_v12 = vunpack.i.h.bf16 %v5790_v37 }
 0x7e5   :  { %4613 = vrot.lane.b32.xlu2 %v4612_v34, %s4747_s11  ;;  %3508 = vmatpush.msrb.mxu1 %v3471_v48  ;;  %v3021_v48 = vmul.f32 %v6089_v7, %v6089_v7  ;;  %v2105_v18 = vpop.f32.mrf.mxu1 }
 0x7e6   :  { %4266 = vmatmul.msk.f32.vlgmr.msrb.gmra.mxu1 %vm206_vm11, %v6188_v41 }
 0x7e7   :  { %3615 = vmatpush.msra.mxu1 %v3594_v5  ;;  %v6171_v58 = vpop.permute.xlu2 %2012  ;;  %v3023_v27 = vadd.f32 %v3021_v48, %v2824_v29 }
 0x7e8   :  { %v2017_v22 = vsel %vm2014_vm7, %v6830_v38, %v6171_v58 }
 0x7e9   :  { %3616 = vmatpush.msra.mxu1 %v3593_v62  ;;  %v2026_v55 = vmul.f32 %v2017_v22, %v5732_v63  ;;  %v2031_v5 = vmul.f32 %v2017_v22, %v5759_v39  ;;  %v6183_v34 = vpop.permute.xlu1 %4583  ;;  %v2001_v22 = vadd.f32 %v1999_v23, %v1947_v44  ;;  %v6833_v23 = vunpack.i.h.bf16 %v5799_v40  ;;  %v6224_v40 = vld [vmem:[%s6771_s4 + $0x1a8] sm:$0xff] }
 0x7ea   :  { %v6810_v38 = vunpack.i.l.bf16 %v6183_v34 }
 0x7eb   :  { %v4622_v62 = vpack.i.bf16 %v2026_v55, %v2031_v5  ;;  %4285 = vmatpush.msk.msrb.mxu1 %vm114_vm4, %v5665_v53  ;;  %v3214_v55 = vmul.f32 %v6103_v2, %v6103_v2  ;;  %v6832_v5 = vunpack.i.h.bf16 %v6183_v34  ;;  %v2328_v37 = vadd.f32 %v2326_v57, %v2001_v22 }
 0x7ec   :  { %v2068_v6 = vsel %vm206_vm11, %v6831_v12, %v6810_v38  ;;  %v2521_v12 = vmul.f32 %v5954_v43, %v5954_v43  ;;  %v6834_v57 = vunpack.i.h.bf16 %v5797_v17 }
 0x7ed   :  { %2122 = vmatpush.msrb.mxu2 %v2068_v6  ;;  %4623 = vrot.lane.b32.xlu2 %v4622_v62, %s4748_s13  ;;  %v2064_v44 = vsel %vm206_vm11, %v6833_v23, %v6832_v5  ;;  %v3216_v48 = vadd.f32 %v3214_v55, %v3023_v27  ;;  %v3403_v6 = vmul.f32 %v6188_v41, %v6188_v41  ;;  %v6835_v27 = vunpack.i.h.bf16 %v5820_v8 }
 0x7ee   :  { %4267 = vmatmul.msk.f32.gmra.mxu1 %vm206_vm11, %v6224_v40  ;;  %v2523_v5 = vadd.f32 %v2521_v12, %v2328_v37  ;;  %v2710_v23 = vmul.f32 %v5968_v4, %v5968_v4  ;;  %v3022_v8 = vmul.f32 %v6096_v3, %v6096_v3 }
 0x7ef   :  { %v6213_v53 = vpop.permute.xlu0 %4588  ;;  %2123 = vmatpush.msrb.mxu2 %v2064_v44  ;;  %v3405_v17 = vadd.f32 %v3403_v6, %v3216_v48  ;;  %v2247_v44 = vpop.f32.mrf.mxu1  ;;  %v6836_v48 = vunpack.i.h.bf16 %v5822_v14  ;;  %v6837_v6 = vunpack.i.h.bf16 %v5813_v1  ;;  %v3215_v14 = vmul.f32 %v6152_v20, %v6152_v20 }
 0x7f0   :  { %v4591_v62 = vunpack.i.h.bf16 %v6213_v53  ;;  %v6809_v29 = vunpack.i.l.bf16 %v6213_v53  ;;  %4190 = vmatmul.msk.f32.vlgmr.msrb.gmra.mxu2 %vm206_vm11, %v5808_v45  ;;  %v2712_v38 = vadd.f32 %v2710_v23, %v2523_v5 }
 0x7f2   :  { %v2213_v22 = vsel %vm2207_vm13, %v6834_v57, %v6809_v29  ;;  %v2209_v55 = vsel %vm2207_vm13, %v6835_v27, %v4591_v62  ;;  %v2248_v29 = vadd.f32 %v2247_v44, %v2102_v10 }
 0x7f3   :  { %2267 = vmatpush.msra.mxu2 %v2213_v22  ;;  %v2823_v22 = vmul.f32 %v6082_v60, %v6082_v60 }
 0x7f5   :  { %2268 = vmatpush.msra.mxu2 %v2209_v55  ;;  %v2825_v23 = vadd.f32 %v2823_v22, %v2712_v38 }
 0x7f6   :  { %4274 = vmatmul.msk.f32.vlgmr.msra.gmra.mxu1 %vm206_vm11, %v3405_v17  ;;  %v3404_v17 = vmul.f32 %v6224_v40, %v6224_v40 }
 0x7f7   :  { %v6242_v57 = vpop.permute.xlu1 %4593  ;;  %4306 = vmatpush.msk.msra.mxu1 %vm114_vm4, %v5658_v31  ;;  %v2250_v27 = vpop.f32.mrf.mxu1  ;;  %v3024_v55 = vadd.f32 %v3022_v8, %v2825_v23 }
 0x7f8   :  { %v4596_v37 = vunpack.i.h.bf16 %v6242_v57  ;;  %v4595_v12 = vunpack.i.l.bf16 %v6242_v57  ;;  %4191 = vmatmul.msk.f32.gmra.mxu2 %vm206_vm11, %v5831_v0 }
 0x7f9   :  { %v3217_v1 = vadd.f32 %v3215_v14, %v3024_v55  ;;  %v6291_v14 = vsel %vm1938_vm12, 1.0, %v5914_v61 }
 0x7fa   :  { %v2400_v10 = vsel %vm2394_vm15, %v6836_v48, %v4595_v12  ;;  %v2396_v5 = vsel %vm2394_vm15, %v6837_v6, %v4596_v37  ;;  %v2251_v48 = vadd.f32 %v2250_v27, %v2105_v18 }
 0x7fb   :  { %2454 = vmatpush.msrb.mxu2 %v2400_v10  ;;  %v3406_v8 = vadd.f32 %v3404_v17, %v3217_v1 }
 0x7fd   :  { %2455 = vmatpush.msrb.mxu2 %v2396_v5 }
 0x7fe   :  { %4275 = vmatmul.msk.f32.gmra.mxu1 %vm206_vm11, %v3406_v8 }
 0x7ff   :  { %v6269_v44 = vpop.permute.xlu1 %3037  ;;  %v2434_v5 = vpop.f32.mrf.mxu1 }
 0x800   :  { %v3042_v10 = vsel %vm2394_vm15, %v5879_v24, %v6269_v44  ;;  %4198 = vmatmul.msk.f32.vlgmr.msra.gmra.mxu2 %vm206_vm11, %v5861_v50  ;;  %v2509_v24 = vadd.f32 %v2434_v5, %v2248_v29  ;;  %v2032_v29 = vmul.f32 %v6171_v58, %v5741_v9 }
 0x801   :  { %v3051_v38 = vmul.f32 %v3042_v10, %v5732_v63  ;;  %v3056_v22 = vmul.f32 %v3042_v10, %v5759_v39 }
 0x803   :  { %v4607_v6 = vpack.i.bf16 %v3051_v38, %v3056_v22 }
 0x805   :  { %4608 = vrot.lane.b32.xlu0 %v4607_v6, %s4746_s23 }
 0x807   :  { %v6280_v18 = vpop.permute.xlu1 %3419  ;;  %v2437_v51 = vpop.f32.mrf.mxu1 }
 0x808   :  { %v3424_v23 = vsel %vm2207_vm13, %v5996_v13, %v6280_v18  ;;  %4199 = vmatmul.msk.f32.gmra.mxu2 %vm206_vm11, %v5891_v52  ;;  %v2027_v13 = vmul.f32 %v6171_v58, %v5720_v30  ;;  %v2513_v1 = vadd.f32 %v2437_v51, %v2251_v48 }
 0x809   :  { %v3433_v27 = vmul.f32 %v3424_v23, %v5732_v63  ;;  %v3438_v55 = vmul.f32 %v3424_v23, %v5759_v39 }
 0x80a   :  { %v4627_v6 = vpack.i.bf16 %v2027_v13, %v2032_v29 }
 0x80b   :  { %v4617_v17 = vpack.i.bf16 %v3433_v27, %v3438_v55  ;;  %v6838_v55 = vand.u32 255, %v5635_v32 }
 0x80d   :  { %4618 = vrot.lane.b32.xlu1 %v4617_v17, %s4745_s22  ;;  %2343 = vrot.lane.b32.xlu0 %v6291_v14, %s4746_s23  ;;  %vm1922_vm1 = vcmp.lt.s32.totalorder %v6838_v55, 240 }
 0x80e   :  { %v6320_v17 = vsel %vm1922_vm1, 1.0, %v5914_v61 }
 0x80f   :  { %v1975_v10 = vpop.permute.xlu1 %1974  ;;  %v2623_v58 = vpop.f32.mrf.mxu1 }
 0x810   :  { %v1979_v38 = vsel %vm1976_vm8, %v6041_v16, %v1975_v10  ;;  %4208 = vmatmul.msk.f32.vlgmr.msrb.gmra.mxu2 %vm206_vm11, %v5911_v59  ;;  %v1989_v48 = vmul.f32 %v1975_v10, %v5720_v30  ;;  %v1994_v16 = vmul.f32 %v1975_v10, %v5741_v9  ;;  %v2698_v23 = vadd.f32 %v2623_v58, %v2509_v24 }
 0x811   :  { %v1988_v22 = vmul.f32 %v1979_v38, %v5732_v63  ;;  %v1993_v8 = vmul.f32 %v1979_v38, %v5759_v39  ;;  %v3028_v24 = vmul.f32 %v6075_v35, %v6320_v17 }
 0x812   :  { %v4637_v27 = vpack.i.bf16 %v1989_v48, %v1994_v16 }
 0x813   :  { %v4632_v5 = vpack.i.bf16 %v1988_v22, %v1993_v8 }
 0x815   :  { %2534 = vrot.lane.b32.xlu0 %v6075_v35, %s4737_s3  ;;  %4628 = vrot.lane.b32.xlu1 %v4627_v6, %s4748_s13 }
 0x816   :  { %4633 = vrot.lane.b32.xlu2 %v4632_v5, %s4749_s24 }
 0x817   :  { %v2626_v51 = vpop.f32.mrf.mxu1 }
 0x818   :  { %4209 = vmatmul.msk.f32.gmra.mxu2 %vm206_vm11, %v5933_v33  ;;  %v2702_v13 = vadd.f32 %v2626_v51, %v2513_v1 }
 0x81d   :  { %4638 = vrot.lane.b32.xlu0 %v4637_v27, %s4749_s24 }
 0x81e   :  { %2846 = vrot.lane.b32.xlu2 %v6291_v14, %s4731_s29 }
 0x81f   :  { %v2736_v29 = vpop.f32.mrf.mxu1 }
 0x820   :  { %v2811_v10 = vadd.f32 %v2736_v29, %v2698_v23  ;;  %v6840_v29 = vunpack.i.h.bf16 %v5850_v25 }
 0x826   :  { %3039 = vrot.lane.b32.xlu2 %v3028_v24, %s4750_s25 }
 0x827   :  { %v2739_v38 = vpop.f32.mrf.mxu1 }
 0x828   :  { %v2815_v32 = vadd.f32 %v2739_v38, %v2702_v13  ;;  %v6839_v13 = vunpack.i.l.bf16 %v6183_v34  ;;  %v6841_v38 = vunpack.i.h.bf16 %v6183_v34 }
 0x82f   :  { %v2935_v22 = vpop.f32.mrf.mxu1 }
 0x830   :  { %v3010_v8 = vadd.f32 %v2935_v22, %v2811_v10  ;;  %v6842_v22 = vunpack.i.h.bf16 %v5843_v56 }
 0x837   :  { %v2938_v5 = vpop.f32.mrf.mxu1 }
 0x838   :  { %v3014_v58 = vadd.f32 %v2938_v5, %v2815_v32 }
 0x83f   :  { %v6325_v6 = vpop.permute.xlu2 %4613  ;;  %v3128_v55 = vpop.f32.mrf.mxu1 }
 0x840   :  { %v3203_v51 = vadd.f32 %v3128_v55, %v3010_v8  ;;  %v6843_v55 = vunpack.i.h.bf16 %v5972_v21 }
 0x847   :  { %v6327_v48 = vpop.permute.xlu0 %4598  ;;  %v6329_v16 = vpop.permute.xlu2 %4623 }
 0x848   :  { %v4601_v1 = vunpack.i.h.bf16 %v6327_v48  ;;  %v4600_v35 = vunpack.i.l.bf16 %v6327_v48  ;;  %v4626_v27 = vunpack.i.h.bf16 %v6329_v16  ;;  %v4625_v23 = vunpack.i.l.bf16 %v6329_v16  ;;  %v3131_v56 = vpop.f32.mrf.mxu1 }
 0x84a   :  { %v2069_v24 = vsel %vm206_vm11, %v6839_v13, %v4625_v23  ;;  %v2589_v10 = vsel %vm373_vm14, %v6840_v29, %v4600_v35  ;;  %v2065_v32 = vsel %vm206_vm11, %v6841_v38, %v4626_v27  ;;  %v2585_v8 = vsel %vm373_vm14, %v6842_v22, %v4601_v1 }
 0x84b   :  { %2145 = vmatpush.msrb.mxu3 %v2069_v24  ;;  %2643 = vmatpush.msra.mxu2 %v2589_v10  ;;  %v3207_v13 = vadd.f32 %v3131_v56, %v3014_v58 }
 0x84d   :  { %2146 = vmatpush.msrb.mxu3 %v2065_v32  ;;  %2644 = vmatpush.msra.mxu2 %v2585_v8 }
 0x84e   :  { %4218 = vmatmul.msk.f32.vlgmr.msra.gmra.mxu2 %vm206_vm11, %v5947_v19  ;;  %4192 = vmatmul.msk.f32.vlgmr.msrb.gmra.mxu3 %vm206_vm11, %v5808_v45 }
 0x84f   :  { %2756 = vmatpush.msrb.mxu2 %v5752_v46  ;;  %v6360_v25 = vpop.permute.xlu0 %4603  ;;  %v6844_v46 = vunpack.i.h.bf16 %v5976_v47 }
 0x850   :  { %v6815_v34 = vunpack.i.h.bf16 %v6360_v25  ;;  %v6816_v5 = vunpack.i.l.bf16 %v6360_v25 }
 0x851   :  { %2757 = vmatpush.msrb.mxu2 %v5729_v28  ;;  %v3317_v28 = vpop.f32.mrf.mxu1 }
 0x852   :  { %v2901_v19 = vsel %vm1218_vm6, %v6843_v55, %v6816_v5  ;;  %v2897_v24 = vsel %vm1218_vm6, %v6844_v46, %v6815_v34  ;;  %v3392_v29 = vadd.f32 %v3317_v28, %v3203_v51  ;;  %v6846_v28 = vunpack.i.h.bf16 %v6003_v54 }
 0x853   :  { %2955 = vmatpush.msra.mxu2 %v2901_v19  ;;  %v6848_v54 = vunpack.i.l.bf16 %v6021_v15 }
 0x855   :  { %2956 = vmatpush.msra.mxu2 %v2897_v24 }
 0x856   :  { %4219 = vmatmul.msk.f32.gmra.mxu2 %vm206_vm11, %v5954_v43  ;;  %4193 = vmatmul.msk.f32.gmra.mxu3 %vm206_vm11, %v5831_v0 }
 0x859   :  { %v3320_v21 = vpop.f32.mrf.mxu1 }
 0x85a   :  { %v3396_v58 = vadd.f32 %v3320_v21, %v3207_v13  ;;  %v6812_v13 = vunpack.i.l.bf16 %v6325_v6  ;;  %v6811_v21 = vunpack.i.h.bf16 %v6325_v6 }
 0x85e   :  { %4228 = vmatmul.msk.f32.vlgmr.msrb.gmra.mxu2 %vm206_vm11, %v5961_v36  ;;  %v6845_v36 = vunpack.i.l.bf16 %v6213_v53 }
 0x863   :  { %v3510_v47 = vpop.f32.mrf.mxu1 }
 0x864   :  { %v6383_v10 = vadd.f32 %v3510_v47, %v3392_v29 }
 0x866   :  { %4229 = vmatmul.msk.f32.gmra.mxu2 %vm206_vm11, %v5968_v4 }
 0x86b   :  { %v3513_v32 = vpop.f32.mrf.mxu1 }
 0x86c   :  { %v6391_v22 = vadd.f32 %v3513_v32, %v3396_v58 }
 0x86e   :  { %4238 = vmatmul.msk.f32.vlgmr.msra.gmra.mxu2 %vm206_vm11, %v5986_v11 }
 0x870   :  { %v6387_v43 = vpop.permute.xlu2 %4633 }
 0x871   :  { %v4636_v38 = vunpack.i.h.bf16 %v6387_v43  ;;  %v4635_v51 = vunpack.i.l.bf16 %v6387_v43 }
 0x873   :  { %v2214_v4 = vsel %vm2207_vm13, %v6845_v36, %v4635_v51  ;;  %v2210_v11 = vsel %vm2207_vm13, %v4591_v62, %v4636_v38  ;;  %v3618_v62 = vpop.f32.mrf.mxu1 }
 0x874   :  { %2290 = vmatpush.msra.mxu3 %v2214_v4  ;;  %v3619_v58 = vadd.f32 1e-08, %v3618_v62  ;;  %v3283_v4 = vsel %vm2014_vm7, %v6848_v54, %v6812_v13 }
 0x876   :  { %2291 = vmatpush.msra.mxu3 %v2210_v11  ;;  %4239 = vmatmul.msk.f32.gmra.mxu2 %vm206_vm11, %v6082_v60  ;;  %v6430_v36 = vmul.f32 0.5, %v3619_v58 }
 0x877   :  { %v6405_v8 = vpop.permute.xlu0 %4608  ;;  %4200 = vmatmul.msk.f32.vlgmr.msra.gmra.mxu3 %vm206_vm11, %v5861_v50 }
 0x878   :  { %v6813_v56 = vunpack.i.h.bf16 %v6405_v8  ;;  %v6814_v55 = vunpack.i.l.bf16 %v6405_v8  ;;  %v6411_v19 = vpop.permute.xlu2 %2846  ;;  %4710 = vrsqrt.f32 %v6430_v36  ;;  %vm3632_vm2 = vweird.f32 %v6430_v36 }
 0x879   :  { %v2850_v53 = vsel %vm373_vm14, %v6122_v49, %v6411_v19  ;;  %v6847_v49 = vunpack.i.h.bf16 %v5991_v26 }
 0x87a   :  { %v2859_v46 = vmul.f32 %v2850_v53, %v5720_v30  ;;  %v2864_v24 = vmul.f32 %v2850_v53, %v5741_v9  ;;  %v3094_v29 = vsel %vm2345_vm10, %v6846_v28, %v6814_v55  ;;  %v6849_v53 = vld [vmem:[#allocation6_spill] sm:$0xff] }
 0x87b   :  { %3148 = vmatpush.msrb.mxu2 %v3094_v29  ;;  %v3090_v32 = vsel %vm2345_vm10, %v6847_v49, %v6813_v56  ;;  %v3279_v62 = vsel %vm2014_vm7, %v6849_v53, %v6811_v21  ;;  %v3621_v53 = vpop.f32.mrf.mxu1  ;;  %v6464_v21 = vld [vmem:[#allocation2 + $0x20] sm:$0xff] }
 0x87c   :  { %v4662_v47 = vpack.i.bf16 %v2859_v46, %v2864_v24  ;;  %v6850_v24 = vld [vmem:[#allocation7_spill] sm:$0xff]  ;;  %v3622_v56 = vadd.f32 1e-08, %v3621_v53 }
 0x87d   :  { %3149 = vmatpush.msrb.mxu2 %v3090_v32 }
 0x87e   :  { %4663 = vrot.lane.b32.xlu2 %v4662_v47, %s4737_s3  ;;  %4248 = vmatmul.msk.f32.vlgmr.msrb.gmra.mxu2 %vm206_vm11, %v6089_v7  ;;  %v6456_v47 = vpop.f32.mrf.mxu2  ;;  %v3625_v5 = vmul.f32 0.5, %v3622_v56 }
 0x87f   :  { %3337 = vmatpush.msra.mxu2 %v3283_v4  ;;  %v6440_v11 = vpop.permute.xlu1 %4618  ;;  %v2344_v26 = vpop.permute.xlu0 %2343  ;;  %4201 = vmatmul.msk.f32.gmra.mxu3 %vm206_vm11, %v5891_v52 }
 0x880   :  { %v4621_v46 = vunpack.i.h.bf16 %v6440_v11  ;;  %v4620_v15 = vunpack.i.l.bf16 %v6440_v11  ;;  %v2348_v28 = vsel %vm2345_vm10, %v6850_v24, %v2344_v26  ;;  %v2358_v29 = vmul.f32 %v2344_v26, %v5720_v30  ;;  %v6454_v58 = vpop.permute.xlu2 %3039  ;;  %v4727_v11 = vld [vmem:[%s6771_s4 + $0x198] sm:$0xff] }
 0x881   :  { %v2357_v49 = vmul.f32 %v2348_v28, %v5732_v63  ;;  %v2362_v32 = vmul.f32 %v2348_v28, %v5759_v39  ;;  %v2363_v54 = vmul.f32 %v2344_v26, %v5741_v9  ;;  %v3043_v4 = vsel %vm2394_vm15, %v6269_v44, %v6454_v58  ;;  %3338 = vmatpush.msra.mxu2 %v3279_v62  ;;  %v4711_v44 = vpop.eup %4710  ;;  %v6852_v62 = vld [vmem:[#allocation8_spill] sm:$0xff] }
 0x882   :  { %v3052_v30 = vmul.f32 %v6464_v21, %v3043_v4  ;;  %v3057_v24 = vmul.f32 %v3043_v4, %v5741_v9  ;;  %v6851_v63 = vunpack.i.h.bf16 %v6136_v42  ;;  %v6853_v4 = vunpack.i.h.bf16 %v6852_v62 }
 0x883   :  { %v4647_v26 = vpack.i.bf16 %v2358_v29, %v2363_v54  ;;  %v4642_v13 = vpack.i.bf16 %v2357_v49, %v2362_v32  ;;  %v3627_v42 = vmul.f32 %v4711_v44, %v6430_v36  ;;  %4712 = vrsqrt.f32 %v3625_v5  ;;  %v6854_v32 = vld [vmem:[#allocation9_spill] sm:$0xff] }
 0x884   :  { %v3476_v28 = vsel %vm1976_vm8, %v6851_v63, %v4620_v15  ;;  %v4672_v55 = vpack.i.bf16 %v3052_v30, %v3057_v24  ;;  %v3472_v34 = vsel %vm1976_vm8, %v6853_v4, %v4621_v46  ;;  %v6488_v24 = vld [vmem:[#allocation2 + $0x18] sm:$0xff]  ;;  %vm3633_vm3 = vweird.f32 %v4711_v44 }
 0x885   :  { %3530 = vmatpush.msrb.mxu2 %v3476_v28  ;;  %4648 = vrot.lane.b32.xlu0 %v4647_v26, %s4750_s25  ;;  %v3628_v28 = vmul.f32 %v4711_v44, %v3627_v42  ;;  %vm3634_vm5 = vmor %vm3632_vm2, %vm3633_vm3  ;;  %vm3642_vm12 = vweird.f32 %v3625_v5 }
 0x886   :  { %4643 = vrot.lane.b32.xlu1 %v4642_v13, %s4750_s25  ;;  %4673 = vrot.lane.b32.xlu2 %v4672_v55, %s4746_s23  ;;  %v2128_v56 = vpop.f32.mrf.mxu2 }
 0x887   :  { %3531 = vmatpush.msrb.mxu2 %v3472_v34  ;;  %v2535_v29 = vpop.permute.xlu0 %2534  ;;  %v4629_v49 = vpop.permute.xlu1 %4628 }
 0x888   :  { %4249 = vmatmul.msk.f32.gmra.mxu2 %vm206_vm11, %v6096_v3  ;;  %v2538_v13 = vsel %vm1218_vm6, %v6854_v32, %v2535_v29  ;;  %v2548_v54 = vmul.f32 %v6464_v21, %v2535_v29  ;;  %v2553_v53 = vmul.f32 %v2535_v29, %v5741_v9  ;;  %v4631_v30 = vunpack.i.h.bf16 %v4629_v49 }
 0x889   :  { %v2547_v34 = vmul.f32 %v6488_v24, %v2538_v13  ;;  %v2552_v55 = vmul.f32 %v2538_v13, %v5759_v39  ;;  %v4630_v63 = vunpack.i.l.bf16 %v4629_v49  ;;  %v3629_v32 = vmul.f32 0.5, %v3628_v28  ;;  %v4713_v9 = vpop.eup %4712  ;;  %v6856_v28 = vld [vmem:[#allocation5_spill] sm:$0xff] }
 0x88a   :  { %v4657_v26 = vpack.i.bf16 %v2548_v54, %v2553_v53  ;;  %v2066_v39 = vsel %vm206_vm11, %v4626_v27, %v4631_v30  ;;  %v3637_v36 = vmul.f32 %v4713_v9, %v3625_v5  ;;  %v6855_v54 = vld [vmem:[#allocation3_spill] sm:$0xff]  ;;  %v3410_v27 = vmul.f32 %v6291_v14, %v6320_v17 }
 0x88b   :  { %v2070_v62 = vsel %vm206_vm11, %v4625_v23, %v4630_v63  ;;  %v4652_v4 = vpack.i.bf16 %v2547_v34, %v2552_v55  ;;  %v3630_v42 = vsub.f32 1.5, %v3629_v32  ;;  %vm3643_vm1 = vweird.f32 %v4713_v9 }
 0x88c   :  { %2168 = vmatpush.msrb.mxu0 %v2070_v62  ;;  %v3638_v13 = vmul.f32 %v4713_v9, %v3637_v36  ;;  %v2860_v63 = vmul.f32 %v5914_v61, %v6411_v19  ;;  %v3053_v14 = vmul.f32 %v5914_v61, %v6454_v58  ;;  %vm3644_vm2 = vmor %vm3642_vm12, %vm3643_vm1 }
 0x88d   :  { %4658 = vrot.lane.b32.xlu0 %v4657_v26, %s4731_s29  ;;  %v3631_v29 = vmul.f32 %v4711_v44, %v3630_v42  ;;  %v4291_v42 = vld [vmem:[%s6769_s1 + $0x38] sm:$0xff] }
 0x88e   :  { %4653 = vrot.lane.b32.xlu1 %v4652_v4, %s4731_s29  ;;  %2169 = vmatpush.msrb.mxu0 %v2066_v39  ;;  %v2270_v16 = vpop.f32.mrf.mxu2  ;;  %v3639_v55 = vmul.f32 0.5, %v3638_v13  ;;  %v4677_v61 = vpack.i.bf16 %v3053_v14, %v3053_v14  ;;  %v4667_v19 = vpack.i.bf16 %v2860_v63, %v2860_v63 }
 0x88f   :  { %v4639_v23 = vpop.permute.xlu0 %4638  ;;  %4194 = vmatmul.msk.f32.vlgmr.msrb.gmra.mxu0 %vm206_vm11, %v5808_v45  ;;  %v6509_v30 = vsel %vm3634_vm5, %v4711_v44, %v3631_v29  ;;  %v2271_v34 = vadd.f32 %v2270_v16, %v6456_v47 }
 0x890   :  { %4258 = vmatmul.msk.f32.vlgmr.msra.gmra.mxu2 %vm206_vm11, %v6103_v2  ;;  %v4640_v49 = vunpack.i.l.bf16 %v4639_v23  ;;  %v4641_v53 = vunpack.i.h.bf16 %v4639_v23  ;;  %4286 = vmatmul.msk.f32.vlgmr.msrb.gmra.mxu1 %vm107_vm9, %v6509_v30  ;;  %v3640_v45 = vsub.f32 1.5, %v3639_v55 }
 0x891   :  { %4276 = vmatpush.msk.msra.mxu2 %vm114_vm4, %v6855_v54 }
 0x892   :  { %v2215_v2 = vsel %vm2207_vm13, %v4635_v51, %v4640_v49  ;;  %v2211_v51 = vsel %vm2207_vm13, %v4636_v38, %v4641_v53  ;;  %v3641_v47 = vmul.f32 %v4713_v9, %v3640_v45  ;;  %v4292_v38 = vld [vmem:[%s6767_s0 + $0x60] sm:$0xff] }
 0x893   :  { %2313 = vmatpush.msra.mxu0 %v2215_v2 }
 0x894   :  { %v6531_v58 = vsel %vm3644_vm2, %v4713_v9, %v3641_v47 }
 0x895   :  { %3421 = vrot.lane.b32.xlu0 %v3410_v27, %s4749_s24  ;;  %2314 = vmatpush.msra.mxu0 %v2211_v51 }
 0x896   :  { %3228 = vrot.lane.b32.xlu1 %v6320_v17, %s4748_s13  ;;  %v2273_v5 = vpop.f32.mrf.mxu2 }
 0x897   :  { %4195 = vmatmul.msk.f32.gmra.mxu0 %vm206_vm11, %v5831_v0  ;;  %v2274_v44 = vadd.f32 %v2273_v5, %v2128_v56  ;;  %v4290_v56 = vld [vmem:[%s6769_s1 + $0x30] sm:$0xff] }
 0x898   :  { %4259 = vmatmul.msk.f32.gmra.mxu2 %vm206_vm11, %v6152_v20  ;;  %4287 = vmatmul.msk.f32.gmra.mxu1 %vm107_vm9, %v6531_v58 }
 0x89d   :  { %4678 = vrot.lane.b32.xlu0 %v4677_v61, %s4746_s23 }
 0x89e   :  { %4668 = vrot.lane.b32.xlu1 %v4667_v19, %s4737_s3  ;;  %v2457_v0 = vpop.f32.mrf.mxu2 }
 0x89f   :  { %4202 = vmatmul.msk.f32.vlgmr.msra.gmra.mxu0 %vm206_vm11, %v5861_v50  ;;  %v2510_v20 = vadd.f32 %v2457_v0, %v2271_v34  ;;  %v4295_v50 = vld [vmem:[%s6767_s0 + $0x78] sm:$0xff] }
 0x8a0   :  { %4268 = vmatmul.msk.f32.vlgmr.msrb.gmra.mxu2 %vm206_vm11, %v6188_v41  ;;  %v4294_v41 = vld [vmem:[%s6767_s0 + $0x70] sm:$0xff] }
 0x8a1   :  { %3836 = vmatpush.msrb.mxu2 %v4295_v50 }
 0x8a3   :  { %3837 = vmatpush.msrb.mxu2 %v4294_v41  ;;  %v4718_v41 = vld [vmem:[#allocation2 + $0x48] sm:$0xff] }
 0x8a6   :  { %v2460_v17 = vpop.f32.mrf.mxu2 }
 0x8a7   :  { %4203 = vmatmul.msk.f32.gmra.mxu0 %vm206_vm11, %v5891_v52  ;;  %v2514_v43 = vadd.f32 %v2460_v17, %v2274_v44  ;;  %v4293_v52 = vld [vmem:[%s6767_s0 + $0x68] sm:$0xff] }
 0x8a8   :  { %4269 = vmatmul.msk.f32.gmra.mxu2 %vm206_vm11, %v6224_v40 }
 0x8a9   :  { %3838 = vmatpush.msrb.mxu2 %v4293_v52  ;;  %v4719_v52 = vld [vmem:[#allocation2 + $0x50] sm:$0xff] }
 0x8ab   :  { %3839 = vmatpush.msrb.mxu2 %v4292_v38 }
 0x8b0   :  { %4277 = vmatmul.msk.f32.vlgmr.msra.gmra.mxu2 %vm107_vm9, %v6509_v30 }
 0x8b1   :  { %4309 = vmatpush.msk.msra.mxu2 %vm114_vm4, %v6856_v28  ;;  %v4720_v28 = vld [vmem:[#allocation2] sm:$0xff] }
 0x8b8   :  { %4278 = vmatmul.msk.f32.gmra.mxu2 %vm107_vm9, %v6531_v58 }
 0x8c0   :  { %4298 = vmatmul.msk.f32.vlgmr.msrb.gmra.mxu2 %vm77_vm0, %v4290_v56 }
 0x8c8   :  { %4299 = vmatmul.msk.f32.gmra.mxu2 %vm77_vm0, %v4291_v42 }
 0x8d1   :  { %v2646_v26 = vpop.f32.mrf.mxu2 }
 0x8d2   :  { %v2699_v62 = vadd.f32 %v2646_v26, %v2510_v20 }
 0x8d8   :  { %v4664_v50 = vpop.permute.xlu2 %4663 }
 0x8d9   :  { %v2649_v4 = vpop.f32.mrf.mxu2 }
 0x8da   :  { %v2703_v32 = vadd.f32 %v2649_v4, %v2514_v43 }
 0x8e1   :  { %v2759_v9 = vpop.f32.mrf.mxu2 }
 0x8e2   :  { %v2812_v39 = vadd.f32 %v2759_v9, %v2699_v62  ;;  %v4665_v9 = vunpack.i.l.bf16 %v4664_v50 }
 0x8e9   :  { %v2762_v36 = vpop.f32.mrf.mxu2 }
 0x8ea   :  { %v2816_v23 = vadd.f32 %v2762_v36, %v2703_v32 }
 0x8f1   :  { %v2958_v29 = vpop.f32.mrf.mxu2 }
 0x8f2   :  { %v3011_v49 = vadd.f32 %v2958_v29, %v2812_v39  ;;  %v4666_v29 = vunpack.i.h.bf16 %v4664_v50  ;;  %v4723_v50 = vld [vmem:[%s6771_s4 + $0x160] sm:$0xff] }
 0x8f7   :  { %v4649_v13 = vpop.permute.xlu0 %4648 }
 0x8f8   :  { %v4644_v16 = vpop.permute.xlu1 %4643  ;;  %v4651_v53 = vunpack.i.h.bf16 %v4649_v13  ;;  %v4650_v27 = vunpack.i.l.bf16 %v4649_v13 }
 0x8f9   :  { %v4646_v34 = vunpack.i.h.bf16 %v4644_v16  ;;  %v4645_v2 = vunpack.i.l.bf16 %v4644_v16  ;;  %v2961_v55 = vpop.f32.mrf.mxu2 }
 0x8fa   :  { %v3015_v45 = vadd.f32 %v2961_v55, %v2816_v23  ;;  %v4296_v55 = vld [vmem:[%s6768_s2 + $0x30] sm:$0xff] }
 0x8fb   :  { %v2401_v63 = vsel %vm2394_vm15, %v4595_v12, %v4645_v2  ;;  %v2402_v14 = vsel %vm2394_vm15, %v4645_v2, %v4650_v27  ;;  %v2397_v51 = vsel %vm2394_vm15, %v4596_v37, %v4646_v34  ;;  %v2398_v47 = vsel %vm2394_vm15, %v4646_v34, %v4651_v53 }
 0x8fc   :  { %2477 = vmatpush.msrb.mxu3 %v2401_v63  ;;  %2500 = vmatpush.msrb.mxu0 %v2402_v14  ;;  %v6859_v27 = vunpack.i.h.bf16 %v6360_v25 }
 0x8fe   :  { %2478 = vmatpush.msrb.mxu3 %v2397_v51  ;;  %2501 = vmatpush.msrb.mxu0 %v2398_v47  ;;  %v2898_v34 = vsel %vm1218_vm6, %v6859_v27, %v4666_v29  ;;  %v4297_v51 = vld [vmem:[%s6768_s2 + $0x38] sm:$0xff] }
 0x8ff   :  { %4210 = vmatmul.msk.f32.vlgmr.msrb.gmra.mxu3 %vm206_vm11, %v5911_v59  ;;  %4212 = vmatmul.msk.f32.vlgmr.msrb.gmra.mxu0 %vm206_vm11, %v5911_v59  ;;  %v4659_v5 = vpop.permute.xlu0 %4658 }
 0x900   :  { %v4654_v12 = vpop.permute.xlu1 %4653  ;;  %v4661_v61 = vunpack.i.h.bf16 %v4659_v5  ;;  %v4660_v19 = vunpack.i.l.bf16 %v4659_v5  ;;  %v4722_v5 = vld [vmem:[%s6771_s4 + $0x158] sm:$0xff] }
 0x901   :  { %v4656_v44 = vunpack.i.h.bf16 %v4654_v12  ;;  %v4655_v0 = vunpack.i.l.bf16 %v4654_v12  ;;  %v3151_v20 = vpop.f32.mrf.mxu2  ;;  %v4674_v12 = vpop.permute.xlu2 %4673 }
 0x902   :  { %v3204_v57 = vadd.f32 %v3151_v20, %v3011_v49  ;;  %v3954_v20 = vld [vmem:[%s6775_s7] sm:$0x7] }
 0x903   :  { %v2590_v37 = vsel %vm373_vm14, %v4600_v35, %v4655_v0  ;;  %v2591_v17 = vsel %vm373_vm14, %v4655_v0, %v4660_v19  ;;  %v2586_v59 = vsel %vm373_vm14, %v4601_v1, %v4656_v44  ;;  %v2587_v43 = vsel %vm373_vm14, %v4656_v44, %v4661_v61  ;;  %v6857_v1 = vld [vmem:[#allocation10_spill] sm:$0xff]  ;;  %v4288_v19 = vld [vmem:[%s6772_s5 + $0x20] sm:$0xff] }
 0x904   :  { %2666 = vmatpush.msra.mxu3 %v2590_v37  ;;  %2689 = vmatpush.msra.mxu0 %v2591_v17  ;;  %v4675_v44 = vunpack.i.l.bf16 %v4674_v12 }
 0x906   :  { %2667 = vmatpush.msra.mxu3 %v2586_v59  ;;  %2690 = vmatpush.msra.mxu0 %v2587_v43  ;;  %v4676_v59 = vunpack.i.h.bf16 %v4674_v12  ;;  %v6862_v12 = vunpack.i.l.bf16 %v6325_v6 }
 0x907   :  { %4211 = vmatmul.msk.f32.gmra.mxu3 %vm206_vm11, %v5933_v33  ;;  %4213 = vmatmul.msk.f32.gmra.mxu0 %vm206_vm11, %v5933_v33  ;;  %v3422_v35 = vpop.permute.xlu0 %3421 }
 0x908   :  { %2779 = vmatpush.msrb.mxu3 %v4718_v41  ;;  %2802 = vmatpush.msrb.mxu0 %v4719_v52  ;;  %v3229_v38 = vpop.permute.xlu1 %3228  ;;  %v3425_v48 = vsel %vm2207_vm13, %v6280_v18, %v3422_v35  ;;  %v3435_v49 = vmul.f32 %v4720_v28, %v3422_v35  ;;  %v6860_v35 = vunpack.i.l.bf16 %v6405_v8  ;;  %vm4049_vm13 = vcmask 1043456  }
 0x909   :  { %v3232_v56 = vsel %vm206_vm11, %v6857_v1, %v3229_v38  ;;  %v3242_v26 = vmul.f32 %v4720_v28, %v3229_v38  ;;  %v3434_v62 = vmul.f32 %v6464_v21, %v3425_v48  ;;  %v3439_v4 = vmul.f32 %v4719_v52, %v3425_v48 }
 0x90a   :  { %v3241_v32 = vmul.f32 %v6464_v21, %v3232_v56  ;;  %v3246_v33 = vmul.f32 %v4719_v52, %v3232_v56  ;;  %2780 = vmatpush.msrb.mxu3 %v6488_v24  ;;  %2803 = vmatpush.msrb.mxu0 %v6464_v21  ;;  %v4721_v24 = vld [vmem:[%s6771_s4 + $0x150] sm:$0xff]  ;;  %v6858_v21 = vunpack.i.l.bf16 %v6360_v25  ;;  %v3095_v41 = vsel %vm2345_vm10, %v6860_v35, %v4675_v44 }
 0x90b   :  { %v3154_v39 = vpop.f32.mrf.mxu2  ;;  %v4687_v42 = vpack.i.bf16 %v3242_v26, %v3242_v26  ;;  %v4692_v18 = vpack.i.bf16 %v3434_v62, %v3439_v4  ;;  %v6861_v38 = vunpack.i.h.bf16 %v6405_v8  ;;  %v4724_v26 = vld [vmem:[%s6771_s4 + $0x168] sm:$0xff]  ;;  %v4725_v8 = vld [vmem:[%s6771_s4 + $0x170] sm:$0xff] }
 0x90c   :  { %v3208_v36 = vadd.f32 %v3154_v39, %v3015_v45  ;;  %v4682_v23 = vpack.i.bf16 %v3241_v32, %v3246_v33  ;;  %v2902_v13 = vsel %vm1218_vm6, %v6858_v21, %v4665_v9  ;;  %v4697_v45 = vpack.i.bf16 %v3435_v49, %v3435_v49 }
 0x90d   :  { %4688 = vrot.lane.b32.xlu2 %v4687_v42, %s4747_s11  ;;  %4693 = vrot.lane.b32.xlu0 %v4692_v18, %s4745_s22  ;;  %v3091_v48 = vsel %vm2345_vm10, %v6861_v38, %v4676_v59 }
 0x90e   :  { %4683 = vrot.lane.b32.xlu1 %v4682_v23, %s4747_s11 }
 0x90f   :  { %4220 = vmatmul.msk.f32.vlgmr.msra.gmra.mxu3 %vm206_vm11, %v4721_v24  ;;  %4222 = vmatmul.msk.f32.vlgmr.msra.gmra.mxu0 %vm206_vm11, %v4721_v24  ;;  %v4679_v61 = vpop.permute.xlu0 %4678 }
 0x910   :  { %2978 = vmatpush.msra.mxu3 %v2902_v13  ;;  %v4669_v16 = vpop.permute.xlu1 %4668  ;;  %v4680_v37 = vunpack.i.l.bf16 %v4679_v61  ;;  %v4681_v43 = vunpack.i.h.bf16 %v4679_v61 }
 0x911   :  { %v4670_v53 = vunpack.i.l.bf16 %v4669_v16  ;;  %v4671_v2 = vunpack.i.h.bf16 %v4669_v16 }
 0x912   :  { %2979 = vmatpush.msra.mxu3 %v2898_v34  ;;  %v3096_v52 = vsel %vm2345_vm10, %v4675_v44, %v4680_v37  ;;  %v3092_v1 = vsel %vm2345_vm10, %v4676_v59, %v4681_v43  ;;  %v4726_v43 = vld [vmem:[%s6771_s4 + $0x190] sm:$0xff] }
 0x913   :  { %v3340_v63 = vpop.f32.mrf.mxu2  ;;  %v2903_v14 = vsel %vm1218_vm6, %v4665_v9, %v4670_v53  ;;  %v2899_v25 = vsel %vm1218_vm6, %v4666_v29, %v4671_v2  ;;  %v2171_v9 = vpop.f32.mrf.mxu0 }
 0x914   :  { %v3393_v47 = vadd.f32 %v3340_v63, %v3204_v57  ;;  %3001 = vmatpush.msra.mxu0 %v2903_v14  ;;  %v4289_v57 = vld [vmem:[%s6772_s5 + $0x28] sm:$0xff] }
 0x915   :  { %3810 = vperm.xlu2 %4401, %v4296_v55   ;;  %3815 = vperm.xlu0 %4339, %v4297_v51  }
 0x916   :  { %4698 = vrot.lane.b32.xlu1 %v4697_v45, %s4745_s22  ;;  %3002 = vmatpush.msra.mxu0 %v2899_v25 }
 0x917   :  { %4221 = vmatmul.msk.f32.gmra.mxu3 %vm206_vm11, %v4722_v5  ;;  %4223 = vmatmul.msk.f32.gmra.mxu0 %vm206_vm11, %v4722_v5 }
 0x91b   :  { %v3343_v0 = vpop.f32.mrf.mxu2  ;;  %v2174_v18 = vpop.f32.mrf.mxu0 }
 0x91c   :  { %v3397_v17 = vadd.f32 %v3343_v0, %v3208_v36  ;;  %v2148_v36 = vpop.f32.mrf.mxu3 }
 0x91d   :  { %3757 = vperm.xlu2 %4401, %v4288_v19   ;;  %3957 = vperm.xlu0 %4339, %v3954_v20  }
 0x91e   :  { %3762 = vperm.xlu1 %4400, %v4289_v57   ;;  %v6863_v57 = vunpack.i.h.bf16 %v6325_v6 }
 0x91f   :  { %4230 = vmatmul.msk.f32.vlgmr.msrb.gmra.mxu3 %vm206_vm11, %v4723_v50  ;;  %4232 = vmatmul.msk.f32.vlgmr.msrb.gmra.mxu0 %vm206_vm11, %v4723_v50 }
 0x920   :  { %3171 = vmatpush.msrb.mxu3 %v3095_v41  ;;  %3194 = vmatpush.msrb.mxu0 %v3096_v52 }
 0x922   :  { %3172 = vmatpush.msrb.mxu3 %v3091_v48  ;;  %3195 = vmatpush.msrb.mxu0 %v3092_v1 }
 0x923   :  { %v3533_v56 = vpop.f32.mrf.mxu2 }
 0x924   :  { %v6653_v28 = vadd.f32 %v3533_v56, %v3393_v47 }
 0x927   :  { %4231 = vmatmul.msk.f32.gmra.mxu3 %vm206_vm11, %v4724_v26  ;;  %4233 = vmatmul.msk.f32.gmra.mxu0 %vm206_vm11, %v4724_v26 }
 0x92b   :  { %v3536_v62 = vpop.f32.mrf.mxu2 }
 0x92c   :  { %v6660_v4 = vadd.f32 %v3536_v62, %v3397_v17  ;;  %v6864_v62 = vld [vmem:[#allocation4_spill] sm:$0xff] }
 0x92f   :  { %4240 = vmatmul.msk.f32.vlgmr.msra.gmra.mxu3 %vm206_vm11, %v4725_v8  ;;  %4242 = vmatmul.msk.f32.vlgmr.msra.gmra.mxu0 %vm206_vm11, %v4725_v8 }
 0x933   :  { %v3669_v32 = vpop.f32.mrf.mxu2 }
 0x934   :  { %v6668_v33 = vmul.f32 %v3669_v32, %v6383_v10  ;;  %v2151_v10 = vpop.f32.mrf.mxu3 }
 0x937   :  { %4241 = vmatmul.msk.f32.gmra.mxu3 %vm206_vm11, %v6082_v60  ;;  %4243 = vmatmul.msk.f32.gmra.mxu0 %vm206_vm11, %v6082_v60  ;;  %v2316_v60 = vpop.f32.mrf.mxu0 }
 0x938   :  { %v2317_v23 = vadd.f32 %v2316_v60, %v2171_v9 }
 0x93b   :  { %v3672_v39 = vpop.f32.mrf.mxu2 }
 0x93c   :  { %v6675_v42 = vmul.f32 %v3672_v39, %v6391_v22  ;;  %v2293_v29 = vpop.f32.mrf.mxu3 }
 0x93d   :  { %v2294_v22 = vadd.f32 %v2293_v29, %v2148_v36 }
 0x93f   :  { %4250 = vmatmul.msk.f32.vlgmr.msrb.gmra.mxu3 %vm206_vm11, %v6089_v7  ;;  %4252 = vmatmul.msk.f32.vlgmr.msrb.gmra.mxu0 %vm206_vm11, %v6089_v7  ;;  %v2319_v49 = vpop.f32.mrf.mxu0 }
 0x940   :  { %v2320_v24 = vadd.f32 %v2319_v49, %v2174_v18  ;;  %v4728_v18 = vld [vmem:[%s6771_s4 + $0x1a0] sm:$0xff] }
 0x943   :  { %v3841_v53 = vpop.f32.mrf.mxu2 }
 0x944   :  { %v2296_v21 = vpop.f32.mrf.mxu3 }
 0x945   :  { %v2297_v13 = vadd.f32 %v2296_v21, %v2151_v10 }
 0x947   :  { %4251 = vmatmul.msk.f32.gmra.mxu3 %vm206_vm11, %v6096_v3  ;;  %4253 = vmatmul.msk.f32.gmra.mxu0 %vm206_vm11, %v6096_v3 }
 0x94b   :  { %v3844_v59 = vpop.f32.mrf.mxu2 }
 0x967   :  { %v4689_v16 = vpop.permute.xlu2 %4688 }
 0x968   :  { %v4690_v45 = vunpack.i.l.bf16 %v4689_v16  ;;  %v4691_v51 = vunpack.i.h.bf16 %v4689_v16 }
 0x96f   :  { %v3811_v27 = vpop.permute.xlu2 %3810 }
 0x970   :  { %v6685_v34 = vadd.f32 %v3841_v53, %v3811_v27 }
 0x972   :  { %4307 = vmatmul.msk.f32.vlgmr.msra.gmra.mxu1 %vm107_vm9, %v6685_v34  ;;  %4310 = vmatmul.msk.f32.vlgmr.msra.gmra.mxu2 %vm107_vm9, %v6685_v34 }
 0x97c   :  { %v2503_v7 = vpop.f32.mrf.mxu0 }
 0x97d   :  { %v2512_v3 = vadd.f32 %v2503_v7, %v2317_v23 }
 0x97f   :  { %v4694_v2 = vpop.permute.xlu0 %4693 }
 0x980   :  { %v4684_v55 = vpop.permute.xlu1 %4683  ;;  %v4695_v25 = vunpack.i.l.bf16 %v4694_v2  ;;  %v4696_v0 = vunpack.i.h.bf16 %v4694_v2 }
 0x981   :  { %v4686_v63 = vunpack.i.h.bf16 %v4684_v55  ;;  %v4685_v14 = vunpack.i.l.bf16 %v4684_v55 }
 0x982   :  { %v2480_v47 = vpop.f32.mrf.mxu3  ;;  %v3477_v50 = vsel %vm1976_vm8, %v4620_v15, %v4695_v25  ;;  %v3473_v48 = vsel %vm1976_vm8, %v4621_v46, %v4696_v0 }
 0x983   :  { %v2511_v5 = vadd.f32 %v2480_v47, %v2294_v22  ;;  %v3284_v61 = vsel %vm2014_vm7, %v6862_v12, %v4685_v14  ;;  %v3285_v19 = vsel %vm2014_vm7, %v4685_v14, %v4690_v45  ;;  %v3280_v37 = vsel %vm2014_vm7, %v6863_v57, %v4686_v63 }
 0x984   :  { %v2506_v44 = vpop.f32.mrf.mxu0  ;;  %3360 = vmatpush.msra.mxu3 %v3284_v61  ;;  %3383 = vmatpush.msra.mxu0 %v3285_v19  ;;  %v3281_v17 = vsel %vm2014_vm7, %v4686_v63, %v4691_v51 }
 0x985   :  { %v2516_v20 = vadd.f32 %v2506_v44, %v2320_v24 }
 0x986   :  { %3361 = vmatpush.msra.mxu3 %v3280_v37  ;;  %3384 = vmatpush.msra.mxu0 %v3281_v17 }
 0x987   :  { %4260 = vmatmul.msk.f32.vlgmr.msra.gmra.mxu3 %vm206_vm11, %v4726_v43  ;;  %4262 = vmatmul.msk.f32.vlgmr.msra.gmra.mxu0 %vm206_vm11, %v4726_v43  ;;  %v3816_v6 = vpop.permute.xlu0 %3815 }
 0x988   :  { %3553 = vmatpush.msrb.mxu3 %v3477_v50  ;;  %v4699_v35 = vpop.permute.xlu1 %4698  ;;  %v3845_v41 = vadd.f32 %v3844_v59, %v3816_v6 }
 0x989   :  { %v4701_v52 = vunpack.i.h.bf16 %v4699_v35  ;;  %v4700_v38 = vunpack.i.l.bf16 %v4699_v35 }
 0x98a   :  { %3554 = vmatpush.msrb.mxu3 %v3473_v48  ;;  %v2483_v1 = vpop.f32.mrf.mxu3  ;;  %4308 = vmatmul.msk.f32.gmra.mxu1 %vm107_vm9, %v3845_v41 }
 0x98b   :  { %v2515_v56 = vadd.f32 %v2483_v1, %v2297_v13  ;;  %4311 = vmatmul.msk.f32.gmra.mxu2 %vm107_vm9, %v3845_v41  ;;  %v3478_v26 = vsel %vm1976_vm8, %v4695_v25, %v4700_v38  ;;  %v3474_v32 = vsel %vm1976_vm8, %v4696_v0, %v4701_v52  ;;  %v3738_v0 = vpop.f32.mrf.mxu1 }
 0x98c   :  { %v2692_v15 = vpop.f32.mrf.mxu0  ;;  %3576 = vmatpush.msrb.mxu0 %v3478_v26  ;;  %4279 = vmatpush.msk.msra.mxu3 %vm114_vm4, %v6864_v62 }
 0x98d   :  { %v2701_v8 = vadd.f32 %v2692_v15, %v2512_v3 }
 0x98e   :  { %3577 = vmatpush.msrb.mxu0 %v3474_v32 }
 0x98f   :  { %4261 = vmatmul.msk.f32.gmra.mxu3 %vm206_vm11, %v4727_v11  ;;  %4263 = vmatmul.msk.f32.gmra.mxu0 %vm206_vm11, %v4727_v11 }
 0x990   :  { %4282 = vmatpush.msk.msra.mxu0 %vm114_vm4, %v5658_v31  ;;  %v3763_v1 = vpop.permute.xlu1 %3762 }
 0x992   :  { %v2669_v46 = vpop.f32.mrf.mxu3 }
 0x993   :  { %v2700_v9 = vadd.f32 %v2669_v46, %v2511_v5  ;;  %v3741_v6 = vpop.f32.mrf.mxu1 }
 0x994   :  { %v2695_v39 = vpop.f32.mrf.mxu0 }
 0x995   :  { %v2705_v36 = vadd.f32 %v2695_v39, %v2516_v20 }
 0x997   :  { %4270 = vmatmul.msk.f32.vlgmr.msrb.gmra.mxu3 %vm206_vm11, %v4728_v18  ;;  %4272 = vmatmul.msk.f32.vlgmr.msrb.gmra.mxu0 %vm206_vm11, %v4728_v18 }
 0x998   :  { %4300 = vmatpush.msk.msrb.mxu3 %vm114_vm4, %v6855_v54  ;;  %4303 = vmatpush.msk.msrb.mxu0 %vm114_vm4, %v6864_v62  ;;  %v3758_v62 = vpop.permute.xlu2 %3757 }
 0x99a   :  { %v2672_v10 = vpop.f32.mrf.mxu3 }
 0x99b   :  { %v2704_v31 = vadd.f32 %v2672_v10, %v2515_v56 }
 0x99c   :  { %v2805_v60 = vpop.f32.mrf.mxu0 }
 0x99d   :  { %v2814_v23 = vadd.f32 %v2805_v60, %v2701_v8 }
 0x99f   :  { %4271 = vmatmul.msk.f32.gmra.mxu3 %vm206_vm11, %v6224_v40  ;;  %4273 = vmatmul.msk.f32.gmra.mxu0 %vm206_vm11, %v6224_v40 }
 0x9a2   :  { %v2782_v29 = vpop.f32.mrf.mxu3 }
 0x9a3   :  { %v2813_v22 = vadd.f32 %v2782_v29, %v2700_v9 }
 0x9a4   :  { %v2808_v49 = vpop.f32.mrf.mxu0 }
 0x9a5   :  { %v2818_v24 = vadd.f32 %v2808_v49, %v2705_v36 }
 0x9a7   :  { %4280 = vmatmul.msk.f32.vlgmr.msra.gmra.mxu3 %vm107_vm9, %v6509_v30  ;;  %4283 = vmatmul.msk.f32.vlgmr.msra.gmra.mxu0 %vm107_vm9, %v6509_v30 }
 0x9aa   :  { %v2785_v54 = vpop.f32.mrf.mxu3 }
 0x9ab   :  { %v2817_v21 = vadd.f32 %v2785_v54, %v2704_v31 }
 0x9ac   :  { %v3004_v13 = vpop.f32.mrf.mxu0 }
 0x9ad   :  { %v3013_v16 = vadd.f32 %v3004_v13, %v2814_v23 }
 0x9af   :  { %4281 = vmatmul.msk.f32.gmra.mxu3 %vm107_vm9, %v6531_v58  ;;  %4284 = vmatmul.msk.f32.gmra.mxu0 %vm107_vm9, %v6531_v58 }
 0x9b2   :  { %v2981_v40 = vpop.f32.mrf.mxu3 }
 0x9b3   :  { %v3012_v53 = vadd.f32 %v2981_v40, %v2813_v22  ;;  %v3765_v22 = vadd.f32 %v3758_v62, %v6668_v33 }
 0x9b4   :  { %v3007_v27 = vpop.f32.mrf.mxu0 }
 0x9b5   :  { %v3017_v7 = vadd.f32 %v3007_v27, %v2818_v24  ;;  %vm3773_vm8 = vcmp.ge.f32.partialorder %v3765_v22, 0.0 }
 0x9b7   :  { %4301 = vmatmul.msk.f32.vlgmr.msrb.gmra.mxu3 %vm107_vm9, %v6685_v34  ;;  %4304 = vmatmul.msk.f32.vlgmr.msrb.gmra.mxu0 %vm107_vm9, %v6685_v34 }
 0x9ba   :  { %v2984_v30 = vpop.f32.mrf.mxu3 }
 0x9bb   :  { %v3016_v3 = vadd.f32 %v2984_v30, %v2817_v21  ;;  %v3953_v30 = vld [vmem:[%s6776_s6] sm:$0x7] }
 0x9bc   :  { %v3197_v2 = vpop.f32.mrf.mxu0 }
 0x9bd   :  { %v3206_v55 = vadd.f32 %v3197_v2, %v3013_v16  ;;  %v3781_v2 = vmul.f32 0.2, %v3765_v22 }
 0x9bf   :  { %4302 = vmatmul.msk.f32.gmra.mxu3 %vm107_vm9, %v3845_v41  ;;  %4305 = vmatmul.msk.f32.gmra.mxu0 %vm107_vm9, %v3845_v41 }
 0x9c2   :  { %v3174_v45 = vpop.f32.mrf.mxu3 }
 0x9c3   :  { %v3205_v58 = vadd.f32 %v3174_v45, %v3012_v53 }
 0x9c4   :  { %v3200_v63 = vpop.f32.mrf.mxu0 }
 0x9c5   :  { %v3210_v20 = vadd.f32 %v3200_v63, %v3017_v7 }
 0x9ca   :  { %v3177_v14 = vpop.f32.mrf.mxu3 }
 0x9cb   :  { %v3209_v35 = vadd.f32 %v3177_v14, %v3016_v3 }
 0x9ef   :  { %v3916_v16 = vpop.f32.mrf.mxu1 }
 0x9f5   :  { %v3939_v39 = vpop.f32.mrf.mxu2 }
 0xa04   :  { %v3386_v51 = vpop.f32.mrf.mxu0 }
 0xa05   :  { %v3395_v59 = vadd.f32 %v3386_v51, %v3206_v55 }
 0xa0a   :  { %v3363_v47 = vpop.f32.mrf.mxu3 }
 0xa0b   :  { %v3394_v32 = vadd.f32 %v3363_v47, %v3205_v58 }
 0xa0c   :  { %v3389_v25 = vpop.f32.mrf.mxu0 }
 0xa0d   :  { %v3399_v37 = vadd.f32 %v3389_v25, %v3210_v20  ;;  %v3958_v20 = vpop.permute.xlu0 %3957 }
 0xa0e   :  { %v3942_v3 = vpop.f32.mrf.mxu2 }
 0xa12   :  { %v3366_v5 = vpop.f32.mrf.mxu3 }
 0xa13   :  { %v3398_v56 = vadd.f32 %v3366_v5, %v3209_v35  ;;  %v3789_v5 = vsel %vm3773_vm8, %v3765_v22, %v3781_v2 }
 0xa14   :  { %v3579_v12 = vpop.f32.mrf.mxu0 }
 0xa15   :  { %v3588_v50 = vadd.f32 %v3579_v12, %v3395_v59 }
 0xa17   :  { %v3747_v26 = vmul.f32 %v3738_v0, %v3588_v50 }
 0xa19   :  { %v3768_v36 = vadd.f32 %v3758_v62, %v3747_v26 }
 0xa1a   :  { %v3556_v61 = vpop.f32.mrf.mxu3 }
 0xa1b   :  { %v3587_v18 = vadd.f32 %v3556_v61, %v3394_v32  ;;  %v3784_v49 = vmul.f32 0.2, %v3768_v36  ;;  %vm3776_vm14 = vcmp.ge.f32.partialorder %v3768_v36, 0.0  ;;  %v3919_v61 = vpop.f32.mrf.mxu1 }
 0xa1c   :  { %v3582_v19 = vpop.f32.mrf.mxu0 }
 0xa1d   :  { %v3592_v43 = vadd.f32 %v3582_v19, %v3399_v37  ;;  %v3792_v55 = vsel %vm3776_vm14, %v3768_v36, %v3784_v49 }
 0xa1e   :  { %v3948_v47 = vmul.f32 %v3939_v39, %v3792_v55 }
 0xa1f   :  { %v3751_v41 = vmul.f32 %v3741_v6, %v3592_v43 }
 0xa21   :  { %v3772_v11 = vadd.f32 %v3763_v1, %v3751_v41 }
 0xa22   :  { %v3559_v34 = vpop.f32.mrf.mxu3 }
 0xa23   :  { %v3591_v46 = vadd.f32 %v3559_v34, %v3398_v56  ;;  %v3788_v60 = vmul.f32 0.2, %v3772_v11  ;;  %vm3780_vm4 = vcmp.ge.f32.partialorder %v3772_v11, 0.0 }
 0xa24   :  { %v3715_v44 = vpop.f32.mrf.mxu0 }
 0xa25   :  { %v3796_v7 = vsel %vm3780_vm4, %v3772_v11, %v3788_v60 }
 0xa26   :  { %v3952_v45 = vmul.f32 %v3942_v3, %v3796_v7 }
 0xa2a   :  { %v3692_v57 = vpop.f32.mrf.mxu3 }
 0xa2b   :  { %v3745_v52 = vmul.f32 %v3692_v57, %v6653_v28  ;;  %v3769_v28 = vadd.f32 %v3763_v1, %v6675_v42 }
 0xa2c   :  { %v3718_v17 = vpop.f32.mrf.mxu0 }
 0xa2d   :  { %v3766_v9 = vadd.f32 %v3758_v62, %v3745_v52  ;;  %v3750_v10 = vmul.f32 %v3718_v17, %v3591_v46  ;;  %v3785_v27 = vmul.f32 0.2, %v3769_v28  ;;  %vm3777_vm6 = vcmp.ge.f32.partialorder %v3769_v28, 0.0 }
 0xa2f   :  { %v3782_v23 = vmul.f32 0.2, %v3766_v9  ;;  %vm3774_vm9 = vcmp.ge.f32.partialorder %v3766_v9, 0.0  ;;  %v3771_v24 = vadd.f32 %v3763_v1, %v3750_v10  ;;  %v3793_v63 = vsel %vm3777_vm6, %v3769_v28, %v3785_v27 }
 0xa31   :  { %v3790_v53 = vsel %vm3774_vm9, %v3766_v9, %v3782_v23  ;;  %v3787_v33 = vmul.f32 0.2, %v3771_v24  ;;  %vm3779_vm7 = vcmp.ge.f32.partialorder %v3771_v24, 0.0 }
 0xa32   :  { %v3695_v38 = vpop.f32.mrf.mxu3 }
 0xa33   :  { %v3749_v48 = vmul.f32 %v3695_v38, %v6660_v4  ;;  %v3746_v4 = vmul.f32 %v3715_v44, %v3587_v18  ;;  %v3795_v25 = vsel %vm3779_vm7, %v3771_v24, %v3787_v33 }
 0xa34   :  { %v3893_v15 = vpop.f32.mrf.mxu0  ;;  %v3951_v34 = vmul.f32 %v3919_v61, %v3795_v25 }
 0xa35   :  { %v3770_v8 = vadd.f32 %v3763_v1, %v3749_v48  ;;  %v3767_v40 = vadd.f32 %v3758_v62, %v3746_v4  ;;  %v3946_v42 = vmul.f32 %v3893_v15, %v3790_v53 }
 0xa37   :  { %v3786_v31 = vmul.f32 0.2, %v3770_v8  ;;  %vm3778_vm0 = vcmp.ge.f32.partialorder %v3770_v8, 0.0  ;;  %v3783_v58 = vmul.f32 0.2, %v3767_v40  ;;  %vm3775_vm10 = vcmp.ge.f32.partialorder %v3767_v40, 0.0 }
 0xa39   :  { %v3794_v54 = vsel %vm3778_vm0, %v3770_v8, %v3786_v31  ;;  %v3791_v19 = vsel %vm3775_vm10, %v3767_v40, %v3783_v58 }
 0xa3a   :  { %v3870_v29 = vpop.f32.mrf.mxu3  ;;  %v3947_v44 = vmul.f32 %v3916_v16, %v3791_v19 }
 0xa3b   :  { %v3945_v12 = vmul.f32 %v3870_v29, %v3789_v5 }
 0xa3c   :  { %v3896_v21 = vpop.f32.mrf.mxu0 }
 0xa3d   :  { %v3950_v13 = vmul.f32 %v3896_v21, %v3794_v54 }
 0xa3f   :  { %3997 = vmatpush.msra.mxu0 %v3950_v13 }
 0xa41   :  { %3998 = vmatpush.msra.mxu0 %v3946_v42 }
 0xa42   :  { %v3873_v14 = vpop.f32.mrf.mxu3  ;;  %4313 = vmatmul.msk.f32.vlgmr.msra.gmra.mxu0 %vm206_vm11, %v3953_v30 }
 0xa43   :  { %v3949_v51 = vmul.f32 %v3873_v14, %v3793_v63  ;;  %4037 = vmatpush.msrb.mxu0 %v3952_v45 }
 0xa45   :  { %4038 = vmatpush.msrb.mxu0 %v3948_v47  ;;  %3977 = vmatpush.msra.mxu3 %v3949_v51 }
 0xa47   :  { %3978 = vmatpush.msra.mxu3 %v3945_v12 }
 0xa48   :  { %4312 = vmatmul.msk.f32.vlgmr.msra.gmra.mxu3 %vm206_vm11, %v3953_v30 }
 0xa49   :  { %4017 = vmatpush.msrb.mxu3 %v3951_v34 }
 0xa4a   :  { %4315 = vmatmul.msk.f32.vlgmr.msrb.gmra.mxu0 %vm206_vm11, %v3953_v30 }
 0xa4b   :  { %4018 = vmatpush.msrb.mxu3 %v3947_v44 }
 0xa50   :  { %4314 = vmatmul.msk.f32.vlgmr.msrb.gmra.mxu3 %vm206_vm11, %v3953_v30 }
 0xabf   :  { %v4000_v0 = vpop.f32.mrf.mxu0 }
 0xac0   :  { %v4001_v57 = vadd.f32 %v4000_v0, %v3958_v20 }
 0xac2   :  { %v4047_v17 = vrot.slane %v4001_v57, 4 }
 0xac7   :  { %v4040_v43 = vpop.f32.mrf.mxu0 }
 0xac8   :  { %v4041_v6 = vadd.f32 %v4040_v43, %v3958_v20 }
 0xaca   :  { %v4048_v41 = vrot.slane %v4041_v6, 4 }
 0xacb   :  { %v3980_v37 = vpop.f32.mrf.mxu3 }
 0xacc   :  { %v3981_v59 = vadd.f32 %v3980_v37, %v3958_v20 }
 0xace   :  { %v4050_v50 = vsel %vm4049_vm13, %v3981_v59, %v4047_v17 }
 0xacf   :  { %4054 = vst [vmem:[%s6777_s10] sm:$0x77] %v4050_v50 }
 0xad3   :  { %v4020_v35 = vpop.f32.mrf.mxu3 }
 0xad4   :  { %v4021_v52 = vadd.f32 %v4020_v35, %v3958_v20 }
 0xad6   :  { %v4051_v38 = vsel %vm4049_vm13, %v4021_v52, %v4048_v41 }
 0xad7   :  { %4055 = vst [vmem:[%s6777_s10 + $0x8] sm:$0x77] %v4051_v38 }

</bundles_post_ra>
